<compile_context>
chip_gen: v7x
topology: tpu7x:2x2x1
jax: 0.10.0
libtpu: 0.0.40
codegen_flags: <defaults>
</compile_context>

<pallas_src>
import jax
import jax.numpy as jnp
from jax import lax
from jax.experimental import pallas as pl
from jax.experimental.pallas import tpu as pltpu


def _make_kernel(C, CQ, P, TP):
    f32 = jnp.float32

    def kernel(xs_ref,
               wq_ref, bq_ref, wk_ref, bk_ref, wj_ref, bj_ref,
               wv_ref, bv_ref, gamma_ref,
               o_ref,
               q_scr, n_scr, v_scr, acc_scr):
        i = pl.program_id(1)

        # ---- per-batch init: conv projections + folded affinity factor, cached in VMEM ----
        @pl.when(i == 0)
        def _init():
            center = xs_ref[0, 0]                                        # (C, P)

            def proj(w_ref, b_ref, tap_minus, tap_plus):
                # lane-dense (CQ, P) result; taps folded as three small matmuls
                acc = jnp.dot(w_ref[1], center, preferred_element_type=f32)
                acc += jnp.dot(w_ref[0], xs_ref[0, tap_minus], preferred_element_type=f32)
                acc += jnp.dot(w_ref[2], xs_ref[0, tap_plus], preferred_element_type=f32)
                return acc + b_ref[...]

            q = proj(wq_ref, bq_ref, 1, 2)        # taps along W
            k = proj(wk_ref, bk_ref, 3, 4)        # taps along H
            j = proj(wj_ref, bj_ref, 5, 6)        # taps along D

            v = jnp.dot(wv_ref[...], center, preferred_element_type=f32) + bv_ref[...]  # (C, P)

            # affinity = (Q K^T)(J K^T) = Q (K J^T) K   ->  fold:  N = (K J^T) @ K
            m = lax.dot_general(k, j, (((1,), (1,)), ((), ())),
                                preferred_element_type=f32)               # (CQ, CQ)
            q_scr[...] = q
            n_scr[...] = jnp.dot(m, k, preferred_element_type=f32)        # (CQ, P)
            v_scr[...] = v
            acc_scr[...] = jnp.zeros_like(acc_scr)

        # ---- one TP-row block of the affinity, row softmax, incremental V @ S ----
        r0 = pl.multiple_of(i * TP, TP)
        q_blk = q_scr[:, pl.ds(r0, TP)]                                   # (CQ, TP)
        aff = lax.dot_general(q_blk, n_scr[...], (((0,), (0,)), ((), ())),
                              preferred_element_type=f32)                 # (TP, P)

        mx = jnp.max(aff, axis=-1, keepdims=True)
        e = jnp.exp(aff - mx)
        s = e * pl.reciprocal(jnp.sum(e, axis=-1, keepdims=True), approx=True)

        v_blk = v_scr[:, pl.ds(r0, TP)]                                   # (C, TP)
        acc_scr[...] += jnp.dot(v_blk, s, preferred_element_type=f32)     # (C, P)

        # ---- finalize: out = gamma * (V @ softmax(A)) + x ----
        @pl.when(i == pl.num_programs(1) - 1)
        def _fin():
            o_ref[0] = gamma_ref[0, 0] * acc_scr[...] + xs_ref[0, 0]

    return kernel


def _shifted(x, axis):
    """(out[i] = x[i-1], out[i] = x[i+1]) along `axis`, zero-padded at the boundary."""
    n = x.shape[axis]
    pads = [(0, 0)] * x.ndim
    pads[axis] = (1, 1)
    xp = jnp.pad(x, pads)
    minus = lax.slice_in_dim(xp, 0, n, axis=axis)        # x shifted: out[i] = x[i-1]
    plus = lax.slice_in_dim(xp, 2, n + 2, axis=axis)     # x shifted: out[i] = x[i+1]
    return minus, plus


def _pick_row_block(P):
    try:
        kind = jax.devices()[0].device_kind.lower()
    except Exception:
        kind = ""
    is_v5e = any(t in kind for t in ("v5 lite", "v5e", "v5lite"))
    if P % 256 == 0 and not is_v5e:
        return 256                       # fills v6e/v7x 256-wide MXU M dim
    if P % 128 == 0:
        return 128
    return P


def _pad2_bytes(shape, itemsize=4):
    lead = 1
    for d in shape[:-2]:
        lead *= d
    sub = -(-shape[-2] // 8) * 8
    lane = -(-shape[-1] // 128) * 128
    return lead * sub * lane * itemsize


def spatial_attention_forward(x, params, *, row_block=None):
    """x: (B, C, H, W, D) float32; params in PyTorch layouts (OIDHW conv weights)."""
    wq, bq, wk, bk, wj, bj, wv, bv, gamma = params
    B, C, H, W, D = x.shape
    CQ = wq.shape[0]
    P = H * W * D
    TP = _pick_row_block(P) if row_block is None else row_block
    assert P % TP == 0, (P, TP)

    x = x.astype(jnp.float32)
    # Pre-extract the shifted conv windows channel-major; slab 0 is the center
    # (also used as the residual).  Avoids strided 5-D slicing inside the kernel.
    wm, wp = _shifted(x, 3)   # W taps (query)
    hm, hp = _shifted(x, 2)   # H taps (key)
    dm, dp = _shifted(x, 4)   # D taps (judge)
    xs = jnp.stack([s.reshape(B, C, P) for s in (x, wm, wp, hm, hp, dm, dp)],
                   axis=1)                                               # (B, 7, C, P)

    # PyTorch conv weights -> per-tap (3, Cout, Cin) matrices.
    wq_t = jnp.transpose(wq[:, :, 0, :, 0], (2, 0, 1)).astype(jnp.float32)   # taps along W
    wk_t = jnp.transpose(wk[:, :, :, 0, 0], (2, 0, 1)).astype(jnp.float32)   # taps along H
    wj_t = jnp.transpose(wj[:, :, 0, 0, :], (2, 0, 1)).astype(jnp.float32)   # taps along D
    wv_oi = wv[:, :, 0, 0, 0].astype(jnp.float32)                             # (C, C)

    bq2 = bq.reshape(CQ, 1).astype(jnp.float32)
    bk2 = bk.reshape(CQ, 1).astype(jnp.float32)
    bj2 = bj.reshape(CQ, 1).astype(jnp.float32)
    bv2 = bv.reshape(C, 1).astype(jnp.float32)
    gamma2 = jnp.asarray(gamma, jnp.float32).reshape(1, 1)

    kernel = _make_kernel(C, CQ, P, TP)

    in_specs = [
        pl.BlockSpec((1, 7, C, P), lambda b, i: (b, 0, 0, 0)),              # shifted slabs
        pl.BlockSpec((3, CQ, C), lambda b, i: (0, 0, 0)),                    # wq taps
        pl.BlockSpec((CQ, 1), lambda b, i: (0, 0)),                          # bq
        pl.BlockSpec((3, CQ, C), lambda b, i: (0, 0, 0)),                    # wk taps
        pl.BlockSpec((CQ, 1), lambda b, i: (0, 0)),                          # bk
        pl.BlockSpec((3, CQ, C), lambda b, i: (0, 0, 0)),                    # wj taps
        pl.BlockSpec((CQ, 1), lambda b, i: (0, 0)),                          # bj
        pl.BlockSpec((C, C), lambda b, i: (0, 0)),                           # wv
        pl.BlockSpec((C, 1), lambda b, i: (0, 0)),                           # bv
        pl.BlockSpec(memory_space=pltpu.MemorySpace.SMEM),                   # gamma
    ]
    out_spec = pl.BlockSpec((1, C, P), lambda b, i: (b, 0, 0))

    scratch_shapes = [
        pltpu.VMEM((CQ, P), jnp.float32),    # Q projection (channel-major)
        pltpu.VMEM((CQ, P), jnp.float32),    # N = (K J^T) K
        pltpu.VMEM((C, P), jnp.float32),     # V projection (channel-major)
        pltpu.VMEM((C, P), jnp.float32),     # output accumulator V @ softmax(A)
    ]

    # VMEM budget derived from actual block + scratch sizes (double-buffered blocks).
    block_bytes = (_pad2_bytes((1, 7, C, P)) + 3 * _pad2_bytes((3, CQ, C))
                   + 3 * _pad2_bytes((CQ, 1)) + _pad2_bytes((C, C))
                   + _pad2_bytes((C, 1)) + _pad2_bytes((1, C, P)))
    scratch_bytes = 2 * _pad2_bytes((CQ, P)) + 2 * _pad2_bytes((C, P))
    vmem_limit = int(min(64 * 2**20,
                         max(16 * 2**20, 2 * block_bytes + scratch_bytes + (4 << 20))))

    flops = B * (2 * P * (9 * C * CQ + C * C)     # conv projections
                 + 4 * P * CQ * CQ                # M = K J^T and N = M K
                 + 2 * P * P * CQ                 # Q^T N
                 + 2 * P * P * C)                 # V @ softmax(A)
    bytes_accessed = 4 * (xs.size + 3 * wq_t.size + wv_oi.size
                          + 3 * CQ + C + 1 + B * C * P)
    cost = pl.CostEstimate(flops=int(flops), transcendentals=int(B * P * P),
                           bytes_accessed=int(bytes_accessed))

    out_flat = pl.pallas_call(
        kernel,
        out_shape=jax.ShapeDtypeStruct((B, C, P), jnp.float32),
        grid=(B, P // TP),
        in_specs=in_specs,
        out_specs=out_spec,
        scratch_shapes=scratch_shapes,
        compiler_params=pltpu.CompilerParams(
            dimension_semantics=("parallel", "arbitrary"),
            vmem_limit_bytes=vmem_limit),
        cost_estimate=cost,
    )(xs, wq_t, bq2, wk_t, bk2, wj_t, bj2, wv_oi, bv2, gamma2)

    return out_flat.reshape(B, C, H, W, D)


def reference_forward(x, params):
    """Pure-JAX reference matching the PyTorch module (f32, HIGHEST precision)."""
    wq, bq, wk, bk, wj, bj, wv, bv, gamma = params
    B, C, H, W, D = x.shape
    P = H * W * D
    hp = lax.Precision.HIGHEST

    def conv(w, b):
        pads = tuple(((s - 1) // 2, (s - 1) // 2) for s in w.shape[2:])
        y = lax.conv_general_dilated(
            x, w, window_strides=(1, 1, 1), padding=pads,
            dimension_numbers=("NCDHW", "OIDHW", "NCDHW"), precision=hp)
        return y + b.reshape(1, -1, 1, 1, 1)

    q = conv(wq, bq).reshape(B, -1, P)
    k = conv(wk, bk).reshape(B, -1, P)
    j = conv(wj, bj).reshape(B, -1, P)
    v = conv(wv, bv).reshape(B, C, P)

    a1 = jnp.einsum("bcp,bcm->bpm", q, k, precision=hp)    # proj_query @ proj_key
    a2 = jnp.einsum("bcp,bcm->bpm", j, k, precision=hp)    # proj_judge @ proj_key
    aff = jnp.einsum("bpm,bmn->bpn", a1, a2, precision=hp)
    aff = jax.nn.softmax(aff, axis=-1)
    w_ = jnp.einsum("bcp,bpn->bcn", v, aff, precision=hp)  # proj_value @ affinity
    return gamma * w_.reshape(B, C, H, W, D) + x


if __name__ == "__main__":
    B, C, H, W, D = 2, 32, 8, 8, 8
    CQ = C // 8
    key = jax.random.PRNGKey(0)
    ks = jax.random.split(key, 10)

    x = jax.random.normal(ks[0], (B, C, H, W, D), jnp.float32)
    # PyTorch layouts: conv weights (O, I, k1, k2, k3), per-channel biases.
    wq = 0.02 * jax.random.normal(ks[1], (CQ, C, 1, 3, 1), jnp.float32)
    bq = 0.05 * jax.random.normal(ks[2], (CQ,), jnp.float32)
    wk = 0.02 * jax.random.normal(ks[3], (CQ, C, 3, 1, 1), jnp.float32)
    bk = 0.05 * jax.random.normal(ks[4], (CQ,), jnp.float32)
    wj = 0.02 * jax.random.normal(ks[5], (CQ, C, 1, 1, 3), jnp.float32)
    bj = 0.05 * jax.random.normal(ks[6], (CQ,), jnp.float32)
    wv = 0.1 * jax.random.normal(ks[7], (C, C, 1, 1, 1), jnp.float32)
    bv = 0.05 * jax.random.normal(ks[8], (C,), jnp.float32)
    # nn.Parameter(torch.zeros(1)) in the module; use a nonzero value so the
    # attention path is actually exercised by the correctness check.
    gamma = jnp.float32(0.5)
    params = (wq, bq, wk, bk, wj, bj, wv, bv, gamma)

    out = jax.block_until_ready(spatial_attention_forward(x, params))
    ref = jax.block_until_ready(reference_forward(x, params))

    assert out.shape == (B, C, H, W, D), out.shape
    max_err = float(jnp.max(jnp.abs(out - ref)))
    assert max_err < 2e-2, f"max abs err {max_err}"
    print("KERNEL_OK")
</pallas_src>

<mosaic_0001>
module attributes {stable_mosaic.version = 11 : i64} {
  func.func @kernel(%arg0: i32, %arg1: i32, %arg2: memref<1x7x32x512xf32, #tpu.memory_space<vmem>>, %arg3: memref<3x4x32xf32, #tpu.memory_space<vmem>>, %arg4: memref<4x1xf32, #tpu.memory_space<vmem>>, %arg5: memref<3x4x32xf32, #tpu.memory_space<vmem>>, %arg6: memref<4x1xf32, #tpu.memory_space<vmem>>, %arg7: memref<3x4x32xf32, #tpu.memory_space<vmem>>, %arg8: memref<4x1xf32, #tpu.memory_space<vmem>>, %arg9: memref<32x32xf32, #tpu.memory_space<vmem>>, %arg10: memref<32x1xf32, #tpu.memory_space<vmem>>, %arg11: memref<1x1xf32, #tpu.memory_space<smem>>, %arg12: memref<1x32x512xf32, #tpu.memory_space<vmem>>, %arg13: memref<4x512xf32, #tpu.memory_space<vmem>>, %arg14: memref<4x512xf32, #tpu.memory_space<vmem>>, %arg15: memref<32x512xf32, #tpu.memory_space<vmem>>, %arg16: memref<32x512xf32, #tpu.memory_space<vmem>>) attributes {dimension_semantics = [#tpu.dimension_semantics<parallel>, #tpu.dimension_semantics<arbitrary>], iteration_bounds = array<i64: 2, 2>, scalar_prefetch = 0 : i64, scratch_operands = 4 : i64, tpu.core_type = #tpu.core_type<tc>, window_params = [{transform_indices = @transform_0, window_bounds = array<i64: 1, 7, 32, 512>}, {pipeline_mode = #tpu.pipeline_mode<synchronous>, transform_indices = @transform_1, window_bounds = array<i64: 3, 4, 32>}, {pipeline_mode = #tpu.pipeline_mode<synchronous>, transform_indices = @transform_2, window_bounds = array<i64: 4, 1>}, {pipeline_mode = #tpu.pipeline_mode<synchronous>, transform_indices = @transform_3, window_bounds = array<i64: 3, 4, 32>}, {pipeline_mode = #tpu.pipeline_mode<synchronous>, transform_indices = @transform_4, window_bounds = array<i64: 4, 1>}, {pipeline_mode = #tpu.pipeline_mode<synchronous>, transform_indices = @transform_5, window_bounds = array<i64: 3, 4, 32>}, {pipeline_mode = #tpu.pipeline_mode<synchronous>, transform_indices = @transform_6, window_bounds = array<i64: 4, 1>}, {pipeline_mode = #tpu.pipeline_mode<synchronous>, transform_indices = @transform_7, window_bounds = array<i64: 32, 32>}, {pipeline_mode = #tpu.pipeline_mode<synchronous>, transform_indices = @transform_8, window_bounds = array<i64: 32, 1>}, {transform_indices = @transform_9, window_bounds = array<i64: 1, 1>}, {transform_indices = @transform_10, window_bounds = array<i64: 1, 32, 512>}]} {
    %c0_i32 = arith.constant 0 : i32
    %0 = arith.cmpi eq, %arg1, %c0_i32 : i32
    %1 = arith.extui %0 : i1 to i32
    %c0_i32_0 = arith.constant 0 : i32
    %2 = arith.cmpi ne, %1, %c0_i32_0 : i32
    scf.if %2 {
      %c0_12 = arith.constant 0 : index
      %c0_13 = arith.constant 0 : index
      %c0_14 = arith.constant 0 : index
      %c0_15 = arith.constant 0 : index
      %28 = vector.load %arg2[%c0_12, %c0_13, %c0_14, %c0_15] : memref<1x7x32x512xf32, #tpu.memory_space<vmem>>, vector<1x1x32x512xf32>
      %29 = vector.shape_cast %28 : vector<1x1x32x512xf32> to vector<32x512xf32>
      %c1 = arith.constant 1 : index
      %c0_16 = arith.constant 0 : index
      %c0_17 = arith.constant 0 : index
      %30 = vector.load %arg3[%c1, %c0_16, %c0_17] : memref<3x4x32xf32, #tpu.memory_space<vmem>>, vector<1x4x32xf32>
      %31 = vector.shape_cast %30 : vector<1x4x32xf32> to vector<4x32xf32>
      %cst_18 = arith.constant dense<0.000000e+00> : vector<4x512xf32>
      %32 = tpu.matmul %31, %29, %cst_18 {dimension_numbers = #tpu.dot_dimension_numbers<[1], [0], [0], [1], [0, 0, 1, 1], [], []>} : vector<4x32xf32>, vector<32x512xf32>, vector<4x512xf32> -> vector<4x512xf32>
      %c0_19 = arith.constant 0 : index
      %c0_20 = arith.constant 0 : index
      %c0_21 = arith.constant 0 : index
      %33 = vector.load %arg3[%c0_19, %c0_20, %c0_21] : memref<3x4x32xf32, #tpu.memory_space<vmem>>, vector<1x4x32xf32>
      %34 = vector.shape_cast %33 : vector<1x4x32xf32> to vector<4x32xf32>
      %c0_22 = arith.constant 0 : index
      %c1_23 = arith.constant 1 : index
      %c0_24 = arith.constant 0 : index
      %c0_25 = arith.constant 0 : index
      %35 = vector.load %arg2[%c0_22, %c1_23, %c0_24, %c0_25] : memref<1x7x32x512xf32, #tpu.memory_space<vmem>>, vector<1x1x32x512xf32>
      %36 = vector.shape_cast %35 : vector<1x1x32x512xf32> to vector<32x512xf32>
      %cst_26 = arith.constant dense<0.000000e+00> : vector<4x512xf32>
      %37 = tpu.matmul %34, %36, %cst_26 {dimension_numbers = #tpu.dot_dimension_numbers<[1], [0], [0], [1], [0, 0, 1, 1], [], []>} : vector<4x32xf32>, vector<32x512xf32>, vector<4x512xf32> -> vector<4x512xf32>
      %38 = arith.addf %32, %37 : vector<4x512xf32>
      %c2 = arith.constant 2 : index
      %c0_27 = arith.constant 0 : index
      %c0_28 = arith.constant 0 : index
      %39 = vector.load %arg3[%c2, %c0_27, %c0_28] : memref<3x4x32xf32, #tpu.memory_space<vmem>>, vector<1x4x32xf32>
      %40 = vector.shape_cast %39 : vector<1x4x32xf32> to vector<4x32xf32>
      %c0_29 = arith.constant 0 : index
      %c2_30 = arith.constant 2 : index
      %c0_31 = arith.constant 0 : index
      %c0_32 = arith.constant 0 : index
      %41 = vector.load %arg2[%c0_29, %c2_30, %c0_31, %c0_32] : memref<1x7x32x512xf32, #tpu.memory_space<vmem>>, vector<1x1x32x512xf32>
      %42 = vector.shape_cast %41 : vector<1x1x32x512xf32> to vector<32x512xf32>
      %cst_33 = arith.constant dense<0.000000e+00> : vector<4x512xf32>
      %43 = tpu.matmul %40, %42, %cst_33 {dimension_numbers = #tpu.dot_dimension_numbers<[1], [0], [0], [1], [0, 0, 1, 1], [], []>} : vector<4x32xf32>, vector<32x512xf32>, vector<4x512xf32> -> vector<4x512xf32>
      %44 = arith.addf %38, %43 : vector<4x512xf32>
      %c0_34 = arith.constant 0 : index
      %c0_35 = arith.constant 0 : index
      %45 = vector.load %arg4[%c0_34, %c0_35] : memref<4x1xf32, #tpu.memory_space<vmem>>, vector<4x1xf32>
      %46 = vector.broadcast %45 : vector<4x1xf32> to vector<4x512xf32>
      %47 = arith.addf %44, %46 : vector<4x512xf32>
      %c1_36 = arith.constant 1 : index
      %c0_37 = arith.constant 0 : index
      %c0_38 = arith.constant 0 : index
      %48 = vector.load %arg5[%c1_36, %c0_37, %c0_38] : memref<3x4x32xf32, #tpu.memory_space<vmem>>, vector<1x4x32xf32>
      %49 = vector.shape_cast %48 : vector<1x4x32xf32> to vector<4x32xf32>
      %cst_39 = arith.constant dense<0.000000e+00> : vector<4x512xf32>
      %50 = tpu.matmul %49, %29, %cst_39 {dimension_numbers = #tpu.dot_dimension_numbers<[1], [0], [0], [1], [0, 0, 1, 1], [], []>} : vector<4x32xf32>, vector<32x512xf32>, vector<4x512xf32> -> vector<4x512xf32>
      %c0_40 = arith.constant 0 : index
      %c0_41 = arith.constant 0 : index
      %c0_42 = arith.constant 0 : index
      %51 = vector.load %arg5[%c0_40, %c0_41, %c0_42] : memref<3x4x32xf32, #tpu.memory_space<vmem>>, vector<1x4x32xf32>
      %52 = vector.shape_cast %51 : vector<1x4x32xf32> to vector<4x32xf32>
      %c0_43 = arith.constant 0 : index
      %c3 = arith.constant 3 : index
      %c0_44 = arith.constant 0 : index
      %c0_45 = arith.constant 0 : index
      %53 = vector.load %arg2[%c0_43, %c3, %c0_44, %c0_45] : memref<1x7x32x512xf32, #tpu.memory_space<vmem>>, vector<1x1x32x512xf32>
      %54 = vector.shape_cast %53 : vector<1x1x32x512xf32> to vector<32x512xf32>
      %cst_46 = arith.constant dense<0.000000e+00> : vector<4x512xf32>
      %55 = tpu.matmul %52, %54, %cst_46 {dimension_numbers = #tpu.dot_dimension_numbers<[1], [0], [0], [1], [0, 0, 1, 1], [], []>} : vector<4x32xf32>, vector<32x512xf32>, vector<4x512xf32> -> vector<4x512xf32>
      %56 = arith.addf %50, %55 : vector<4x512xf32>
      %c2_47 = arith.constant 2 : index
      %c0_48 = arith.constant 0 : index
      %c0_49 = arith.constant 0 : index
      %57 = vector.load %arg5[%c2_47, %c0_48, %c0_49] : memref<3x4x32xf32, #tpu.memory_space<vmem>>, vector<1x4x32xf32>
      %58 = vector.shape_cast %57 : vector<1x4x32xf32> to vector<4x32xf32>
      %c0_50 = arith.constant 0 : index
      %c4 = arith.constant 4 : index
      %c0_51 = arith.constant 0 : index
      %c0_52 = arith.constant 0 : index
      %59 = vector.load %arg2[%c0_50, %c4, %c0_51, %c0_52] : memref<1x7x32x512xf32, #tpu.memory_space<vmem>>, vector<1x1x32x512xf32>
      %60 = vector.shape_cast %59 : vector<1x1x32x512xf32> to vector<32x512xf32>
      %cst_53 = arith.constant dense<0.000000e+00> : vector<4x512xf32>
      %61 = tpu.matmul %58, %60, %cst_53 {dimension_numbers = #tpu.dot_dimension_numbers<[1], [0], [0], [1], [0, 0, 1, 1], [], []>} : vector<4x32xf32>, vector<32x512xf32>, vector<4x512xf32> -> vector<4x512xf32>
      %62 = arith.addf %56, %61 : vector<4x512xf32>
      %c0_54 = arith.constant 0 : index
      %c0_55 = arith.constant 0 : index
      %63 = vector.load %arg6[%c0_54, %c0_55] : memref<4x1xf32, #tpu.memory_space<vmem>>, vector<4x1xf32>
      %64 = vector.broadcast %63 : vector<4x1xf32> to vector<4x512xf32>
      %65 = arith.addf %62, %64 : vector<4x512xf32>
      %c1_56 = arith.constant 1 : index
      %c0_57 = arith.constant 0 : index
      %c0_58 = arith.constant 0 : index
      %66 = vector.load %arg7[%c1_56, %c0_57, %c0_58] : memref<3x4x32xf32, #tpu.memory_space<vmem>>, vector<1x4x32xf32>
      %67 = vector.shape_cast %66 : vector<1x4x32xf32> to vector<4x32xf32>
      %cst_59 = arith.constant dense<0.000000e+00> : vector<4x512xf32>
      %68 = tpu.matmul %67, %29, %cst_59 {dimension_numbers = #tpu.dot_dimension_numbers<[1], [0], [0], [1], [0, 0, 1, 1], [], []>} : vector<4x32xf32>, vector<32x512xf32>, vector<4x512xf32> -> vector<4x512xf32>
      %c0_60 = arith.constant 0 : index
      %c0_61 = arith.constant 0 : index
      %c0_62 = arith.constant 0 : index
      %69 = vector.load %arg7[%c0_60, %c0_61, %c0_62] : memref<3x4x32xf32, #tpu.memory_space<vmem>>, vector<1x4x32xf32>
      %70 = vector.shape_cast %69 : vector<1x4x32xf32> to vector<4x32xf32>
      %c0_63 = arith.constant 0 : index
      %c5 = arith.constant 5 : index
      %c0_64 = arith.constant 0 : index
      %c0_65 = arith.constant 0 : index
      %71 = vector.load %arg2[%c0_63, %c5, %c0_64, %c0_65] : memref<1x7x32x512xf32, #tpu.memory_space<vmem>>, vector<1x1x32x512xf32>
      %72 = vector.shape_cast %71 : vector<1x1x32x512xf32> to vector<32x512xf32>
      %cst_66 = arith.constant dense<0.000000e+00> : vector<4x512xf32>
      %73 = tpu.matmul %70, %72, %cst_66 {dimension_numbers = #tpu.dot_dimension_numbers<[1], [0], [0], [1], [0, 0, 1, 1], [], []>} : vector<4x32xf32>, vector<32x512xf32>, vector<4x512xf32> -> vector<4x512xf32>
      %74 = arith.addf %68, %73 : vector<4x512xf32>
      %c2_67 = arith.constant 2 : index
      %c0_68 = arith.constant 0 : index
      %c0_69 = arith.constant 0 : index
      %75 = vector.load %arg7[%c2_67, %c0_68, %c0_69] : memref<3x4x32xf32, #tpu.memory_space<vmem>>, vector<1x4x32xf32>
      %76 = vector.shape_cast %75 : vector<1x4x32xf32> to vector<4x32xf32>
      %c0_70 = arith.constant 0 : index
      %c6 = arith.constant 6 : index
      %c0_71 = arith.constant 0 : index
      %c0_72 = arith.constant 0 : index
      %77 = vector.load %arg2[%c0_70, %c6, %c0_71, %c0_72] : memref<1x7x32x512xf32, #tpu.memory_space<vmem>>, vector<1x1x32x512xf32>
      %78 = vector.shape_cast %77 : vector<1x1x32x512xf32> to vector<32x512xf32>
      %cst_73 = arith.constant dense<0.000000e+00> : vector<4x512xf32>
      %79 = tpu.matmul %76, %78, %cst_73 {dimension_numbers = #tpu.dot_dimension_numbers<[1], [0], [0], [1], [0, 0, 1, 1], [], []>} : vector<4x32xf32>, vector<32x512xf32>, vector<4x512xf32> -> vector<4x512xf32>
      %80 = arith.addf %74, %79 : vector<4x512xf32>
      %c0_74 = arith.constant 0 : index
      %c0_75 = arith.constant 0 : index
      %81 = vector.load %arg8[%c0_74, %c0_75] : memref<4x1xf32, #tpu.memory_space<vmem>>, vector<4x1xf32>
      %82 = vector.broadcast %81 : vector<4x1xf32> to vector<4x512xf32>
      %83 = arith.addf %80, %82 : vector<4x512xf32>
      %c0_76 = arith.constant 0 : index
      %c0_77 = arith.constant 0 : index
      %84 = vector.load %arg9[%c0_76, %c0_77] : memref<32x32xf32, #tpu.memory_space<vmem>>, vector<32x32xf32>
      %cst_78 = arith.constant dense<0.000000e+00> : vector<32x512xf32>
      %85 = tpu.matmul %84, %29, %cst_78 {dimension_numbers = #tpu.dot_dimension_numbers<[1], [0], [0], [1], [0, 0, 1, 1], [], []>} : vector<32x32xf32>, vector<32x512xf32>, vector<32x512xf32> -> vector<32x512xf32>
      %c0_79 = arith.constant 0 : index
      %c0_80 = arith.constant 0 : index
      %86 = vector.load %arg10[%c0_79, %c0_80] : memref<32x1xf32, #tpu.memory_space<vmem>>, vector<32x1xf32>
      %87 = vector.broadcast %86 : vector<32x1xf32> to vector<32x512xf32>
      %88 = arith.addf %85, %87 : vector<32x512xf32>
      %cst_81 = arith.constant dense<0.000000e+00> : vector<4x4xf32>
      %89 = tpu.matmul %65, %83, %cst_81 {dimension_numbers = #tpu.dot_dimension_numbers<[1], [1], [0], [0], [0, 0, 1, 0], [], []>} : vector<4x512xf32>, vector<4x512xf32>, vector<4x4xf32> -> vector<4x4xf32>
      %c0_82 = arith.constant 0 : index
      %c0_83 = arith.constant 0 : index
      %90 = vector.load %arg13[%c0_82, %c0_83] : memref<4x512xf32, #tpu.memory_space<vmem>>, vector<4x512xf32>
      tpu.vector_store %arg13[%c0_82, %c0_83], %47 {strides = array<i32>} : memref<4x512xf32, #tpu.memory_space<vmem>>, vector<4x512xf32>,
      %cst_84 = arith.constant dense<0.000000e+00> : vector<4x512xf32>
      %91 = tpu.matmul %89, %65, %cst_84 {dimension_numbers = #tpu.dot_dimension_numbers<[1], [0], [0], [1], [0, 0, 1, 1], [], []>} : vector<4x4xf32>, vector<4x512xf32>, vector<4x512xf32> -> vector<4x512xf32>
      %c0_85 = arith.constant 0 : index
      %c0_86 = arith.constant 0 : index
      %92 = vector.load %arg14[%c0_85, %c0_86] : memref<4x512xf32, #tpu.memory_space<vmem>>, vector<4x512xf32>
      tpu.vector_store %arg14[%c0_85, %c0_86], %91 {strides = array<i32>} : memref<4x512xf32, #tpu.memory_space<vmem>>, vector<4x512xf32>,
      %c0_87 = arith.constant 0 : index
      %c0_88 = arith.constant 0 : index
      %93 = vector.load %arg15[%c0_87, %c0_88] : memref<32x512xf32, #tpu.memory_space<vmem>>, vector<32x512xf32>
      tpu.vector_store %arg15[%c0_87, %c0_88], %88 {strides = array<i32>} : memref<32x512xf32, #tpu.memory_space<vmem>>, vector<32x512xf32>,
      %cst_89 = arith.constant 0.000000e+00 : f32
      %94 = vector.broadcast %cst_89 : f32 to vector<32x512xf32>
      %c0_90 = arith.constant 0 : index
      %c0_91 = arith.constant 0 : index
      %95 = vector.load %arg16[%c0_90, %c0_91] : memref<32x512xf32, #tpu.memory_space<vmem>>, vector<32x512xf32>
      tpu.vector_store %arg16[%c0_90, %c0_91], %94 {strides = array<i32>} : memref<32x512xf32, #tpu.memory_space<vmem>>, vector<32x512xf32>,
    } else {
    }
    %c256_i32 = arith.constant 256 : i32
    %3 = arith.muli %arg1, %c256_i32 : i32
    %4 = tpu.assume_multiple %3, 256 : i32
    %c0 = arith.constant 0 : index
    %5 = arith.index_cast %4 : i32 to index
    %6 = vector.load %arg13[%c0, %5] : memref<4x512xf32, #tpu.memory_space<vmem>>, vector<4x256xf32>
    %c0_1 = arith.constant 0 : index
    %c0_2 = arith.constant 0 : index
    %7 = vector.load %arg14[%c0_1, %c0_2] : memref<4x512xf32, #tpu.memory_space<vmem>>, vector<4x512xf32>
    %cst = arith.constant dense<0.000000e+00> : vector<256x512xf32>
    %8 = tpu.matmul %6, %7, %cst {dimension_numbers = #tpu.dot_dimension_numbers<[0], [0], [1], [1], [0, 1, 1, 1], [], []>} : vector<4x256xf32>, vector<4x512xf32>, vector<256x512xf32> -> vector<256x512xf32>
    %cst_3 = arith.constant dense<0xFF800000> : vector<256xf32>
    %9 = vector.multi_reduction <maximumf>, %8, %cst_3 [1] : vector<256x512xf32> to vector<256xf32>
    %10 = vector.shape_cast %9 : vector<256xf32> to vector<256x1xf32>
    %11 = vector.broadcast %10 : vector<256x1xf32> to vector<256x512xf32>
    %12 = arith.subf %8, %11 : vector<256x512xf32>
    %13 = math.exp %12 : vector<256x512xf32>
    %cst_4 = arith.constant dense<0.000000e+00> : vector<256xf32>
    %14 = vector.multi_reduction <add>, %13, %cst_4 [1] : vector<256x512xf32> to vector<256xf32>
    %15 = vector.shape_cast %14 : vector<256xf32> to vector<256x1xf32>
    %16 = tpu.reciprocal %15 {approx = true} : vector<256x1xf32> -> vector<256x1xf32>
    %17 = vector.broadcast %16 : vector<256x1xf32> to vector<256x512xf32>
    %18 = arith.mulf %13, %17 : vector<256x512xf32>
    %c0_5 = arith.constant 0 : index
    %19 = arith.index_cast %4 : i32 to index
    %20 = vector.load %arg15[%c0_5, %19] : memref<32x512xf32, #tpu.memory_space<vmem>>, vector<32x256xf32>
    %c0_6 = arith.constant 0 : index
    %c0_7 = arith.constant 0 : index
    %21 = vector.load %arg16[%c0_6, %c0_7] : memref<32x512xf32, #tpu.memory_space<vmem>>, vector<32x512xf32>
    %cst_8 = arith.constant dense<0.000000e+00> : vector<32x512xf32>
    %22 = tpu.matmul %20, %18, %cst_8 {dimension_numbers = #tpu.dot_dimension_numbers<[1], [0], [0], [1], [0, 0, 1, 1], [], []>} : vector<32x256xf32>, vector<256x512xf32>, vector<32x512xf32> -> vector<32x512xf32>
    %23 = arith.addf %21, %22 : vector<32x512xf32>
    %c0_9 = arith.constant 0 : index
    %c0_10 = arith.constant 0 : index
    %24 = vector.load %arg16[%c0_9, %c0_10] : memref<32x512xf32, #tpu.memory_space<vmem>>, vector<32x512xf32>
    tpu.vector_store %arg16[%c0_9, %c0_10], %23 {strides = array<i32>} : memref<32x512xf32, #tpu.memory_space<vmem>>, vector<32x512xf32>,
    %c1_i32 = arith.constant 1 : i32
    %25 = arith.cmpi eq, %arg1, %c1_i32 : i32
    %26 = arith.extui %25 : i1 to i32
    %c0_i32_11 = arith.constant 0 : i32
    %27 = arith.cmpi ne, %26, %c0_i32_11 : i32
    scf.if %27 {
      %c0_12 = arith.constant 0 : index
      %c0_13 = arith.constant 0 : index
      %28 = memref.load %arg11[%c0_12, %c0_13] : memref<1x1xf32, #tpu.memory_space<smem>>
      %c0_14 = arith.constant 0 : index
      %c0_15 = arith.constant 0 : index
      %29 = vector.load %arg16[%c0_14, %c0_15] : memref<32x512xf32, #tpu.memory_space<vmem>>, vector<32x512xf32>
      %30 = vector.broadcast %28 : f32 to vector<32x512xf32>
      %31 = arith.mulf %30, %29 : vector<32x512xf32>
      %c0_16 = arith.constant 0 : index
      %c0_17 = arith.constant 0 : index
      %c0_18 = arith.constant 0 : index
      %c0_19 = arith.constant 0 : index
      %32 = vector.load %arg2[%c0_16, %c0_17, %c0_18, %c0_19] : memref<1x7x32x512xf32, #tpu.memory_space<vmem>>, vector<1x1x32x512xf32>
      %33 = vector.shape_cast %32 : vector<1x1x32x512xf32> to vector<32x512xf32>
      %34 = arith.addf %31, %33 : vector<32x512xf32>
      %c0_20 = arith.constant 0 : index
      %c0_21 = arith.constant 0 : index
      %c0_22 = arith.constant 0 : index
      %35 = vector.load %arg12[%c0_20, %c0_21, %c0_22] : memref<1x32x512xf32, #tpu.memory_space<vmem>>, vector<1x32x512xf32>
      %36 = vector.shape_cast %35 : vector<1x32x512xf32> to vector<32x512xf32>
      %37 = vector.shape_cast %34 : vector<32x512xf32> to vector<1x32x512xf32>
      tpu.vector_store %arg12[%c0_20, %c0_21, %c0_22], %37 {strides = array<i32>} : memref<1x32x512xf32, #tpu.memory_space<vmem>>, vector<1x32x512xf32>,
    } else {
    }
    return
  }
  func.func @transform_0(%arg0: i32, %arg1: i32) -> (i32, i32, i32, i32) {
    %c0_i32 = arith.constant 0 : i32
    %c0_i32_0 = arith.constant 0 : i32
    %c0_i32_1 = arith.constant 0 : i32
    %c0_i32_2 = arith.constant 0 : i32
    return %arg0, %c0_i32, %c0_i32_0, %c0_i32_1 : i32, i32, i32, i32
  }
  func.func @transform_1(%arg0: i32, %arg1: i32) -> (i32, i32, i32) {
    %c0_i32 = arith.constant 0 : i32
    %c0_i32_0 = arith.constant 0 : i32
    %c0_i32_1 = arith.constant 0 : i32
    %c0_i32_2 = arith.constant 0 : i32
    return %c0_i32, %c0_i32_0, %c0_i32_1 : i32, i32, i32
  }
  func.func @transform_2(%arg0: i32, %arg1: i32) -> (i32, i32) {
    %c0_i32 = arith.constant 0 : i32
    %c0_i32_0 = arith.constant 0 : i32
    %c0_i32_1 = arith.constant 0 : i32
    return %c0_i32, %c0_i32_0 : i32, i32
  }
  func.func @transform_3(%arg0: i32, %arg1: i32) -> (i32, i32, i32) {
    %c0_i32 = arith.constant 0 : i32
    %c0_i32_0 = arith.constant 0 : i32
    %c0_i32_1 = arith.constant 0 : i32
    %c0_i32_2 = arith.constant 0 : i32
    return %c0_i32, %c0_i32_0, %c0_i32_1 : i32, i32, i32
  }
  func.func @transform_4(%arg0: i32, %arg1: i32) -> (i32, i32) {
    %c0_i32 = arith.constant 0 : i32
    %c0_i32_0 = arith.constant 0 : i32
    %c0_i32_1 = arith.constant 0 : i32
    return %c0_i32, %c0_i32_0 : i32, i32
  }
  func.func @transform_5(%arg0: i32, %arg1: i32) -> (i32, i32, i32) {
    %c0_i32 = arith.constant 0 : i32
    %c0_i32_0 = arith.constant 0 : i32
    %c0_i32_1 = arith.constant 0 : i32
    %c0_i32_2 = arith.constant 0 : i32
    return %c0_i32, %c0_i32_0, %c0_i32_1 : i32, i32, i32
  }
  func.func @transform_6(%arg0: i32, %arg1: i32) -> (i32, i32) {
    %c0_i32 = arith.constant 0 : i32
    %c0_i32_0 = arith.constant 0 : i32
    %c0_i32_1 = arith.constant 0 : i32
    return %c0_i32, %c0_i32_0 : i32, i32
  }
  func.func @transform_7(%arg0: i32, %arg1: i32) -> (i32, i32) {
    %c0_i32 = arith.constant 0 : i32
    %c0_i32_0 = arith.constant 0 : i32
    %c0_i32_1 = arith.constant 0 : i32
    return %c0_i32, %c0_i32_0 : i32, i32
  }
  func.func @transform_8(%arg0: i32, %arg1: i32) -> (i32, i32) {
    %c0_i32 = arith.constant 0 : i32
    %c0_i32_0 = arith.constant 0 : i32
    %c0_i32_1 = arith.constant 0 : i32
    return %c0_i32, %c0_i32_0 : i32, i32
  }
  func.func @transform_9(%arg0: i32, %arg1: i32) -> (i32, i32) {
    %c0_i32 = arith.constant 0 : i32
    %c0_i32_0 = arith.constant 0 : i32
    %c0_i32_1 = arith.constant 0 : i32
    return %c0_i32, %c0_i32_0 : i32, i32
  }
  func.func @transform_10(%arg0: i32, %arg1: i32) -> (i32, i32, i32) {
    %c0_i32 = arith.constant 0 : i32
    %c0_i32_0 = arith.constant 0 : i32
    %c0_i32_1 = arith.constant 0 : i32
    return %arg0, %c0_i32, %c0_i32_0 : i32, i32, i32
  }
}

</mosaic_0001>

<bundles_post_ra>
// kernel: tpu_custom_call.1
= control target key start
LH: loop header
LB: loop body
LE: loop exit
PB: predicated region body
PF: predicated region fallthrough
CT: control target
= control target key end

     0   :  { %s7270_s0 = inlined_call_operand.hbm [shape: f32[2,7,32,512], index: 0, kind: input, shape index: {}]   ;;  %s7271_s1 = inlined_call_operand.vmem [shape: f32[3,4,32], index: 1, kind: input, shape index: {}]   ;;  %s7272_s2 = inlined_call_operand.vmem [shape: f32[4,1], index: 2, kind: input, shape index: {}]   ;;  %s7273_s3 = inlined_call_operand.vmem [shape: f32[3,4,32], index: 3, kind: input, shape index: {}]   ;;  %s7274_s4 = inlined_call_operand.vmem [shape: f32[4,1], index: 4, kind: input, shape index: {}]   ;;  %s7275_s5 = inlined_call_operand.vmem [shape: f32[3,4,32], index: 5, kind: input, shape index: {}]   ;;  %s7276_s6 = inlined_call_operand.vmem [shape: f32[4,1], index: 6, kind: input, shape index: {}]   ;;  %s7277_s7 = inlined_call_operand.vmem [shape: f32[32,32], index: 7, kind: input, shape index: {}]   ;;  %s7278_s8 = inlined_call_operand.vmem [shape: f32[32,1], index: 8, kind: input, shape index: {}]   ;;  %s7279_s9 = inlined_call_operand.<no memory space> [shape: f32[1,1], index: 9, kind: input, shape index: {}]   ;;  %s7280_s10 = inlined_call_operand.hbm [shape: f32[2,32,512], index: 10, kind: output, shape index: {}]  }
   0x1   :  { %15 = sst [smem:[#allocation6]] %s7279_s9 }
   0x2   :  { %16 = vsyncpa [#allocation8], 0 }
   0x3   :  { %18 = vsyncpa [#allocation8 + $0x1], 0 }
   0x4   :  { %19 = vsyncpa [#allocation9], 0 }
   0x5   :  { %21 = vsyncpa [#allocation9 + $0x1], 0  ;;  %s5576_s15 = smov 0   ;;  %s5578_s16 = smov 0  }
   0x6   :  { %s5580_s17 = smov 0   ;;  %s5582_s18 = smov 0  }
   0x7   :  { %s5584_s19 = smov 0   ;;  %s5586_s20 = smov 0  }
   0x8   :  { %s5588_s21 = smov 0   ;;  %s5590_s22 = smov 0  }
   0x9 LB: > { %7442 = sst [smem:[#allocation13_spill]] %s5499_s20  ;;  %s4432_s9 = sadd.s32 4294967295, %s5507_s22   ;;  %s5507_s22 = sphi %s5590_s22, %s27_s22   ;;  %s5503_s21 = sphi %s5588_s21, %s7773_s21   ;;  %s5499_s20 = sphi %s5586_s20, %s7772_s20   ;;  %s5495_s19 = sphi %s5584_s19, %s7777_s19   ;;  %s5491_s18 = sphi %s5582_s18, %s7770_s18   ;;  %s5487_s17 = sphi %s5580_s17, %s7776_s17   ;;  %s5483_s16 = sphi %s5578_s16, %s7775_s16   ;;  %s5479_s15 = sphi %s5576_s15, %s7774_s15  }
   0xa   : > { %7443 = sst [smem:[#allocation14_spill]] %s5503_s21  ;;  %s4433_s23 = sadd.s32 4294967294, %s5507_s22  }
   0xb   : > { %s36_s24 = sadd.s32 1, %s5499_s20  ;;  %s39_s25 = sadd.s32 1, %s5503_s21 }
   0xc   : > { %p37_p0 = scmp.ge.s32.totalorder %s36_s24, 2  ;;  %s46_s26 = sadd.s32 1, %s5487_s17 }
   0xd   : > { %p53_p1 = scmp.ne.s32.totalorder %s5487_s17, %s5483_s16  ;;  %p54_p2 = scmp.eq.s32.totalorder %s5507_s22, 0 }
   0xe   : > { %s7779_s24 = smov (%p37_p0, %s36_s24), 0  ;;  %s7781_s25 = smov (!%p37_p0, %s39_s25), %s5503_s21 }
   0xf   : > { %7444 = sst [smem:[#allocation15_spill]] %s7779_s24  ;;  %p5627_p3 = por %p54_p2, %p53_p1 }
  0x10   : > { %p59_p4 = scmp.ne.s32.totalorder %s5483_s16, %s5479_s15  ;;  %p41_p5 = scmp.ge.s32.totalorder %s7781_s25, 2 }
  0x11   : > { %p60_p6 = scmp.eq.s32.totalorder %s4432_s9, 0  ;;  %p272_p7 = scmp.eq.s32.totalorder %s4432_s9, 3 }
  0x12   : > { %p278_p8 = scmp.eq.s32.totalorder %s4433_s23, 3  ;;  %s7783_s25 = smov (%p41_p5, %s7781_s25), 0 }
  0x13   : > { %7446 = sst [smem:[#allocation16_spill]] %s7783_s25  ;;  %p5635_p9 = por %p60_p6, %p59_p4 }
  0x14   : > { %p5639_p10 = por %p272_p7, %p53_p1  ;;  %s43_s30 = ssub.s32 %s5503_s21, %s7783_s25 }
  0x15   : > { %p5645_p11 = por %p278_p8, %p59_p4  ;;  %p44_p12 = scmp.eq.s32.totalorder %s43_s30, 0 }
  0x16   : > { %s7448_s29 = scalar_select %p5639_p10, 1, 0 }
  0x17   : > { %s7449_s11 = scalar_select %p5645_p11, 1, 0 }
  0x18   : > { %p4981_p13 = scmp.lt.s32.totalorder %s5507_s22, 4  ;;  %s325_s12 = sand.u32 1, %s5487_s17  }
  0x19   : > { %s5652_s13 = scalar_select %p44_p12, %s5487_s17, %s46_s26  }
  0x1a   : > { %s4966_s14 = smul.u32 896, %s325_s12  ;;  %p5657_p0 = pnand %p4981_p13, %p5627_p3 }
  0x1b   : > { %7450 = sst [smem:[#allocation17_spill]] %s5652_s13  ;;  %s4967_s9 = smul.u32 14336, %s5503_s21 }
  0x1c   : > { %s329_s26 = scalar_lea.vmem [#allocation7], %s4966_s14  ;;  %s5669_s27 = scalar_lea.sflag [#allocation8], %s325_s12 }
  0x1d   : > { %s5664_s25 = scalar_lea.hbm %s7270_s0, %s4967_s9  ;;  %s336_s30 = sshll.u32 %s329_s26, 4  ;;  %s5666_s30 = int_to_ptr.vmem [resolvable:$true] %s336_s30 }
  0x1e   : > { %s5379_s21 = scalar_lea.hbm %s5664_s25, 14336  ;;  %p5381_p3 = pneg %p5657_p0 }
  0x1f   : > { %p5380_p2 = scmp.ne.s32.totalorder %s5664_s25, %s5379_s21  ;;  %s5384_s9 = scalar_lea.hbm %s7270_s0, 28672 }
  0x20   : > { %p5385_p6 = scmp.lt.u32.totalorder %s5664_s25, %s7270_s0  ;;  %p5386_p7 = scmp.lt.u32.totalorder %s5384_s9, %s5379_s21 }
  0x21   : > { %p5382_p4 = pnand %p5381_p3, %p5380_p2  ;;  %p5388_p12 = scmp.lt.u32.totalorder %s5379_s21, %s5664_s25 }
  0x22   : > { %p5387_p8 = por %p5386_p7, %p5385_p6 }
  0x23   : > { %p5383_p5 = pneg %p5382_p4 }
  0x24   : > { %p5389_p13 = por %p5388_p12, %p5387_p8 }
  0x26   : > { %p5390_p1 = pnand %p5389_p13, %p5383_p5 }
  0x28   : > { %5393 = shalt.err (!%p5390_p1)
}
  0x29   : > { %s5394_s12 = scalar_lea.vmem %s5666_s30, 14336  ;;  %s5509_s26 = smov [#allocation7]  }
  0x2a   : > { %p5395_p2 = scmp.ne.s32.totalorder %s5666_s30, %s5394_s12  ;;  %s5399_s20 = sshll.u32 %s5509_s26, 4  ;;  %s5400_s20 = int_to_ptr.vmem [resolvable:$false] %s5399_s20 }
  0x2b   : > { %s5401_s13 = scalar_lea.vmem %s5400_s20, 28672  ;;  %p5402_p10 = scmp.lt.s32.totalorder %s5666_s30, %s5400_s20 }
  0x2c   : > { %p5397_p4 = pnand %p5395_p2, %p5381_p3  ;;  %p5403_p6 = scmp.lt.s32.totalorder %s5401_s13, %s5394_s12 }
  0x2e   : > { %p5398_p11 = pneg %p5397_p4  ;;  %p5404_p7 = por %p5403_p6, %p5402_p10 }
  0x30   : > { %p5405_p8 = pnand %p5404_p7, %p5398_p11 }
  0x32   : > { %5408 = shalt.err (!%p5405_p8)
}
  0x33   : > { %s5510_s21 = smov 512   ;;  %s5511_s24 = smov 32  }
  0x34   : > { %4976 = dma.hbm_to_vmem [thread:$0]  (!%p5657_p0), %s5664_s25, 14336, %s5666_s30, %s5669_s27, %s5510_s21, %s5510_s21, %s5511_s24  }
  0x35   : > { %p344_p1 = scmp.lt.s32.totalorder %s5507_s22, 5  ;;  %p7452_p3 = scmp.ge.s32.totalorder %s5507_s22, 1 }
  0x37   : > { %p345_p5 = pnand %p7452_p3, %p344_p1 }
  0x39   : > { %348 = sbr.rel (%p345_p5) target bundleno = 1873 (0x751), region = 60 }
  0x40   : > { %s5701_s9 = sand.u32 1, %s5483_s16  }
  0x41   : > { %s4968_s14 = smul.u32 896, %s5701_s9  ;;  %s351_s12 = scalar_lea.sflag [#allocation8], %s5701_s9 }
  0x43   : > { %s5705_s26 = scalar_lea.vmem [#allocation7], %s4968_s14 }
  0x44   : > { %5470 = dma.done.wait (%p5635_p9), %s351_s12, 14336  }
  0x45   : > { %5472 = vsyncadd (%p5635_p9), %s351_s12, 4294952960  ;;  %s4438_s25 = sshll.u32 %s5701_s9, 7  ;;  %p4439_p10 = scmp.ne.s32.totalorder %s5491_s18, 0 }
  0x46   : > { %s5712_s23 = scalar_lea.vmem [#allocation10], %s4438_s25  ;;  %v4442_v0 = vld [vmem:[%s5705_s26 + $0x88] sm:$0xff] (!%p4439_p10)  ;;  %v4444_v2 = vld [vmem:[%s5705_s26 + $0x98] sm:$0xff] (!%p4439_p10)  ;;  %v4441_v5 = vld [vmem:[%s5705_s26 + $0x80] sm:$0xff] (!%p4439_p10)  ;;  %v5512_v7 = vmov (!%p4439_p10), 0.0   ;;  %v5513_v13 = vmov (!%p4439_p10), 0  }
  0x47   : > { %394 = sbr.rel (%p4439_p10) target bundleno = 805 (0x325), region = 68  ;;  %v4446_v1 = vld [vmem:[%s5705_s26 + $0xa8] sm:$0xff] (!%p4439_p10)  ;;  %v4448_v4 = vld [vmem:[%s5705_s26 + $0xb8] sm:$0xff] (!%p4439_p10)  ;;  %v4445_v6 = vld [vmem:[%s5705_s26 + $0xa0] sm:$0xff] (!%p4439_p10)  ;;  %499 = vmatprep.mubr.f32.mxu0 (!%p4439_p10), %v5512_v7  ;;  %2429 = vst [vmem:[#allocation5] sm:$0xff] (!%p4439_p10), %v5512_v7  ;;  %570 = vmatprep.mubr.f32.mxu1 (!%p4439_p10), %v5512_v7  ;;  %vm431_vm0 = vcmask (!%p4439_p10), 261120  }
  0x48   : > { %v4652_v3 = vpack.c.bf16 (!%p4439_p10), %v4446_v1, %v4442_v0  ;;  %2430 = vst [vmem:[#allocation5 + $0x8] sm:$0xff] (!%p4439_p10), %v5512_v7  ;;  %2431 = vst [vmem:[#allocation5 + $0x10] sm:$0xff] (!%p4439_p10), %v5512_v7  ;;  %v4660_v8 = vpack.c.bf16 (!%p4439_p10), %v4448_v4, %v4444_v2  ;;  %v4654_v9 = vpack.c.bf16 (!%p4439_p10), %v4445_v6, %v4441_v5  ;;  %v4443_v10 = vld [vmem:[%s5705_s26 + $0x90] sm:$0xff] (!%p4439_p10)  ;;  %v4450_v12 = vld [vmem:[%s5705_s26 + $0xc8] sm:$0xff] (!%p4439_p10)  ;;  %5055 = vset.pattern.permute.xlu1 (!%p4439_p10), %v5513_v13  ;;  %vm2248_vm1 = vcmask (!%p4439_p10), 1043456  }
  0x49   : > { %2432 = vst [vmem:[#allocation5 + $0x18] sm:$0xff] (!%p4439_p10), %v5512_v7  ;;  %2433 = vst [vmem:[#allocation5 + $0x20] sm:$0xff] (!%p4439_p10), %v5512_v7  ;;  %v4447_v11 = vld [vmem:[%s5705_s26 + $0xb0] sm:$0xff] (!%p4439_p10)  ;;  %5054 = vset.pattern.permute.xlu0 (!%p4439_p10), %v5513_v13  ;;  %v4454_v15 = vld [vmem:[%s5705_s26 + $0xe8] sm:$0xff] (!%p4439_p10)  ;;  %vm2244_vm2 = vcmask (!%p4439_p10), 31744  }
  0x4a   : > { %2434 = vst [vmem:[#allocation5 + $0x28] sm:$0xff] (!%p4439_p10), %v5512_v7  ;;  %2435 = vst [vmem:[#allocation5 + $0x30] sm:$0xff] (!%p4439_p10), %v5512_v7  ;;  %4653 = vmatprep.subr.bf16.mxu0 (!%p4439_p10), %v4652_v3  ;;  %v4662_v14 = vpack.c.bf16 (!%p4439_p10), %v4447_v11, %v4443_v10  ;;  %v4452_v16 = vld [vmem:[%s5705_s26 + $0xd8] sm:$0xff] (!%p4439_p10)  ;;  %4661 = vmatprep.subr.bf16.mxu1 (!%p4439_p10), %v4660_v8  ;;  %v4656_v18 = vpack.c.bf16 (!%p4439_p10), %v4454_v15, %v4450_v12  ;;  %v4449_v20 = vld [vmem:[%s5705_s26 + $0xc0] sm:$0xff] (!%p4439_p10) }
  0x4b   : > { %2436 = vst [vmem:[#allocation5 + $0x38] sm:$0xff] (!%p4439_p10), %v5512_v7  ;;  %2437 = vst [vmem:[#allocation5 + $0x40] sm:$0xff] (!%p4439_p10), %v5512_v7  ;;  %v4456_v17 = vld [vmem:[%s5705_s26 + $0xf8] sm:$0xff] (!%p4439_p10)  ;;  %4655 = vmatpush1.bf16.msra.mxu0 (!%p4439_p10), %v4654_v9  ;;  %v4453_v21 = vld [vmem:[%s5705_s26 + $0xe0] sm:$0xff] (!%p4439_p10) }
  0x4c   : > { %2438 = vst [vmem:[#allocation5 + $0x48] sm:$0xff] (!%p4439_p10), %v5512_v7  ;;  %2439 = vst [vmem:[#allocation5 + $0x50] sm:$0xff] (!%p4439_p10), %v5512_v7  ;;  %v4664_v19 = vpack.c.bf16 (!%p4439_p10), %v4456_v17, %v4452_v16  ;;  %v4451_v22 = vld [vmem:[%s5705_s26 + $0xd0] sm:$0xff] (!%p4439_p10)  ;;  %4663 = vmatpush1.bf16.msra.mxu1 (!%p4439_p10), %v4662_v14  ;;  %v4658_v23 = vpack.c.bf16 (!%p4439_p10), %v4453_v21, %v4449_v20  ;;  %v396_v25 = vld [vmem:[%s5705_s26 + $0x8] sm:$0xff] (!%p4439_p10)  ;;  %4657 = vmatprep.subr.bf16.mxu0 (!%p4439_p10), %v4656_v18 }
  0x4d   : > { %2440 = vst [vmem:[#allocation5 + $0x58] sm:$0xff] (!%p4439_p10), %v5512_v7  ;;  %2441 = vst [vmem:[#allocation5 + $0x60] sm:$0xff] (!%p4439_p10), %v5512_v7  ;;  %v4455_v24 = vld [vmem:[%s5705_s26 + $0xf0] sm:$0xff] (!%p4439_p10)  ;;  %v413_v27 = vld [vmem:[%s7271_s1] sm:$0xf] (!%p4439_p10) }
  0x4e   : > { %2442 = vst [vmem:[#allocation5 + $0x68] sm:$0xff] %v5512_v7  ;;  %2443 = vst [vmem:[#allocation5 + $0x70] sm:$0xff] %v5512_v7  ;;  %4665 = vmatprep.subr.bf16.mxu1 %v4664_v19  ;;  %v4666_v26 = vpack.c.bf16 %v4455_v24, %v4451_v22  ;;  %v400_v28 = vld [vmem:[%s5705_s26 + $0x28] sm:$0xff]  ;;  %v398_v29 = vld [vmem:[%s5705_s26 + $0x18] sm:$0xff] }
  0x4f   : > { %2444 = vst [vmem:[#allocation5 + $0x78] sm:$0xff] %v5512_v7  ;;  %v402_v30 = vld [vmem:[%s5705_s26 + $0x38] sm:$0xff]  ;;  %v5756_v31 = vpack.c.bf16 %v400_v28, %v396_v25  ;;  %v395_v33 = vld [vmem:[%s5705_s26] sm:$0xff]  ;;  %v397_v35 = vld [vmem:[%s5705_s26 + $0x10] sm:$0xff]  ;;  %4659 = vmatpush1.bf16.msra.mxu0 %v4658_v23 }
  0x50   : > { %v5758_v32 = vpack.c.bf16 %v402_v30, %v398_v29  ;;  %v399_v34 = vld [vmem:[%s5705_s26 + $0x20] sm:$0xff]  ;;  %v401_v37 = vld [vmem:[%s5705_s26 + $0x30] sm:$0xff]  ;;  %v404_v38 = vld [vmem:[%s5705_s26 + $0x48] sm:$0xff]  ;;  %4667 = vmatpush1.bf16.msra.mxu1 %v4666_v26 }
  0x51   : > { %v5763_v36 = vpack.c.bf16 %v399_v34, %v395_v33  ;;  %v408_v39 = vld [vmem:[%s5705_s26 + $0x68] sm:$0xff]  ;;  %4669 = vmatprep.subr.bf16.mxu0 %v5756_v31  ;;  %v5769_v40 = vpack.c.bf16 %v401_v37, %v397_v35  ;;  %v406_v42 = vld [vmem:[%s5705_s26 + $0x58] sm:$0xff]  ;;  %v403_v44 = vld [vmem:[%s5705_s26 + $0x40] sm:$0xff] }
  0x52   : > { %v5771_v41 = vpack.c.bf16 %v408_v39, %v404_v38  ;;  %v410_v43 = vld [vmem:[%s5705_s26 + $0x78] sm:$0xff]  ;;  %4677 = vmatprep.subr.bf16.mxu1 %v5758_v32  ;;  %v407_v46 = vld [vmem:[%s5705_s26 + $0x60] sm:$0xff]  ;;  %v405_v47 = vld [vmem:[%s5705_s26 + $0x50] sm:$0xff]  ;;  %4457 = vmatmul.mubr.msk.f32.vlgmr.msra.gmra.mrb[0].mxu0 %vm431_vm0, %v413_v27 }
  0x53   : > { %v5777_v45 = vpack.c.bf16 %v410_v43, %v406_v42  ;;  %v409_v48 = vld [vmem:[%s5705_s26 + $0x70] sm:$0xff]  ;;  %v4463_v49 = vld [vmem:[%s5705_s26 + $0x108] sm:$0xff]  ;;  %4458 = vmatmul.mubr.msk.f32.vlgmr.msra.gmra.mrb[0].mxu1 %vm431_vm0, %v413_v27  ;;  %4671 = vmatpush1.bf16.msra.mxu0 %v5763_v36  ;;  %v5787_v51 = vpack.c.bf16 %v407_v46, %v403_v44  ;;  %v4465_v52 = vld [vmem:[%s5705_s26 + $0x118] sm:$0xff] }
  0x54   : > { %v4467_v50 = vld [vmem:[%s5705_s26 + $0x128] sm:$0xff]  ;;  %v4469_v53 = vld [vmem:[%s5705_s26 + $0x138] sm:$0xff]  ;;  %4679 = vmatpush1.bf16.msra.mxu1 %v5769_v40  ;;  %4673 = vmatprep.subr.bf16.mxu0 %v5771_v41  ;;  %v5793_v54 = vpack.c.bf16 %v409_v48, %v405_v47  ;;  %v4462_v56 = vld [vmem:[%s5705_s26 + $0x100] sm:$0xff] }
  0x55   : > { %v4684_v55 = vpack.c.bf16 %v4467_v50, %v4463_v49  ;;  %v4466_v57 = vld [vmem:[%s5705_s26 + $0x120] sm:$0xff]  ;;  %v4464_v58 = vld [vmem:[%s5705_s26 + $0x110] sm:$0xff]  ;;  %4681 = vmatprep.subr.bf16.mxu1 %v5777_v45  ;;  %644 = vmatprep.mubr.f32.mxu0 %v5512_v7  ;;  %v4692_v59 = vpack.c.bf16 %v4469_v53, %v4465_v52  ;;  %v4471_v61 = vld [vmem:[%s5705_s26 + $0x148] sm:$0xff] }
  0x56   : > { %v4468_v60 = vld [vmem:[%s5705_s26 + $0x130] sm:$0xff]  ;;  %v4475_v62 = vld [vmem:[%s5705_s26 + $0x168] sm:$0xff]  ;;  %715 = vmatprep.mubr.f32.mxu1 %v5512_v7  ;;  %v4473_v63 = vld [vmem:[%s5705_s26 + $0x158] sm:$0xff]  ;;  %v4686_v2 = vpack.c.bf16 %v4466_v57, %v4462_v56 }
  0x57   : > { %v4477_v0 = vld [vmem:[%s5705_s26 + $0x178] sm:$0xff]  ;;  %4675 = vmatpush1.bf16.msra.mxu0 %v5787_v51  ;;  %v4440_v1 = vld [vmem:[%s7271_s1 + $0x4] sm:$0xf]  ;;  %v4694_v3 = vpack.c.bf16 %v4468_v60, %v4464_v58  ;;  %v4688_v4 = vpack.c.bf16 %v4475_v62, %v4471_v61  ;;  %v4472_v8 = vld [vmem:[%s5705_s26 + $0x150] sm:$0xff] }
  0x58   : > { %4683 = vmatpush1.bf16.msra.mxu1 %v5793_v54  ;;  %4685 = vmatprep.subr.bf16.mxu0 %v4684_v55  ;;  %v4470_v5 = vld [vmem:[%s5705_s26 + $0x140] sm:$0xff]  ;;  %v4696_v9 = vpack.c.bf16 %v4477_v0, %v4473_v63  ;;  %v4476_v10 = vld [vmem:[%s5705_s26 + $0x170] sm:$0xff]  ;;  %v4482_v11 = vld [vmem:[%s5705_s26 + $0x188] sm:$0xff] }
  0x59   : > { %v4474_v6 = vld [vmem:[%s5705_s26 + $0x160] sm:$0xff]  ;;  %4693 = vmatprep.subr.bf16.mxu1 %v4692_v59  ;;  %v4486_v12 = vld [vmem:[%s5705_s26 + $0x1a8] sm:$0xff]  ;;  %v4484_v13 = vld [vmem:[%s5705_s26 + $0x198] sm:$0xff]  ;;  %v4698_v16 = vpack.c.bf16 %v4476_v10, %v4472_v8 }
  0x5a   : > { %4459 = vmatmul.mubr.msk.f32.vlgmr.msra.gmra.mrb[0].mxu0 %vm431_vm0, %v4440_v1  ;;  %v4488_v14 = vld [vmem:[%s5705_s26 + $0x1b8] sm:$0xff]  ;;  %v4690_v15 = vpack.c.bf16 %v4474_v6, %v4470_v5  ;;  %v4700_v17 = vpack.c.bf16 %v4486_v12, %v4482_v11  ;;  %v4481_v18 = vld [vmem:[%s5705_s26 + $0x180] sm:$0xff]  ;;  %v4483_v20 = vld [vmem:[%s5705_s26 + $0x190] sm:$0xff] }
  0x5b   : > { %4460 = vmatmul.mubr.msk.f32.vlgmr.msra.gmra.mrb[0].mxu1 %vm431_vm0, %v4440_v1  ;;  %4687 = vmatpush1.bf16.msra.mxu0 %v4686_v2  ;;  %v4485_v19 = vld [vmem:[%s5705_s26 + $0x1a0] sm:$0xff]  ;;  %v4708_v21 = vpack.c.bf16 %v4488_v14, %v4484_v13  ;;  %v4487_v22 = vld [vmem:[%s5705_s26 + $0x1b0] sm:$0xff]  ;;  %v4490_v23 = vld [vmem:[%s5705_s26 + $0x1c8] sm:$0xff] }
  0x5c   : > { %4695 = vmatpush1.bf16.msra.mxu1 %v4694_v3  ;;  %4689 = vmatprep.subr.bf16.mxu0 %v4688_v4  ;;  %v4494_v24 = vld [vmem:[%s5705_s26 + $0x1e8] sm:$0xff]  ;;  %v4492_v25 = vld [vmem:[%s5705_s26 + $0x1d8] sm:$0xff]  ;;  %v4702_v28 = vpack.c.bf16 %v4485_v19, %v4481_v18  ;;  %v4710_v29 = vpack.c.bf16 %v4487_v22, %v4483_v20  ;;  %v4489_v33 = vld [vmem:[%s5705_s26 + $0x1c0] sm:$0xff] }
  0x5d   : > { %4697 = vmatprep.subr.bf16.mxu1 %v4696_v9  ;;  %808 = vmatprep.mubr.f32.mxu0 %v5512_v7  ;;  %v4496_v26 = vld [vmem:[%s5705_s26 + $0x1f8] sm:$0xff]  ;;  %v4461_v27 = vld [vmem:[%s7271_s1 + $0x8] sm:$0xf]  ;;  %v4704_v30 = vpack.c.bf16 %v4494_v24, %v4490_v23  ;;  %v4493_v34 = vld [vmem:[%s5705_s26 + $0x1e0] sm:$0xff] }
  0x5e   : > { %879 = vmatprep.mubr.f32.mxu1 %v5512_v7  ;;  %v4712_v35 = vpack.c.bf16 %v4496_v26, %v4492_v25  ;;  %v4491_v37 = vld [vmem:[%s5705_s26 + $0x1d0] sm:$0xff]  ;;  %v4706_v39 = vpack.c.bf16 %v4493_v34, %v4489_v33  ;;  %v902_v43 = vld [vmem:[%s7273_s3] sm:$0xf]  ;;  %v4503_v44 = vld [vmem:[%s5705_s26 + $0x208] sm:$0xff] }
  0x5f   : > { %4691 = vmatpush1.bf16.msra.mxu0 %v4690_v15  ;;  %v4495_v38 = vld [vmem:[%s5705_s26 + $0x1f0] sm:$0xff]  ;;  %v4507_v46 = vld [vmem:[%s5705_s26 + $0x228] sm:$0xff]  ;;  %v4505_v47 = vld [vmem:[%s5705_s26 + $0x218] sm:$0xff] }
  0x60   : > { %4699 = vmatpush1.bf16.msra.mxu1 %v4698_v16  ;;  %4701 = vmatprep.subr.bf16.mxu0 %v4700_v17  ;;  %v4714_v42 = vpack.c.bf16 %v4495_v38, %v4491_v37  ;;  %v4509_v48 = vld [vmem:[%s5705_s26 + $0x238] sm:$0xff]  ;;  %v4732_v49 = vpack.c.bf16 %v4507_v46, %v4503_v44  ;;  %v4502_v50 = vld [vmem:[%s5705_s26 + $0x200] sm:$0xff]  ;;  %v4504_v53 = vld [vmem:[%s5705_s26 + $0x210] sm:$0xff] }
  0x61   : > { %4709 = vmatprep.subr.bf16.mxu1 %v4708_v21  ;;  %v4506_v52 = vld [vmem:[%s5705_s26 + $0x220] sm:$0xff]  ;;  %v4740_v55 = vpack.c.bf16 %v4509_v48, %v4505_v47  ;;  %v4508_v56 = vld [vmem:[%s5705_s26 + $0x230] sm:$0xff]  ;;  %v4511_v57 = vld [vmem:[%s5705_s26 + $0x248] sm:$0xff] }
  0x62   : > { %4478 = vmatmul.mubr.msk.f32.vlgmr.msra.gmra.mrb[0].mxu0 %vm431_vm0, %v4461_v27  ;;  %v4515_v58 = vld [vmem:[%s5705_s26 + $0x268] sm:$0xff]  ;;  %v4513_v59 = vld [vmem:[%s5705_s26 + $0x258] sm:$0xff]  ;;  %v4480_v61 = vld [vmem:[%s7273_s3 + $0x4] sm:$0xf]  ;;  %v4734_v62 = vpack.c.bf16 %v4506_v52, %v4502_v50  ;;  %v4742_v1 = vpack.c.bf16 %v4508_v56, %v4504_v53 }
  0x63   : > { %4479 = vmatmul.mubr.msk.f32.vlgmr.msra.gmra.mrb[0].mxu1 %vm431_vm0, %v4461_v27  ;;  %4703 = vmatpush1.bf16.msra.mxu0 %v4702_v28  ;;  %v4517_v60 = vld [vmem:[%s5705_s26 + $0x278] sm:$0xff]  ;;  %v4510_v63 = vld [vmem:[%s5705_s26 + $0x240] sm:$0xff]  ;;  %v4736_v2 = vpack.c.bf16 %v4515_v58, %v4511_v57  ;;  %v4512_v3 = vld [vmem:[%s5705_s26 + $0x250] sm:$0xff] }
  0x64   : > { %4711 = vmatpush1.bf16.msra.mxu1 %v4710_v29  ;;  %4705 = vmatprep.subr.bf16.mxu0 %v4704_v30  ;;  %v4514_v0 = vld [vmem:[%s5705_s26 + $0x260] sm:$0xff]  ;;  %v4516_v4 = vld [vmem:[%s5705_s26 + $0x270] sm:$0xff]  ;;  %v4744_v6 = vpack.c.bf16 %v4517_v60, %v4513_v59  ;;  %v4522_v8 = vld [vmem:[%s5705_s26 + $0x288] sm:$0xff] }
  0x65   : > { %4713 = vmatprep.subr.bf16.mxu1 %v4712_v35  ;;  %987 = vmatprep.mubr.f32.mxu0 %v5512_v7  ;;  %v890_v5 = vld [vmem:[%s7272_s2] sm:$0xf]  ;;  %v4526_v9 = vld [vmem:[%s5705_s26 + $0x2a8] sm:$0xff]  ;;  %v4524_v11 = vld [vmem:[%s5705_s26 + $0x298] sm:$0xff]  ;;  %v4738_v13 = vpack.c.bf16 %v4514_v0, %v4510_v63  ;;  %v4746_v15 = vpack.c.bf16 %v4516_v4, %v4512_v3 }
  0x66   : > { %1058 = vmatprep.mubr.f32.mxu1 %v5512_v7  ;;  %893 = vperm.xlu1 %5055, %v890_v5   ;;  %v1866_v10 = vld [vmem:[%s7276_s6] sm:$0xf]  ;;  %v4528_v12 = vld [vmem:[%s5705_s26 + $0x2b8] sm:$0xff]  ;;  %v4748_v16 = vpack.c.bf16 %v4526_v9, %v4522_v8  ;;  %v4523_v19 = vld [vmem:[%s5705_s26 + $0x290] sm:$0xff] }
  0x67   : > { %4707 = vmatpush1.bf16.msra.mxu0 %v4706_v39  ;;  %1869 = vperm.xlu0 %5054, %v1866_v10   ;;  %v1378_v14 = vld [vmem:[%s7274_s4] sm:$0xf]  ;;  %v4756_v20 = vpack.c.bf16 %v4528_v12, %v4524_v11  ;;  %v4527_v21 = vld [vmem:[%s5705_s26 + $0x2b0] sm:$0xff]  ;;  %v4530_v22 = vld [vmem:[%s5705_s26 + $0x2c8] sm:$0xff] }
  0x68   : > { %4715 = vmatpush1.bf16.msra.mxu1 %v4714_v42  ;;  %4717 = vmatprep.subr.bf16.mxu0 %v5756_v31  ;;  %v4521_v17 = vld [vmem:[%s5705_s26 + $0x280] sm:$0xff]  ;;  %v4534_v23 = vld [vmem:[%s5705_s26 + $0x2e8] sm:$0xff]  ;;  %v4532_v24 = vld [vmem:[%s5705_s26 + $0x2d8] sm:$0xff]  ;;  %v4758_v29 = vpack.c.bf16 %v4527_v21, %v4523_v19 }
  0x69   : > { %4725 = vmatprep.subr.bf16.mxu1 %v5758_v32  ;;  %v4525_v18 = vld [vmem:[%s5705_s26 + $0x2a0] sm:$0xff]  ;;  %v4536_v25 = vld [vmem:[%s5705_s26 + $0x2f8] sm:$0xff]  ;;  %v4501_v26 = vld [vmem:[%s7273_s3 + $0x8] sm:$0xf]  ;;  %v4752_v30 = vpack.c.bf16 %v4534_v23, %v4530_v22 }
  0x6a   : > { %4497 = vmatmul.mubr.msk.f32.vlgmr.msra.gmra.mrb[2].mxu0 %vm431_vm0, %v902_v43  ;;  %v4750_v27 = vpack.c.bf16 %v4525_v18, %v4521_v17  ;;  %v1881_v28 = vld [vmem:[%s7278_s8 + $0x8] sm:$0xff]  ;;  %v4529_v33 = vld [vmem:[%s5705_s26 + $0x2c0] sm:$0xff]  ;;  %v4760_v35 = vpack.c.bf16 %v4536_v25, %v4532_v24  ;;  %v4531_v37 = vld [vmem:[%s5705_s26 + $0x2d0] sm:$0xff] }
  0x6b   : > { %4498 = vmatmul.mubr.msk.f32.vlgmr.msra.gmra.mrb[2].mxu1 %vm431_vm0, %v902_v43  ;;  %4719 = vmatpush1.bf16.msra.mxu0 %v5763_v36  ;;  %v4533_v34 = vld [vmem:[%s5705_s26 + $0x2e0] sm:$0xff]  ;;  %v4535_v38 = vld [vmem:[%s5705_s26 + $0x2f0] sm:$0xff]  ;;  %v1883_v42 = vld [vmem:[%s7278_s8 + $0x18] sm:$0xff] }
  0x6c   : > { %4727 = vmatpush1.bf16.msra.mxu1 %v5769_v40  ;;  %4721 = vmatprep.subr.bf16.mxu0 %v5771_v41  ;;  %v4754_v39 = vpack.c.bf16 %v4533_v34, %v4529_v33  ;;  %v4762_v43 = vpack.c.bf16 %v4535_v38, %v4531_v37  ;;  %v1390_v44 = vld [vmem:[%s7275_s5] sm:$0xf]  ;;  %v4543_v46 = vld [vmem:[%s5705_s26 + $0x308] sm:$0xff]  ;;  %v4545_v48 = vld [vmem:[%s5705_s26 + $0x318] sm:$0xff] }
  0x6d   : > { %4729 = vmatprep.subr.bf16.mxu1 %v5777_v45  ;;  %1132 = vmatprep.mubr.f32.mxu0 %v5512_v7  ;;  %v4547_v47 = vld [vmem:[%s5705_s26 + $0x328] sm:$0xff]  ;;  %v4542_v52 = vld [vmem:[%s5705_s26 + $0x300] sm:$0xff]  ;;  %v4548_v57 = vld [vmem:[%s5705_s26 + $0x330] sm:$0xff] }
  0x6e   : > { %1203 = vmatprep.mubr.f32.mxu1 %v5512_v7  ;;  %1381 = vperm.xlu0 %5054, %v1378_v14   ;;  %v4780_v50 = vpack.c.bf16 %v4547_v47, %v4543_v46  ;;  %v4546_v53 = vld [vmem:[%s5705_s26 + $0x320] sm:$0xff]  ;;  %v4551_v58 = vld [vmem:[%s5705_s26 + $0x348] sm:$0xff]  ;;  %v4553_v60 = vld [vmem:[%s5705_s26 + $0x358] sm:$0xff] }
  0x6f   : > { %4723 = vmatpush1.bf16.msra.mxu0 %v5787_v51  ;;  %v4555_v59 = vld [vmem:[%s5705_s26 + $0x368] sm:$0xff]  ;;  %v4782_v63 = vpack.c.bf16 %v4546_v53, %v4542_v52  ;;  %v4554_v3 = vld [vmem:[%s5705_s26 + $0x360] sm:$0xff]  ;;  %v4552_v5 = vld [vmem:[%s5705_s26 + $0x350] sm:$0xff] }
  0x70   : > { %4731 = vmatpush1.bf16.msra.mxu1 %v5793_v54  ;;  %4733 = vmatprep.subr.bf16.mxu0 %v4732_v49  ;;  %v4549_v49 = vld [vmem:[%s5705_s26 + $0x338] sm:$0xff]  ;;  %v4541_v10 = vld [vmem:[%s7275_s5 + $0x8] sm:$0xf] }
  0x71   : > { %4741 = vmatprep.subr.bf16.mxu1 %v4740_v55  ;;  %v4544_v55 = vld [vmem:[%s5705_s26 + $0x310] sm:$0xff]  ;;  %v4788_v56 = vpack.c.bf16 %v4549_v49, %v4545_v48 }
  0x72   : > { %4499 = vmatmul.mubr.msk.f32.vlgmr.msra.gmra.mrb[2].mxu0 %vm431_vm0, %v4480_v61  ;;  %1891 = vperm.xlu0 %5054, %v1881_v28   ;;  %v4790_v0 = vpack.c.bf16 %v4548_v57, %v4544_v55 }
  0x73   : > { %4500 = vmatmul.mubr.msk.f32.vlgmr.msra.gmra.mrb[2].mxu1 %vm431_vm0, %v4480_v61  ;;  %4735 = vmatpush1.bf16.msra.mxu0 %v4734_v62  ;;  %v4557_v61 = vld [vmem:[%s5705_s26 + $0x378] sm:$0xff]  ;;  %v4520_v62 = vld [vmem:[%s7275_s5 + $0x4] sm:$0xf] }
  0x74   : > { %4743 = vmatpush1.bf16.msra.mxu1 %v4742_v1  ;;  %4737 = vmatprep.subr.bf16.mxu0 %v4736_v2  ;;  %v4784_v1 = vpack.c.bf16 %v4555_v59, %v4551_v58  ;;  %v4550_v2 = vld [vmem:[%s5705_s26 + $0x340] sm:$0xff]  ;;  %v4792_v4 = vpack.c.bf16 %v4557_v61, %v4553_v60 }
  0x75   : > { %4745 = vmatprep.subr.bf16.mxu1 %v4744_v6  ;;  %1296 = vmatprep.mubr.f32.mxu0 %v5512_v7  ;;  %v4556_v6 = vld [vmem:[%s5705_s26 + $0x370] sm:$0xff]  ;;  %v4786_v8 = vpack.c.bf16 %v4554_v3, %v4550_v2 }
  0x76   : > { %1367 = vmatprep.mubr.f32.mxu1 %v5512_v7  ;;  %1901 = vperm.xlu0 %5054, %v1883_v42   ;;  %v4794_v9 = vpack.c.bf16 %v4556_v6, %v4552_v5 }
  0x77   : > { %4739 = vmatpush1.bf16.msra.mxu0 %v4738_v13 }
  0x78   : > { %4747 = vmatpush1.bf16.msra.mxu1 %v4746_v15  ;;  %4749 = vmatprep.subr.bf16.mxu0 %v4748_v16 }
  0x79   : > { %4757 = vmatprep.subr.bf16.mxu1 %v4756_v20 }
  0x7a   : > { %4518 = vmatmul.mubr.msk.f32.vlgmr.msra.gmra.mrb[2].mxu0 %vm431_vm0, %v4501_v26 }
  0x7b   : > { %4519 = vmatmul.mubr.msk.f32.vlgmr.msra.gmra.mrb[2].mxu1 %vm431_vm0, %v4501_v26  ;;  %4751 = vmatpush1.bf16.msra.mxu0 %v4750_v27 }
  0x7c   : > { %4759 = vmatpush1.bf16.msra.mxu1 %v4758_v29  ;;  %4753 = vmatprep.subr.bf16.mxu0 %v4752_v30 }
  0x7d   : > { %4761 = vmatprep.subr.bf16.mxu1 %v4760_v35  ;;  %1475 = vmatprep.mubr.f32.mxu0 %v5512_v7 }
  0x7e   : > { %1546 = vmatprep.mubr.f32.mxu1 %v5512_v7 }
  0x7f   : > { %4755 = vmatpush1.bf16.msra.mxu0 %v4754_v39 }
  0x80   : > { %4763 = vmatpush1.bf16.msra.mxu1 %v4762_v43  ;;  %4765 = vmatprep.subr.bf16.mxu0 %v5756_v31 }
  0x81   : > { %4773 = vmatprep.subr.bf16.mxu1 %v5758_v32 }
  0x82   : > { %4537 = vmatmul.mubr.msk.f32.vlgmr.msra.gmra.mrb[4].mxu0 %vm431_vm0, %v1390_v44 }
  0x83   : > { %4538 = vmatmul.mubr.msk.f32.vlgmr.msra.gmra.mrb[4].mxu1 %vm431_vm0, %v1390_v44  ;;  %4767 = vmatpush1.bf16.msra.mxu0 %v5763_v36 }
  0x84   : > { %4775 = vmatpush1.bf16.msra.mxu1 %v5769_v40  ;;  %4769 = vmatprep.subr.bf16.mxu0 %v5771_v41 }
  0x85   : > { %4777 = vmatprep.subr.bf16.mxu1 %v5777_v45  ;;  %1620 = vmatprep.mubr.f32.mxu0 %v5512_v7 }
  0x86   : > { %1691 = vmatprep.mubr.f32.mxu1 %v5512_v7 }
  0x87   : > { %4771 = vmatpush1.bf16.msra.mxu0 %v5787_v51 }
  0x88   : > { %4779 = vmatpush1.bf16.msra.mxu1 %v5793_v54  ;;  %4781 = vmatprep.subr.bf16.mxu0 %v4780_v50 }
  0x89   : > { %4789 = vmatprep.subr.bf16.mxu1 %v4788_v56 }
  0x8a   : > { %4539 = vmatmul.mubr.msk.f32.vlgmr.msra.gmra.mrb[4].mxu0 %vm431_vm0, %v4520_v62 }
  0x8b   : > { %4540 = vmatmul.mubr.msk.f32.vlgmr.msra.gmra.mrb[4].mxu1 %vm431_vm0, %v4520_v62  ;;  %4783 = vmatpush1.bf16.msra.mxu0 %v4782_v63 }
  0x8c   : > { %4791 = vmatpush1.bf16.msra.mxu1 %v4790_v0  ;;  %4785 = vmatprep.subr.bf16.mxu0 %v4784_v1 }
  0x8d   : > { %4793 = vmatprep.subr.bf16.mxu1 %v4792_v4  ;;  %1784 = vmatprep.mubr.f32.mxu0 %v5512_v7 }
  0x8e   : > { %1855 = vmatprep.mubr.f32.mxu1 %v5512_v7 }
  0x8f   : > { %4787 = vmatpush1.bf16.msra.mxu0 %v4786_v8 }
  0x90   : > { %4795 = vmatpush1.bf16.msra.mxu1 %v4794_v9  ;;  %4797 = vmatprep.subr.bf16.mxu0 %v5756_v31  ;;  %v1876_v31 = vld [vmem:[%s7277_s7] sm:$0xff] }
  0x91   : > { %4805 = vmatprep.subr.bf16.mxu1 %v5758_v32  ;;  %v1877_v32 = vld [vmem:[%s7277_s7 + $0x8] sm:$0xff] }
  0x92   : > { %4558 = vmatmul.mubr.msk.f32.vlgmr.msra.gmra.mrb[4].mxu0 %vm431_vm0, %v4541_v10 }
  0x93   : > { %4559 = vmatmul.mubr.msk.f32.vlgmr.msra.gmra.mrb[4].mxu1 %vm431_vm0, %v4541_v10  ;;  %4799 = vmatpush1.bf16.msra.mxu0 %v5763_v36  ;;  %v1878_v36 = vld [vmem:[%s7277_s7 + $0x10] sm:$0xff] }
  0x94   : > { %4807 = vmatpush1.bf16.msra.mxu1 %v5769_v40  ;;  %4801 = vmatprep.subr.bf16.mxu0 %v5771_v41  ;;  %v1879_v40 = vld [vmem:[%s7277_s7 + $0x18] sm:$0xff]  ;;  %v1880_v41 = vld [vmem:[%s7278_s8] sm:$0xff] }
  0x95   : > { %4809 = vmatprep.subr.bf16.mxu1 %v5777_v45  ;;  %1980 = vmatprep.mubr.f32.mxu0 %v5512_v7  ;;  %v1882_v45 = vld [vmem:[%s7278_s8 + $0x10] sm:$0xff] }
  0x96   : > { %2069 = vmatprep.mubr.f32.mxu1 %v5512_v7  ;;  %1886 = vperm.xlu1 %5055, %v1880_v41  }
  0x97   : > { %4803 = vmatpush1.bf16.msra.mxu0 %v5787_v51 }
  0x98   : > { %4811 = vmatpush1.bf16.msra.mxu1 %v5793_v54 }
  0x9a   : > { %4560 = vmatmul.mubr.msk.f32.vlgmr.msra.gmra.mrb[6].mxu0 %vm431_vm0, %v1876_v31  ;;  %1896 = vperm.xlu1 %5055, %v1882_v45  }
  0x9b   : > { %4564 = vmatmul.mubr.msk.f32.vlgmr.msra.gmra.mrb[6].mxu1 %vm431_vm0, %v1876_v31  ;;  %1986 = vmatprep.mubr.f32.mxu0 %v5512_v7 }
  0x9c   : > { %2075 = vmatprep.mubr.f32.mxu1 %v5512_v7 }
  0x9e   : > { %4561 = vmatmul.mubr.msk.f32.gmra.mrb[8].mxu0 %vm431_vm0, %v1877_v32 }
  0x9f   : > { %4565 = vmatmul.mubr.msk.f32.gmra.mrb[8].mxu1 %vm431_vm0, %v1877_v32  ;;  %1992 = vmatprep.mubr.f32.mxu0 %v5512_v7 }
  0xa0   : > { %2081 = vmatprep.mubr.f32.mxu1 %v5512_v7 }
  0xa2   : > { %4562 = vmatmul.mubr.msk.f32.gmra.mrb[10].mxu0 %vm431_vm0, %v1878_v36 }
  0xa3   : > { %4566 = vmatmul.mubr.msk.f32.gmra.mrb[10].mxu1 %vm431_vm0, %v1878_v36  ;;  %1998 = vmatprep.mubr.f32.mxu0 %v5512_v7 }
  0xa4   : > { %2087 = vmatprep.mubr.f32.mxu1 %v5512_v7 }
  0xa6   : > { %4563 = vmatmul.mubr.msk.f32.gmra.mrb[12].mxu0 %vm431_vm0, %v1879_v40 }
  0xa7   : > { %4567 = vmatmul.mubr.msk.f32.gmra.mrb[12].mxu1 %vm431_vm0, %v1879_v40 }
  0xa8   : > { %2325 = vmatprep.mubr.f32.mxu1 %v5512_v7 }
  0xe5   : > { %v894_v51 = vpop.permute.xlu1 %893 }
  0xe6   : > { %v1870_v20 = vpop.permute.xlu0 %1869 }
  0xed   : > { %v1382_v21 = vpop.permute.xlu0 %1381 }
  0xf1   : > { %v1892_v47 = vpop.permute.xlu0 %1891 }
  0xf5   : > { %v1902_v63 = vpop.permute.xlu0 %1901 }
 0x115   : > { %v1887_v9 = vpop.permute.xlu1 %1886 }
 0x119   : > { %v1897_v40 = vpop.permute.xlu1 %1896 }
 0x135   : > { %v810_v54 = vpop.f32.mrb[0].mxu0 }
 0x136   : > { %v896_v11 = vadd.f32 %v894_v51, %v810_v54  ;;  %v881_v12 = vpop.f32.mrb[0].mxu1  ;;  %v812_v13 = vpop.f32.mrb[1].mxu0 }
 0x137   : > { %v898_v14 = vadd.f32 %v894_v51, %v881_v12  ;;  %v897_v15 = vadd.f32 %v894_v51, %v812_v13  ;;  %v883_v16 = vpop.f32.mrb[1].mxu1 }
 0x138   : > { %v899_v17 = vadd.f32 %v894_v51, %v883_v16 }
 0x139   : > { %v2238_v18 = vcombine.low %v896_v11, %v897_v15 }
 0x13a   : > { %v2239_v19 = vcombine.low %v898_v14, %v899_v17 }
 0x13b   : > { %2242 = vst [vmem:[#allocation2] sm:$0xff] %v2238_v18 }
 0x13c   : > { %2243 = vst [vmem:[#allocation2 + $0x8] sm:$0xff] %v2239_v19 }
 0x14d   : > { %v1298_v22 = vpop.f32.mrb[2].mxu0 }
 0x14e   : > { %v1369_v23 = vpop.f32.mrb[2].mxu1  ;;  %v1300_v24 = vpop.f32.mrb[3].mxu0  ;;  %v1384_v27 = vadd.f32 %v1382_v21, %v1298_v22 }
 0x14f   : > { %v1385_v25 = vadd.f32 %v1382_v21, %v1300_v24  ;;  %v1371_v26 = vpop.f32.mrb[3].mxu1  ;;  %v1386_v53 = vadd.f32 %v1382_v21, %v1369_v23 }
 0x150   : > { %v1387_v28 = vadd.f32 %v1382_v21, %v1371_v26 }
 0x151   : > { %2158 = vmatprep.mubr.f32.mxu0 %v1385_v25  ;;  %4568 = vmatprep.subr.msk.mxu1 %vm2248_vm1, %v1385_v25 }
 0x152   : > { %4569 = vmatpush1.msk.msra.mxu1 %vm2248_vm1, %v1384_v27 }
 0x153   : > { %4571 = vmatprep.subr.msk.mxu1 %vm2248_vm1, %v1387_v28 }
 0x165   : > { %v1786_v29 = vpop.f32.mrb[4].mxu0 }
 0x166   : > { %v1857_v30 = vpop.f32.mrb[4].mxu1  ;;  %v1788_v33 = vpop.f32.mrb[5].mxu0  ;;  %v1872_v37 = vadd.f32 %v1870_v20, %v1786_v29 }
 0x167   : > { %v1873_v34 = vadd.f32 %v1870_v20, %v1788_v33  ;;  %v1859_v35 = vpop.f32.mrb[5].mxu1  ;;  %v1874_v39 = vadd.f32 %v1870_v20, %v1857_v30 }
 0x168   : > { %v1875_v38 = vadd.f32 %v1870_v20, %v1859_v35 }
 0x169   : > { %2094 = vmatprep.subr.mxu0 %v1873_v34 }
 0x16a   : > { %2095 = vmatpush1.xpose.msra.mxu0 %v1872_v37 }
 0x16b   : > { %2164 = vmatprep.subr.mxu0 %v1875_v38 }
 0x16d   : > { %2159 = vmatmul.mubr.f32.vlgmr.msra.gmra.mrb[14].mxu0 %v1384_v27  ;;  %v1982_v42 = vpop.f32.mrb[6].mxu0 }
 0x16e   : > { %2165 = vmatpush1.xpose.msra.mxu0 %v1874_v39  ;;  %2228 = vmatprep.mubr.f32.mxu0 %v1387_v28  ;;  %v2071_v43 = vpop.f32.mrb[6].mxu1  ;;  %v1984_v44 = vpop.f32.mrb[7].mxu0  ;;  %v1983_v10 = vadd.f32 %v1982_v42, %v1887_v9 }
 0x16f   : > { %v2073_v46 = vpop.f32.mrb[7].mxu1  ;;  %v1985_v31 = vadd.f32 %v1984_v44, %v1887_v9  ;;  %v2072_v32 = vadd.f32 %v2071_v43, %v1887_v9 }
 0x170   : > { %v2074_v36 = vadd.f32 %v2073_v46, %v1887_v9  ;;  %2413 = vst [vmem:[#allocation4] sm:$0xff] %v1983_v10 }
 0x171   : > { %v1988_v48 = vpop.f32.mrb[8].mxu0  ;;  %2414 = vst [vmem:[#allocation4 + $0x8] sm:$0xff] %v1985_v31  ;;  %2415 = vst [vmem:[#allocation4 + $0x10] sm:$0xff] %v2072_v32 }
 0x172   : > { %v1989_v49 = vadd.f32 %v1988_v48, %v1892_v47  ;;  %v2077_v50 = vpop.f32.mrb[8].mxu1  ;;  %v1990_v52 = vpop.f32.mrb[9].mxu0  ;;  %2416 = vst [vmem:[#allocation4 + $0x18] sm:$0xff] %v2074_v36 }
 0x173   : > { %v2078_v55 = vadd.f32 %v2077_v50, %v1892_v47  ;;  %v1991_v56 = vadd.f32 %v1990_v52, %v1892_v47  ;;  %v2079_v57 = vpop.f32.mrb[9].mxu1 }
 0x174   : > { %2417 = vst [vmem:[#allocation4 + $0x20] sm:$0xff] %v1989_v49  ;;  %v2080_v58 = vadd.f32 %v2079_v57, %v1892_v47 }
 0x175   : > { %2419 = vst [vmem:[#allocation4 + $0x30] sm:$0xff] %v2078_v55  ;;  %2418 = vst [vmem:[#allocation4 + $0x28] sm:$0xff] %v1991_v56  ;;  %2229 = vmatmul.mubr.f32.vlgmr.msra.gmra.mrb[14].mxu0 %v1386_v53  ;;  %v1994_v59 = vpop.f32.mrb[10].mxu0 }
 0x176   : > { %2420 = vst [vmem:[#allocation4 + $0x38] sm:$0xff] %v2080_v58  ;;  %v2083_v60 = vpop.f32.mrb[10].mxu1  ;;  %v1996_v61 = vpop.f32.mrb[11].mxu0  ;;  %v1995_v41 = vadd.f32 %v1994_v59, %v1897_v40 }
 0x177   : > { %v2085_v62 = vpop.f32.mrb[11].mxu1  ;;  %v1997_v45 = vadd.f32 %v1996_v61, %v1897_v40  ;;  %v2084_v51 = vadd.f32 %v2083_v60, %v1897_v40 }
 0x178   : > { %v2086_v54 = vadd.f32 %v2085_v62, %v1897_v40  ;;  %2421 = vst [vmem:[#allocation4 + $0x40] sm:$0xff] %v1995_v41 }
 0x179   : > { %v2000_v0 = vpop.f32.mrb[12].mxu0  ;;  %2422 = vst [vmem:[#allocation4 + $0x48] sm:$0xff] %v1997_v45  ;;  %2423 = vst [vmem:[#allocation4 + $0x50] sm:$0xff] %v2084_v51 }
 0x17a   : > { %v2001_v1 = vadd.f32 %v2000_v0, %v1902_v63  ;;  %v2089_v2 = vpop.f32.mrb[12].mxu1  ;;  %v2002_v3 = vpop.f32.mrb[13].mxu0  ;;  %2424 = vst [vmem:[#allocation4 + $0x58] sm:$0xff] %v2086_v54 }
 0x17b   : > { %v2090_v4 = vadd.f32 %v2089_v2, %v1902_v63  ;;  %v2003_v5 = vadd.f32 %v2002_v3, %v1902_v63  ;;  %v2091_v6 = vpop.f32.mrb[13].mxu1 }
 0x17c   : > { %2425 = vst [vmem:[#allocation4 + $0x60] sm:$0xff] %v2001_v1  ;;  %v2092_v8 = vadd.f32 %v2091_v6, %v1902_v63 }
 0x17d   : > { %2427 = vst [vmem:[#allocation4 + $0x70] sm:$0xff] %v2090_v4  ;;  %2426 = vst [vmem:[#allocation4 + $0x68] sm:$0xff] %v2003_v5 }
 0x17e   : > { %2428 = vst [vmem:[#allocation4 + $0x78] sm:$0xff] %v2092_v8 }
 0x248   : > { %v2230_v11 = vpop.f32.mrb[14].mxu0 }
 0x249   : > { %v2232_v12 = vpop.f32.mrb[15].mxu0  ;;  %4570 = vmatmul.mubr.msk.f32.vlgmr.msra.gmra.mrb[14].mxu1 %vm2244_vm2, %v2230_v11 }
 0x24a   : > { %4572 = vmatpush1.msk.msra.mxu1 %vm2248_vm1, %v1386_v53  ;;  %2396 = vmatprep.mubr.f32.mxu1 %v5512_v7 }
 0x24d   : > { %4573 = vmatmul.mubr.msk.f32.vlgmr.msra.gmra.mrb[16].mxu1 %vm2244_vm2, %v2230_v11 }
 0x31c   : > { %v2327_v13 = vpop.f32.mrb[14].mxu1 }
 0x31d   : > { %v2329_v14 = vpop.f32.mrb[15].mxu1 }
 0x31e   : > { %v2407_v15 = vcombine.low %v2327_v13, %v2329_v14 }
 0x320   : > { %2411 = vst [vmem:[#allocation3] sm:$0xff] %v2407_v15  ;;  %v2398_v16 = vpop.f32.mrb[16].mxu1 }
 0x321   : > { %v2400_v17 = vpop.f32.mrb[17].mxu1 }
 0x322   : > { %v2408_v18 = vcombine.low %v2398_v16, %v2400_v17 }
 0x324   : > { %2412 = vst [vmem:[#allocation3 + $0x8] sm:$0xff] %v2408_v18 }
 0x325 PF: > { %s4574_s28 = sshll.u32 %s5491_s18, 8  ;;  %vm2621_vm3 = vcmask 1043456   ;;  %v5514_v22 = vmov 0.0   ;;  %vm2524_vm4 = vcmask 31744   ;;  %p4645_p9 = scmp.ne.s32.totalorder %s5491_s18, 1 }
 0x326   : > { %s6010_s30 = sshra.s32 %s4574_s28, 7  ;;  %2694 = vmatprep.mubr.f32.mxu0 %v5514_v22  ;;  %2951 = vmatprep.mubr.f32.mxu1 %v5514_v22  ;;  %s4248_s24 = sld [smem:[#allocation6]] (!%p4645_p9) }
 0x327   : > { %v2451_v19 = vld [vmem:[#allocation3] sm:$0xff]  ;;  %s4575_s27 = sshll.u32 %s6010_s30, 2  ;;  %s4644_s13 = sshll.u32 %s6010_s30, 3 }
 0x328   : > { %v2522_v21 = vcombine.high %v2451_v19, %v2451_v19  ;;  %s2449_s20 = scalar_lea.vmem [#allocation2], %s4575_s27  ;;  %s7038_s21 = scalar_lea.vmem [#allocation4], %s4644_s13 }
 0x329   : > { %v2450_v23 = vld [vmem:[%s2449_s20] sm:$0xff] }
 0x32a   : > { %4576 = vmatprep.subr.msk.mxu0 %vm2621_vm3, %v2522_v21  ;;  %2456 = vxpose.xlu0.b32.start.end [1/1] (short) %v2450_v23, 128  ;;  %v2454_v24 = vcombine.high %v2450_v23, %v2450_v23 }
 0x32b   : > { %v2452_v20 = vld [vmem:[#allocation3 + $0x8] sm:$0xff]  ;;  %4577 = vmatpush1.msk.msra.mxu0 %vm2621_vm3, %v2451_v19 }
 0x32c   : > { %v2523_v7 = vcombine.high %v2452_v20, %v2452_v20 }
 0x32e   : > { %4610 = vmatprep.subr.msk.mxu1 %vm2621_vm3, %v2523_v7 }
 0x32f   : > { %4611 = vmatpush1.msk.msra.mxu1 %vm2621_vm3, %v2452_v20 }
 0x367   : > { %2488 = vxpose.xlu0.b32.start.end [1/1] (short) %v2454_v24, 128 }
 0x3aa   : > { %v2472_v25 = vpop.trf.xlu0 }
 0x3ab   : > { %4578 = vmatmul.mubr.msk.f32.vlgmr.msra.gmra.mrb[0].mxu0 %vm2524_vm4, %v2472_v25  ;;  %4612 = vmatmul.mubr.msk.f32.vlgmr.msra.gmra.mrb[0].mxu1 %vm2524_vm4, %v2472_v25 }
 0x3ac   : > { %2700 = vmatprep.mubr.f32.mxu0 %v5514_v22  ;;  %2957 = vmatprep.mubr.f32.mxu1 %v5514_v22 }
 0x3ae   : > { %v2473_v26 = vpop.trf.xlu0 }
 0x3af   : > { %4579 = vmatmul.mubr.msk.f32.gmra.mrb[2].mxu0 %vm2524_vm4, %v2473_v26  ;;  %4613 = vmatmul.mubr.msk.f32.gmra.mrb[2].mxu1 %vm2524_vm4, %v2473_v26 }
 0x3b0   : > { %2706 = vmatprep.mubr.f32.mxu0 %v5514_v22  ;;  %2963 = vmatprep.mubr.f32.mxu1 %v5514_v22 }
 0x3b2   : > { %v2474_v27 = vpop.trf.xlu0 }
 0x3b3   : > { %4580 = vmatmul.mubr.msk.f32.gmra.mrb[4].mxu0 %vm2524_vm4, %v2474_v27  ;;  %4614 = vmatmul.mubr.msk.f32.gmra.mrb[4].mxu1 %vm2524_vm4, %v2474_v27 }
 0x3b4   : > { %2712 = vmatprep.mubr.f32.mxu0 %v5514_v22  ;;  %2969 = vmatprep.mubr.f32.mxu1 %v5514_v22 }
 0x3b6   : > { %v2475_v28 = vpop.trf.xlu0 }
 0x3b7   : > { %4581 = vmatmul.mubr.msk.f32.gmra.mrb[6].mxu0 %vm2524_vm4, %v2475_v28  ;;  %4615 = vmatmul.mubr.msk.f32.gmra.mrb[6].mxu1 %vm2524_vm4, %v2475_v28 }
 0x3b8   : > { %2718 = vmatprep.mubr.f32.mxu0 %v5514_v22  ;;  %2975 = vmatprep.mubr.f32.mxu1 %v5514_v22 }
 0x3ba   : > { %v2476_v29 = vpop.trf.xlu0 }
 0x3bb   : > { %4582 = vmatmul.mubr.msk.f32.gmra.mrb[8].mxu0 %vm2524_vm4, %v2476_v29  ;;  %4616 = vmatmul.mubr.msk.f32.gmra.mrb[8].mxu1 %vm2524_vm4, %v2476_v29 }
 0x3bc   : > { %2724 = vmatprep.mubr.f32.mxu0 %v5514_v22  ;;  %2981 = vmatprep.mubr.f32.mxu1 %v5514_v22 }
 0x3be   : > { %v2477_v30 = vpop.trf.xlu0 }
 0x3bf   : > { %4583 = vmatmul.mubr.msk.f32.gmra.mrb[10].mxu0 %vm2524_vm4, %v2477_v30  ;;  %4617 = vmatmul.mubr.msk.f32.gmra.mrb[10].mxu1 %vm2524_vm4, %v2477_v30 }
 0x3c0   : > { %2730 = vmatprep.mubr.f32.mxu0 %v5514_v22  ;;  %2987 = vmatprep.mubr.f32.mxu1 %v5514_v22 }
 0x3c2   : > { %v2478_v33 = vpop.trf.xlu0 }
 0x3c3   : > { %4584 = vmatmul.mubr.msk.f32.gmra.mrb[12].mxu0 %vm2524_vm4, %v2478_v33  ;;  %4618 = vmatmul.mubr.msk.f32.gmra.mrb[12].mxu1 %vm2524_vm4, %v2478_v33 }
 0x3c4   : > { %2736 = vmatprep.mubr.f32.mxu0 %v5514_v22  ;;  %2993 = vmatprep.mubr.f32.mxu1 %v5514_v22 }
 0x3c6   : > { %v2479_v34 = vpop.trf.xlu0 }
 0x3c7   : > { %4585 = vmatmul.mubr.msk.f32.gmra.mrb[14].mxu0 %vm2524_vm4, %v2479_v34  ;;  %4619 = vmatmul.mubr.msk.f32.gmra.mrb[14].mxu1 %vm2524_vm4, %v2479_v34 }
 0x3c8   : > { %2742 = vmatprep.mubr.f32.mxu0 %v5514_v22  ;;  %2999 = vmatprep.mubr.f32.mxu1 %v5514_v22 }
 0x3ca   : > { %v2480_v35 = vpop.trf.xlu0 }
 0x3cb   : > { %4586 = vmatmul.mubr.msk.f32.gmra.mrb[16].mxu0 %vm2524_vm4, %v2480_v35  ;;  %4620 = vmatmul.mubr.msk.f32.gmra.mrb[16].mxu1 %vm2524_vm4, %v2480_v35 }
 0x3cc   : > { %2748 = vmatprep.mubr.f32.mxu0 %v5514_v22  ;;  %3005 = vmatprep.mubr.f32.mxu1 %v5514_v22 }
 0x3ce   : > { %v2481_v37 = vpop.trf.xlu0 }
 0x3cf   : > { %4587 = vmatmul.mubr.msk.f32.gmra.mrb[18].mxu0 %vm2524_vm4, %v2481_v37  ;;  %4621 = vmatmul.mubr.msk.f32.gmra.mrb[18].mxu1 %vm2524_vm4, %v2481_v37 }
 0x3d0   : > { %2754 = vmatprep.mubr.f32.mxu0 %v5514_v22  ;;  %3011 = vmatprep.mubr.f32.mxu1 %v5514_v22 }
 0x3d2   : > { %v2482_v38 = vpop.trf.xlu0 }
 0x3d3   : > { %4588 = vmatmul.mubr.msk.f32.gmra.mrb[20].mxu0 %vm2524_vm4, %v2482_v38  ;;  %4622 = vmatmul.mubr.msk.f32.gmra.mrb[20].mxu1 %vm2524_vm4, %v2482_v38 }
 0x3d4   : > { %2760 = vmatprep.mubr.f32.mxu0 %v5514_v22  ;;  %3017 = vmatprep.mubr.f32.mxu1 %v5514_v22 }
 0x3d6   : > { %v2483_v39 = vpop.trf.xlu0 }
 0x3d7   : > { %4589 = vmatmul.mubr.msk.f32.gmra.mrb[22].mxu0 %vm2524_vm4, %v2483_v39  ;;  %4623 = vmatmul.mubr.msk.f32.gmra.mrb[22].mxu1 %vm2524_vm4, %v2483_v39 }
 0x3d8   : > { %2766 = vmatprep.mubr.f32.mxu0 %v5514_v22  ;;  %3023 = vmatprep.mubr.f32.mxu1 %v5514_v22 }
 0x3da   : > { %v2484_v42 = vpop.trf.xlu0 }
 0x3db   : > { %4590 = vmatmul.mubr.msk.f32.gmra.mrb[24].mxu0 %vm2524_vm4, %v2484_v42  ;;  %4624 = vmatmul.mubr.msk.f32.gmra.mrb[24].mxu1 %vm2524_vm4, %v2484_v42 }
 0x3dc   : > { %2772 = vmatprep.mubr.f32.mxu0 %v5514_v22  ;;  %3029 = vmatprep.mubr.f32.mxu1 %v5514_v22 }
 0x3de   : > { %v2485_v43 = vpop.trf.xlu0 }
 0x3df   : > { %4591 = vmatmul.mubr.msk.f32.gmra.mrb[26].mxu0 %vm2524_vm4, %v2485_v43  ;;  %4625 = vmatmul.mubr.msk.f32.gmra.mrb[26].mxu1 %vm2524_vm4, %v2485_v43 }
 0x3e0   : > { %2778 = vmatprep.mubr.f32.mxu0 %v5514_v22  ;;  %3035 = vmatprep.mubr.f32.mxu1 %v5514_v22 }
 0x3e2   : > { %v2486_v44 = vpop.trf.xlu0 }
 0x3e3   : > { %4592 = vmatmul.mubr.msk.f32.gmra.mrb[28].mxu0 %vm2524_vm4, %v2486_v44  ;;  %4626 = vmatmul.mubr.msk.f32.gmra.mrb[28].mxu1 %vm2524_vm4, %v2486_v44 }
 0x3e4   : > { %2784 = vmatprep.mubr.f32.mxu0 %v5514_v22  ;;  %3041 = vmatprep.mubr.f32.mxu1 %v5514_v22 }
 0x3e6   : > { %v2487_v46 = vpop.trf.xlu0 }
 0x3e7   : > { %4593 = vmatmul.mubr.msk.f32.gmra.mrb[30].mxu0 %vm2524_vm4, %v2487_v46  ;;  %4627 = vmatmul.mubr.msk.f32.gmra.mrb[30].mxu1 %vm2524_vm4, %v2487_v46 }
 0x3e8   : > { %2790 = vmatprep.mubr.f32.mxu0 %v5514_v22  ;;  %3047 = vmatprep.mubr.f32.mxu1 %v5514_v22 }
 0x3ea   : > { %v2504_v47 = vpop.trf.xlu0 }
 0x3eb   : > { %4594 = vmatmul.mubr.msk.f32.gmra.mrb[32].mxu0 %vm2524_vm4, %v2504_v47  ;;  %4628 = vmatmul.mubr.msk.f32.gmra.mrb[32].mxu1 %vm2524_vm4, %v2504_v47 }
 0x3ec   : > { %2796 = vmatprep.mubr.f32.mxu0 %v5514_v22  ;;  %3053 = vmatprep.mubr.f32.mxu1 %v5514_v22 }
 0x3ee   : > { %v2505_v48 = vpop.trf.xlu0 }
 0x3ef   : > { %4595 = vmatmul.mubr.msk.f32.gmra.mrb[34].mxu0 %vm2524_vm4, %v2505_v48  ;;  %4629 = vmatmul.mubr.msk.f32.gmra.mrb[34].mxu1 %vm2524_vm4, %v2505_v48 }
 0x3f0   : > { %2802 = vmatprep.mubr.f32.mxu0 %v5514_v22  ;;  %3059 = vmatprep.mubr.f32.mxu1 %v5514_v22 }
 0x3f2   : > { %v2506_v49 = vpop.trf.xlu0 }
 0x3f3   : > { %4596 = vmatmul.mubr.msk.f32.gmra.mrb[36].mxu0 %vm2524_vm4, %v2506_v49  ;;  %4630 = vmatmul.mubr.msk.f32.gmra.mrb[36].mxu1 %vm2524_vm4, %v2506_v49 }
 0x3f4   : > { %2808 = vmatprep.mubr.f32.mxu0 %v5514_v22  ;;  %3065 = vmatprep.mubr.f32.mxu1 %v5514_v22 }
 0x3f6   : > { %v2507_v50 = vpop.trf.xlu0 }
 0x3f7   : > { %4597 = vmatmul.mubr.msk.f32.gmra.mrb[38].mxu0 %vm2524_vm4, %v2507_v50  ;;  %4631 = vmatmul.mubr.msk.f32.gmra.mrb[38].mxu1 %vm2524_vm4, %v2507_v50 }
 0x3f8   : > { %2814 = vmatprep.mubr.f32.mxu0 %v5514_v22  ;;  %3071 = vmatprep.mubr.f32.mxu1 %v5514_v22 }
 0x3fa   : > { %v2508_v52 = vpop.trf.xlu0 }
 0x3fb   : > { %4598 = vmatmul.mubr.msk.f32.gmra.mrb[40].mxu0 %vm2524_vm4, %v2508_v52  ;;  %4632 = vmatmul.mubr.msk.f32.gmra.mrb[40].mxu1 %vm2524_vm4, %v2508_v52 }
 0x3fc   : > { %2820 = vmatprep.mubr.f32.mxu0 %v5514_v22  ;;  %3077 = vmatprep.mubr.f32.mxu1 %v5514_v22 }
 0x3fe   : > { %v2509_v53 = vpop.trf.xlu0 }
 0x3ff   : > { %4599 = vmatmul.mubr.msk.f32.gmra.mrb[42].mxu0 %vm2524_vm4, %v2509_v53  ;;  %4633 = vmatmul.mubr.msk.f32.gmra.mrb[42].mxu1 %vm2524_vm4, %v2509_v53 }
 0x400   : > { %2826 = vmatprep.mubr.f32.mxu0 %v5514_v22  ;;  %3083 = vmatprep.mubr.f32.mxu1 %v5514_v22 }
 0x402   : > { %v2510_v55 = vpop.trf.xlu0 }
 0x403   : > { %4600 = vmatmul.mubr.msk.f32.gmra.mrb[44].mxu0 %vm2524_vm4, %v2510_v55  ;;  %4634 = vmatmul.mubr.msk.f32.gmra.mrb[44].mxu1 %vm2524_vm4, %v2510_v55 }
 0x404   : > { %2832 = vmatprep.mubr.f32.mxu0 %v5514_v22  ;;  %3089 = vmatprep.mubr.f32.mxu1 %v5514_v22 }
 0x406   : > { %v2511_v56 = vpop.trf.xlu0 }
 0x407   : > { %4601 = vmatmul.mubr.msk.f32.gmra.mrb[46].mxu0 %vm2524_vm4, %v2511_v56  ;;  %4635 = vmatmul.mubr.msk.f32.gmra.mrb[46].mxu1 %vm2524_vm4, %v2511_v56 }
 0x408   : > { %2838 = vmatprep.mubr.f32.mxu0 %v5514_v22  ;;  %3095 = vmatprep.mubr.f32.mxu1 %v5514_v22 }
 0x40a   : > { %v2512_v57 = vpop.trf.xlu0 }
 0x40b   : > { %4602 = vmatmul.mubr.msk.f32.gmra.mrb[48].mxu0 %vm2524_vm4, %v2512_v57  ;;  %4636 = vmatmul.mubr.msk.f32.gmra.mrb[48].mxu1 %vm2524_vm4, %v2512_v57 }
 0x40c   : > { %2844 = vmatprep.mubr.f32.mxu0 %v5514_v22  ;;  %3101 = vmatprep.mubr.f32.mxu1 %v5514_v22 }
 0x40e   : > { %v2513_v58 = vpop.trf.xlu0 }
 0x40f   : > { %4603 = vmatmul.mubr.msk.f32.gmra.mrb[50].mxu0 %vm2524_vm4, %v2513_v58  ;;  %4637 = vmatmul.mubr.msk.f32.gmra.mrb[50].mxu1 %vm2524_vm4, %v2513_v58 }
 0x410   : > { %2850 = vmatprep.mubr.f32.mxu0 %v5514_v22  ;;  %3107 = vmatprep.mubr.f32.mxu1 %v5514_v22 }
 0x412   : > { %v2514_v59 = vpop.trf.xlu0 }
 0x413   : > { %4604 = vmatmul.mubr.msk.f32.gmra.mrb[52].mxu0 %vm2524_vm4, %v2514_v59  ;;  %4638 = vmatmul.mubr.msk.f32.gmra.mrb[52].mxu1 %vm2524_vm4, %v2514_v59 }
 0x414   : > { %2856 = vmatprep.mubr.f32.mxu0 %v5514_v22  ;;  %3113 = vmatprep.mubr.f32.mxu1 %v5514_v22 }
 0x416   : > { %v2515_v60 = vpop.trf.xlu0 }
 0x417   : > { %4605 = vmatmul.mubr.msk.f32.gmra.mrb[54].mxu0 %vm2524_vm4, %v2515_v60  ;;  %4639 = vmatmul.mubr.msk.f32.gmra.mrb[54].mxu1 %vm2524_vm4, %v2515_v60 }
 0x418   : > { %2862 = vmatprep.mubr.f32.mxu0 %v5514_v22  ;;  %3119 = vmatprep.mubr.f32.mxu1 %v5514_v22 }
 0x41a   : > { %v2516_v61 = vpop.trf.xlu0 }
 0x41b   : > { %4606 = vmatmul.mubr.msk.f32.gmra.mrb[56].mxu0 %vm2524_vm4, %v2516_v61  ;;  %4640 = vmatmul.mubr.msk.f32.gmra.mrb[56].mxu1 %vm2524_vm4, %v2516_v61 }
 0x41c   : > { %2868 = vmatprep.mubr.f32.mxu0 %v5514_v22  ;;  %3125 = vmatprep.mubr.f32.mxu1 %v5514_v22 }
 0x41e   : > { %v2517_v62 = vpop.trf.xlu0 }
 0x41f   : > { %4607 = vmatmul.mubr.msk.f32.gmra.mrb[58].mxu0 %vm2524_vm4, %v2517_v62  ;;  %4641 = vmatmul.mubr.msk.f32.gmra.mrb[58].mxu1 %vm2524_vm4, %v2517_v62 }
 0x420   : > { %2874 = vmatprep.mubr.f32.mxu0 %v5514_v22  ;;  %3131 = vmatprep.mubr.f32.mxu1 %v5514_v22 }
 0x422   : > { %v2518_v63 = vpop.trf.xlu0 }
 0x423   : > { %4608 = vmatmul.mubr.msk.f32.gmra.mrb[60].mxu0 %vm2524_vm4, %v2518_v63  ;;  %4642 = vmatmul.mubr.msk.f32.gmra.mrb[60].mxu1 %vm2524_vm4, %v2518_v63 }
 0x424   : > { %2880 = vmatprep.mubr.f32.mxu0 %v5514_v22  ;;  %3137 = vmatprep.mubr.f32.mxu1 %v5514_v22 }
 0x426   : > { %v2519_v0 = vpop.trf.xlu0 }
 0x427   : > { %4609 = vmatmul.mubr.msk.f32.gmra.mrb[62].mxu0 %vm2524_vm4, %v2519_v0  ;;  %4643 = vmatmul.mubr.msk.f32.gmra.mrb[62].mxu1 %vm2524_vm4, %v2519_v0 }
 0x47e   : > { %v6141_v1 = vpop.f32.mrb[0].mxu0  ;;  %v6143_v2 = vpop.f32.mrb[0].mxu1 }
 0x47f   : > { %v6145_v3 = vpop.f32.mrb[1].mxu0  ;;  %v6147_v4 = vpop.f32.mrb[1].mxu1 }
 0x480   : > { %v3144_v5 = vmax.f32 %v6141_v1, %v6145_v3 }
 0x482   : > { %v6151_v6 = vpop.f32.mrb[2].mxu0  ;;  %v6153_v8 = vpop.f32.mrb[2].mxu1  ;;  %v3145_v9 = vmax.f32 %v3144_v5, %v6143_v2 }
 0x483   : > { %v6156_v10 = vpop.f32.mrb[3].mxu0  ;;  %v6158_v31 = vpop.f32.mrb[3].mxu1 }
 0x484   : > { %v3149_v32 = vmax.f32 %v6151_v6, %v6156_v10  ;;  %v3146_v36 = vmax.f32 %v3145_v9, %v6147_v4 }
 0x486   : > { %3147 = vmax.xlane.f32.xlu1 %v3146_v36  ;;  %v6163_v40 = vpop.f32.mrb[4].mxu0  ;;  %v6165_v41 = vpop.f32.mrb[4].mxu1  ;;  %v3150_v45 = vmax.f32 %v3149_v32, %v6153_v8 }
 0x487   : > { %v6168_v51 = vpop.f32.mrb[5].mxu0  ;;  %v6170_v54 = vpop.f32.mrb[5].mxu1 }
 0x488   : > { %v3154_v11 = vmax.f32 %v6163_v40, %v6168_v51  ;;  %v3151_v12 = vmax.f32 %v3150_v45, %v6158_v31 }
 0x48a   : > { %3152 = vmax.xlane.f32.xlu1 %v3151_v12  ;;  %v6175_v13 = vpop.f32.mrb[6].mxu0  ;;  %v6177_v14 = vpop.f32.mrb[6].mxu1  ;;  %v3155_v15 = vmax.f32 %v3154_v11, %v6165_v41 }
 0x48b   : > { %v6180_v16 = vpop.f32.mrb[7].mxu0  ;;  %v6182_v17 = vpop.f32.mrb[7].mxu1 }
 0x48c   : > { %v3159_v18 = vmax.f32 %v6175_v13, %v6180_v16  ;;  %v3156_v19 = vmax.f32 %v3155_v15, %v6170_v54 }
 0x48e   : > { %3157 = vmax.xlane.f32.xlu1 %v3156_v19  ;;  %v6187_v20 = vpop.f32.mrb[8].mxu0  ;;  %v6189_v21 = vpop.f32.mrb[8].mxu1  ;;  %v3160_v7 = vmax.f32 %v3159_v18, %v6177_v14 }
 0x48f   : > { %v6192_v22 = vpop.f32.mrb[9].mxu0  ;;  %v6194_v23 = vpop.f32.mrb[9].mxu1 }
 0x490   : > { %v3164_v24 = vmax.f32 %v6187_v20, %v6192_v22  ;;  %v3161_v25 = vmax.f32 %v3160_v7, %v6182_v17 }
 0x492   : > { %3162 = vmax.xlane.f32.xlu1 %v3161_v25  ;;  %v6199_v26 = vpop.f32.mrb[10].mxu0  ;;  %v6201_v27 = vpop.f32.mrb[10].mxu1  ;;  %v3165_v28 = vmax.f32 %v3164_v24, %v6189_v21 }
 0x493   : > { %v6204_v29 = vpop.f32.mrb[11].mxu0  ;;  %v6206_v30 = vpop.f32.mrb[11].mxu1 }
 0x494   : > { %v3169_v33 = vmax.f32 %v6199_v26, %v6204_v29  ;;  %v3166_v34 = vmax.f32 %v3165_v28, %v6194_v23 }
 0x496   : > { %3167 = vmax.xlane.f32.xlu1 %v3166_v34  ;;  %v6211_v35 = vpop.f32.mrb[12].mxu0  ;;  %v6213_v37 = vpop.f32.mrb[12].mxu1  ;;  %v3170_v38 = vmax.f32 %v3169_v33, %v6201_v27 }
 0x497   : > { %v6216_v39 = vpop.f32.mrb[13].mxu0  ;;  %v6218_v42 = vpop.f32.mrb[13].mxu1 }
 0x498   : > { %v3174_v43 = vmax.f32 %v6211_v35, %v6216_v39  ;;  %v3171_v44 = vmax.f32 %v3170_v38, %v6206_v30 }
 0x49a   : > { %3172 = vmax.xlane.f32.xlu1 %v3171_v44  ;;  %v6223_v46 = vpop.f32.mrb[14].mxu0  ;;  %v6225_v47 = vpop.f32.mrb[14].mxu1  ;;  %v3175_v48 = vmax.f32 %v3174_v43, %v6213_v37 }
 0x49b   : > { %v6228_v49 = vpop.f32.mrb[15].mxu0  ;;  %v6230_v50 = vpop.f32.mrb[15].mxu1 }
 0x49c   : > { %v3179_v52 = vmax.f32 %v6223_v46, %v6228_v49  ;;  %v3176_v53 = vmax.f32 %v3175_v48, %v6218_v42 }
 0x49e   : > { %3177 = vmax.xlane.f32.xlu1 %v3176_v53  ;;  %v6235_v55 = vpop.f32.mrb[16].mxu0  ;;  %v6237_v56 = vpop.f32.mrb[16].mxu1  ;;  %v3180_v57 = vmax.f32 %v3179_v52, %v6225_v47 }
 0x49f   : > { %v6240_v58 = vpop.f32.mrb[17].mxu0  ;;  %v6242_v59 = vpop.f32.mrb[17].mxu1 }
 0x4a0   : > { %v3184_v60 = vmax.f32 %v6235_v55, %v6240_v58  ;;  %v3181_v61 = vmax.f32 %v3180_v57, %v6230_v50 }
 0x4a2   : > { %3182 = vmax.xlane.f32.xlu1 %v3181_v61  ;;  %v6247_v62 = vpop.f32.mrb[18].mxu0  ;;  %v6249_v63 = vpop.f32.mrb[18].mxu1  ;;  %v3185_v0 = vmax.f32 %v3184_v60, %v6237_v56 }
 0x4a3   : > { %v6252_v5 = vpop.f32.mrb[19].mxu0  ;;  %v6254_v9 = vpop.f32.mrb[19].mxu1 }
 0x4a4   : > { %v3189_v32 = vmax.f32 %v6247_v62, %v6252_v5  ;;  %v3186_v36 = vmax.f32 %v3185_v0, %v6242_v59 }
 0x4a6   : > { %3187 = vmax.xlane.f32.xlu1 %v3186_v36  ;;  %v6259_v45 = vpop.f32.mrb[20].mxu0  ;;  %v6261_v11 = vpop.f32.mrb[20].mxu1  ;;  %v3190_v12 = vmax.f32 %v3189_v32, %v6249_v63 }
 0x4a7   : > { %v6264_v15 = vpop.f32.mrb[21].mxu0  ;;  %v6266_v18 = vpop.f32.mrb[21].mxu1 }
 0x4a8   : > { %v3194_v19 = vmax.f32 %v6259_v45, %v6264_v15  ;;  %v3191_v7 = vmax.f32 %v3190_v12, %v6254_v9 }
 0x4aa   : > { %3192 = vmax.xlane.f32.xlu1 %v3191_v7  ;;  %v6271_v24 = vpop.f32.mrb[22].mxu0  ;;  %v6273_v25 = vpop.f32.mrb[22].mxu1  ;;  %v3195_v28 = vmax.f32 %v3194_v19, %v6261_v11 }
 0x4ab   : > { %v6276_v33 = vpop.f32.mrb[23].mxu0  ;;  %v6278_v34 = vpop.f32.mrb[23].mxu1 }
 0x4ac   : > { %7453 = vst [vmem:[#allocation18_spill] sm:$0xff] %v6278_v34  ;;  %v3199_v38 = vmax.f32 %v6271_v24, %v6276_v33  ;;  %v3196_v43 = vmax.f32 %v3195_v28, %v6266_v18 }
 0x4ae   : > { %3197 = vmax.xlane.f32.xlu1 %v3196_v43  ;;  %v6283_v44 = vpop.f32.mrb[24].mxu0  ;;  %v6285_v48 = vpop.f32.mrb[24].mxu1  ;;  %v3200_v52 = vmax.f32 %v3199_v38, %v6273_v25 }
 0x4af   : > { %7454 = vst [vmem:[#allocation19_spill] sm:$0xff] %v6283_v44  ;;  %7455 = vst [vmem:[#allocation20_spill] sm:$0xff] %v6285_v48  ;;  %v6288_v53 = vpop.f32.mrb[25].mxu0  ;;  %v6290_v57 = vpop.f32.mrb[25].mxu1 }
 0x4b0   : > { %7456 = vst [vmem:[#allocation21_spill] sm:$0xff] %v6288_v53  ;;  %7457 = vst [vmem:[#allocation22_spill] sm:$0xff] %v6290_v57  ;;  %v3204_v60 = vmax.f32 %v6283_v44, %v6288_v53  ;;  %v3201_v61 = vmax.f32 %v3200_v52, %v6278_v34 }
 0x4b2   : > { %3202 = vmax.xlane.f32.xlu1 %v3201_v61  ;;  %v6295_v0 = vpop.f32.mrb[26].mxu0  ;;  %v6297_v32 = vpop.f32.mrb[26].mxu1  ;;  %v3205_v36 = vmax.f32 %v3204_v60, %v6285_v48 }
 0x4b3   : > { %7458 = vst [vmem:[#allocation23_spill] sm:$0xff] %v6295_v0  ;;  %7459 = vst [vmem:[#allocation24_spill] sm:$0xff] %v6297_v32  ;;  %v6300_v12 = vpop.f32.mrb[27].mxu0  ;;  %v6302_v19 = vpop.f32.mrb[27].mxu1 }
 0x4b4   : > { %7460 = vst [vmem:[#allocation25_spill] sm:$0xff] %v6300_v12  ;;  %7461 = vst [vmem:[#allocation26_spill] sm:$0xff] %v6302_v19  ;;  %v3209_v7 = vmax.f32 %v6295_v0, %v6300_v12  ;;  %v3206_v28 = vmax.f32 %v3205_v36, %v6290_v57 }
 0x4b6   : > { %3207 = vmax.xlane.f32.xlu1 %v3206_v28  ;;  %v6307_v38 = vpop.f32.mrb[28].mxu0  ;;  %v6309_v43 = vpop.f32.mrb[28].mxu1  ;;  %v3210_v52 = vmax.f32 %v3209_v7, %v6297_v32 }
 0x4b7   : > { %7462 = vst [vmem:[#allocation27_spill] sm:$0xff] %v6307_v38  ;;  %7463 = vst [vmem:[#allocation28_spill] sm:$0xff] %v6309_v43  ;;  %v6312_v61 = vpop.f32.mrb[29].mxu0  ;;  %v6314_v53 = vpop.f32.mrb[29].mxu1 }
 0x4b8   : > { %7464 = vst [vmem:[#allocation29_spill] sm:$0xff] %v6312_v61  ;;  %7465 = vst [vmem:[#allocation30_spill] sm:$0xff] %v6314_v53  ;;  %v3214_v60 = vmax.f32 %v6307_v38, %v6312_v61  ;;  %v3211_v48 = vmax.f32 %v3210_v52, %v6302_v19 }
 0x4ba   : > { %3212 = vmax.xlane.f32.xlu1 %v3211_v48  ;;  %v6319_v12 = vpop.f32.mrb[30].mxu0  ;;  %v6321_v36 = vpop.f32.mrb[30].mxu1  ;;  %v3215_v28 = vmax.f32 %v3214_v60, %v6309_v43 }
 0x4bb   : > { %7466 = vst [vmem:[#allocation31_spill] sm:$0xff] %v6319_v12  ;;  %7467 = vst [vmem:[#allocation32_spill] sm:$0xff] %v6321_v36  ;;  %v6324_v0 = vpop.f32.mrb[31].mxu0  ;;  %v6326_v57 = vpop.f32.mrb[31].mxu1 }
 0x4bc   : > { %7468 = vst [vmem:[#allocation33_spill] sm:$0xff] %v6324_v0  ;;  %7469 = vst [vmem:[#allocation34_spill] sm:$0xff] %v6326_v57  ;;  %v3219_v7 = vmax.f32 %v6319_v12, %v6324_v0  ;;  %v3216_v32 = vmax.f32 %v3215_v28, %v6314_v53 }
 0x4be   : > { %3217 = vmax.xlane.f32.xlu1 %v3216_v32  ;;  %v6331_v61 = vpop.f32.mrb[32].mxu0  ;;  %v6333_v52 = vpop.f32.mrb[32].mxu1  ;;  %v3220_v48 = vmax.f32 %v3219_v7, %v6321_v36 }
 0x4bf   : > { %7470 = vst [vmem:[#allocation35_spill] sm:$0xff] %v6331_v61  ;;  %7471 = vst [vmem:[#allocation36_spill] sm:$0xff] %v6333_v52  ;;  %v6336_v38 = vpop.f32.mrb[33].mxu0  ;;  %v6338_v19 = vpop.f32.mrb[33].mxu1 }
 0x4c0   : > { %7472 = vst [vmem:[#allocation37_spill] sm:$0xff] %v6336_v38  ;;  %7473 = vst [vmem:[#allocation38_spill] sm:$0xff] %v6338_v19  ;;  %v3224_v60 = vmax.f32 %v6331_v61, %v6336_v38  ;;  %v3221_v43 = vmax.f32 %v3220_v48, %v6326_v57 }
 0x4c2   : > { %3222 = vmax.xlane.f32.xlu1 %v3221_v43  ;;  %v6343_v0 = vpop.f32.mrb[34].mxu0  ;;  %v6345_v28 = vpop.f32.mrb[34].mxu1  ;;  %v3225_v32 = vmax.f32 %v3224_v60, %v6333_v52 }
 0x4c3   : > { %7474 = vst [vmem:[#allocation39_spill] sm:$0xff] %v6343_v0  ;;  %7475 = vst [vmem:[#allocation40_spill] sm:$0xff] %v6345_v28  ;;  %v6348_v12 = vpop.f32.mrb[35].mxu0  ;;  %v6350_v53 = vpop.f32.mrb[35].mxu1 }
 0x4c4   : > { %7476 = vst [vmem:[#allocation41_spill] sm:$0xff] %v6348_v12  ;;  %7477 = vst [vmem:[#allocation42_spill] sm:$0xff] %v6350_v53  ;;  %v3229_v7 = vmax.f32 %v6343_v0, %v6348_v12  ;;  %v3226_v36 = vmax.f32 %v3225_v32, %v6338_v19 }
 0x4c6   : > { %3227 = vmax.xlane.f32.xlu1 %v3226_v36  ;;  %v6355_v38 = vpop.f32.mrb[36].mxu0  ;;  %v6357_v48 = vpop.f32.mrb[36].mxu1  ;;  %v3230_v43 = vmax.f32 %v3229_v7, %v6345_v28 }
 0x4c7   : > { %7478 = vst [vmem:[#allocation43_spill] sm:$0xff] %v6355_v38  ;;  %7479 = vst [vmem:[#allocation44_spill] sm:$0xff] %v6357_v48  ;;  %v6360_v61 = vpop.f32.mrb[37].mxu0  ;;  %v6362_v57 = vpop.f32.mrb[37].mxu1 }
 0x4c8   : > { %7480 = vst [vmem:[#allocation45_spill] sm:$0xff] %v6360_v61  ;;  %7481 = vst [vmem:[#allocation46_spill] sm:$0xff] %v6362_v57  ;;  %v3234_v60 = vmax.f32 %v6355_v38, %v6360_v61  ;;  %v3231_v52 = vmax.f32 %v3230_v43, %v6350_v53 }
 0x4ca   : > { %3232 = vmax.xlane.f32.xlu0 %v3231_v52  ;;  %v6367_v12 = vpop.f32.mrb[38].mxu0  ;;  %v6369_v32 = vpop.f32.mrb[38].mxu1  ;;  %v3235_v36 = vmax.f32 %v3234_v60, %v6357_v48 }
 0x4cb   : > { %7482 = vst [vmem:[#allocation47_spill] sm:$0xff] %v6367_v12  ;;  %7483 = vst [vmem:[#allocation48_spill] sm:$0xff] %v6369_v32  ;;  %v6372_v0 = vpop.f32.mrb[39].mxu0  ;;  %v6374_v19 = vpop.f32.mrb[39].mxu1 }
 0x4cc   : > { %7484 = vst [vmem:[#allocation49_spill] sm:$0xff] %v6372_v0  ;;  %7485 = vst [vmem:[#allocation50_spill] sm:$0xff] %v6374_v19  ;;  %v3239_v7 = vmax.f32 %v6367_v12, %v6372_v0  ;;  %v3236_v28 = vmax.f32 %v3235_v36, %v6362_v57 }
 0x4ce   : > { %3237 = vmax.xlane.f32.xlu1 %v3236_v28  ;;  %v6379_v61 = vpop.f32.mrb[40].mxu0  ;;  %v6381_v43 = vpop.f32.mrb[40].mxu1  ;;  %v3240_v52 = vmax.f32 %v3239_v7, %v6369_v32 }
 0x4cf   : > { %7486 = vst [vmem:[#allocation51_spill] sm:$0xff] %v6379_v61  ;;  %7487 = vst [vmem:[#allocation52_spill] sm:$0xff] %v6381_v43  ;;  %v6384_v38 = vpop.f32.mrb[41].mxu0  ;;  %v6386_v53 = vpop.f32.mrb[41].mxu1 }
 0x4d0   : > { %7488 = vst [vmem:[#allocation53_spill] sm:$0xff] %v6384_v38  ;;  %7489 = vst [vmem:[#allocation54_spill] sm:$0xff] %v6386_v53  ;;  %v3244_v60 = vmax.f32 %v6379_v61, %v6384_v38  ;;  %v3241_v48 = vmax.f32 %v3240_v52, %v6374_v19 }
 0x4d2   : > { %3242 = vmax.xlane.f32.xlu1 %v3241_v48  ;;  %v6391_v0 = vpop.f32.mrb[42].mxu0  ;;  %v6393_v36 = vpop.f32.mrb[42].mxu1  ;;  %v3245_v28 = vmax.f32 %v3244_v60, %v6381_v43 }
 0x4d3   : > { %7490 = vst [vmem:[#allocation55_spill] sm:$0xff] %v6391_v0  ;;  %7491 = vst [vmem:[#allocation56_spill] sm:$0xff] %v6393_v36  ;;  %v6396_v12 = vpop.f32.mrb[43].mxu0  ;;  %v6398_v57 = vpop.f32.mrb[43].mxu1 }
 0x4d4   : > { %7492 = vst [vmem:[#allocation57_spill] sm:$0xff] %v6396_v12  ;;  %7493 = vst [vmem:[#allocation58_spill] sm:$0xff] %v6398_v57  ;;  %v3249_v7 = vmax.f32 %v6391_v0, %v6396_v12  ;;  %v3246_v32 = vmax.f32 %v3245_v28, %v6386_v53 }
 0x4d6   : > { %3247 = vmax.xlane.f32.xlu1 %v3246_v32  ;;  %v6403_v38 = vpop.f32.mrb[44].mxu0  ;;  %v6405_v52 = vpop.f32.mrb[44].mxu1  ;;  %v3250_v48 = vmax.f32 %v3249_v7, %v6393_v36 }
 0x4d7   : > { %7494 = vst [vmem:[#allocation59_spill] sm:$0xff] %v6403_v38  ;;  %7495 = vst [vmem:[#allocation60_spill] sm:$0xff] %v6405_v52  ;;  %v6408_v61 = vpop.f32.mrb[45].mxu0  ;;  %v6410_v19 = vpop.f32.mrb[45].mxu1 }
 0x4d8   : > { %7496 = vst [vmem:[#allocation61_spill] sm:$0xff] %v6408_v61  ;;  %7497 = vst [vmem:[#allocation62_spill] sm:$0xff] %v6410_v19  ;;  %v3254_v60 = vmax.f32 %v6403_v38, %v6408_v61  ;;  %v3251_v43 = vmax.f32 %v3250_v48, %v6398_v57 }
 0x4da   : > { %3252 = vmax.xlane.f32.xlu1 %v3251_v43  ;;  %v6415_v12 = vpop.f32.mrb[46].mxu0  ;;  %v6417_v28 = vpop.f32.mrb[46].mxu1  ;;  %v3255_v32 = vmax.f32 %v3254_v60, %v6405_v52 }
 0x4db   : > { %7498 = vst [vmem:[#allocation63_spill] sm:$0xff] %v6415_v12  ;;  %7499 = vst [vmem:[#allocation64_spill] sm:$0xff] %v6417_v28  ;;  %v6420_v0 = vpop.f32.mrb[47].mxu0  ;;  %v6422_v53 = vpop.f32.mrb[47].mxu1 }
 0x4dc   : > { %7500 = vst [vmem:[#allocation65_spill] sm:$0xff] %v6420_v0  ;;  %7501 = vst [vmem:[#allocation66_spill] sm:$0xff] %v6422_v53  ;;  %v3259_v7 = vmax.f32 %v6415_v12, %v6420_v0  ;;  %v3256_v36 = vmax.f32 %v3255_v32, %v6410_v19 }
 0x4de   : > { %3257 = vmax.xlane.f32.xlu1 %v3256_v36  ;;  %v6427_v61 = vpop.f32.mrb[48].mxu0  ;;  %v6429_v48 = vpop.f32.mrb[48].mxu1  ;;  %v3260_v43 = vmax.f32 %v3259_v7, %v6417_v28 }
 0x4df   : > { %7502 = vst [vmem:[#allocation67_spill] sm:$0xff] %v6427_v61  ;;  %7503 = vst [vmem:[#allocation68_spill] sm:$0xff] %v6429_v48  ;;  %v6432_v38 = vpop.f32.mrb[49].mxu0  ;;  %v6434_v57 = vpop.f32.mrb[49].mxu1 }
 0x4e0   : > { %7504 = vst [vmem:[#allocation69_spill] sm:$0xff] %v6432_v38  ;;  %7505 = vst [vmem:[#allocation70_spill] sm:$0xff] %v6434_v57  ;;  %v3264_v60 = vmax.f32 %v6427_v61, %v6432_v38  ;;  %v3261_v52 = vmax.f32 %v3260_v43, %v6422_v53 }
 0x4e2   : > { %3262 = vmax.xlane.f32.xlu1 %v3261_v52  ;;  %v6439_v0 = vpop.f32.mrb[50].mxu0  ;;  %v6441_v32 = vpop.f32.mrb[50].mxu1  ;;  %v3265_v36 = vmax.f32 %v3264_v60, %v6429_v48 }
 0x4e3   : > { %7506 = vst [vmem:[#allocation71_spill] sm:$0xff] %v6439_v0  ;;  %7507 = vst [vmem:[#allocation72_spill] sm:$0xff] %v6441_v32  ;;  %v6444_v12 = vpop.f32.mrb[51].mxu0  ;;  %v6446_v19 = vpop.f32.mrb[51].mxu1 }
 0x4e4   : > { %7508 = vst [vmem:[#allocation73_spill] sm:$0xff] %v6444_v12  ;;  %7509 = vst [vmem:[#allocation74_spill] sm:$0xff] %v6446_v19  ;;  %v3269_v7 = vmax.f32 %v6439_v0, %v6444_v12  ;;  %v3266_v28 = vmax.f32 %v3265_v36, %v6434_v57 }
 0x4e6   : > { %3267 = vmax.xlane.f32.xlu1 %v3266_v28  ;;  %v6451_v38 = vpop.f32.mrb[52].mxu0  ;;  %v6453_v43 = vpop.f32.mrb[52].mxu1  ;;  %v3270_v52 = vmax.f32 %v3269_v7, %v6441_v32 }
 0x4e7   : > { %7510 = vst [vmem:[#allocation75_spill] sm:$0xff] %v6451_v38  ;;  %7511 = vst [vmem:[#allocation76_spill] sm:$0xff] %v6453_v43  ;;  %v6456_v61 = vpop.f32.mrb[53].mxu0  ;;  %v6458_v53 = vpop.f32.mrb[53].mxu1 }
 0x4e8   : > { %7512 = vst [vmem:[#allocation77_spill] sm:$0xff] %v6456_v61  ;;  %7513 = vst [vmem:[#allocation78_spill] sm:$0xff] %v6458_v53  ;;  %v3274_v60 = vmax.f32 %v6451_v38, %v6456_v61  ;;  %v3271_v48 = vmax.f32 %v3270_v52, %v6446_v19 }
 0x4ea   : > { %3272 = vmax.xlane.f32.xlu1 %v3271_v48  ;;  %v6463_v12 = vpop.f32.mrb[54].mxu0  ;;  %v6465_v36 = vpop.f32.mrb[54].mxu1  ;;  %v3275_v28 = vmax.f32 %v3274_v60, %v6453_v43 }
 0x4eb   : > { %7514 = vst [vmem:[#allocation79_spill] sm:$0xff] %v6463_v12  ;;  %7515 = vst [vmem:[#allocation80_spill] sm:$0xff] %v6465_v36  ;;  %v6468_v0 = vpop.f32.mrb[55].mxu0  ;;  %v6470_v57 = vpop.f32.mrb[55].mxu1 }
 0x4ec   : > { %7516 = vst [vmem:[#allocation81_spill] sm:$0xff] %v6468_v0  ;;  %7517 = vst [vmem:[#allocation82_spill] sm:$0xff] %v6470_v57  ;;  %v3279_v7 = vmax.f32 %v6463_v12, %v6468_v0  ;;  %v3276_v32 = vmax.f32 %v3275_v28, %v6458_v53 }
 0x4ee   : > { %3277 = vmax.xlane.f32.xlu1 %v3276_v32  ;;  %v6475_v61 = vpop.f32.mrb[56].mxu0  ;;  %v6477_v52 = vpop.f32.mrb[56].mxu1  ;;  %v3280_v48 = vmax.f32 %v3279_v7, %v6465_v36 }
 0x4ef   : > { %7518 = vst [vmem:[#allocation83_spill] sm:$0xff] %v6475_v61  ;;  %7519 = vst [vmem:[#allocation84_spill] sm:$0xff] %v6477_v52  ;;  %v6480_v38 = vpop.f32.mrb[57].mxu0  ;;  %v6482_v19 = vpop.f32.mrb[57].mxu1 }
 0x4f0   : > { %7520 = vst [vmem:[#allocation85_spill] sm:$0xff] %v6480_v38  ;;  %7521 = vst [vmem:[#allocation86_spill] sm:$0xff] %v6482_v19  ;;  %v3284_v60 = vmax.f32 %v6475_v61, %v6480_v38  ;;  %v3281_v43 = vmax.f32 %v3280_v48, %v6470_v57 }
 0x4f2   : > { %3282 = vmax.xlane.f32.xlu1 %v3281_v43  ;;  %v6487_v0 = vpop.f32.mrb[58].mxu0  ;;  %v6489_v28 = vpop.f32.mrb[58].mxu1  ;;  %v3285_v32 = vmax.f32 %v3284_v60, %v6477_v52 }
 0x4f3   : > { %7522 = vst [vmem:[#allocation87_spill] sm:$0xff] %v6487_v0  ;;  %7523 = vst [vmem:[#allocation88_spill] sm:$0xff] %v6489_v28  ;;  %v6492_v12 = vpop.f32.mrb[59].mxu0  ;;  %v6494_v53 = vpop.f32.mrb[59].mxu1 }
 0x4f4   : > { %7524 = vst [vmem:[#allocation89_spill] sm:$0xff] %v6492_v12  ;;  %7525 = vst [vmem:[#allocation90_spill] sm:$0xff] %v6494_v53  ;;  %v3289_v7 = vmax.f32 %v6487_v0, %v6492_v12  ;;  %v3286_v36 = vmax.f32 %v3285_v32, %v6482_v19 }
 0x4f6   : > { %3287 = vmax.xlane.f32.xlu1 %v3286_v36  ;;  %v6499_v38 = vpop.f32.mrb[60].mxu0  ;;  %v6501_v48 = vpop.f32.mrb[60].mxu1  ;;  %v3290_v43 = vmax.f32 %v3289_v7, %v6489_v28 }
 0x4f7   : > { %7526 = vst [vmem:[#allocation91_spill] sm:$0xff] %v6499_v38  ;;  %7527 = vst [vmem:[#allocation92_spill] sm:$0xff] %v6501_v48  ;;  %v6504_v61 = vpop.f32.mrb[61].mxu0  ;;  %v6506_v57 = vpop.f32.mrb[61].mxu1 }
 0x4f8   : > { %7528 = vst [vmem:[#allocation93_spill] sm:$0xff] %v6504_v61  ;;  %v3294_v60 = vmax.f32 %v6499_v38, %v6504_v61  ;;  %v3291_v52 = vmax.f32 %v3290_v43, %v6494_v53 }
 0x4fa   : > { %3292 = vmax.xlane.f32.xlu1 %v3291_v52  ;;  %v6511_v12 = vpop.f32.mrb[62].mxu0  ;;  %v6513_v32 = vpop.f32.mrb[62].mxu1  ;;  %v3295_v36 = vmax.f32 %v3294_v60, %v6501_v48 }
 0x4fb   : > { %7529 = vst [vmem:[#allocation94_spill] sm:$0xff] %v6511_v12  ;;  %v6516_v0 = vpop.f32.mrb[63].mxu0  ;;  %v6518_v19 = vpop.f32.mrb[63].mxu1 }
 0x4fc   : > { %7530 = vst [vmem:[#allocation95_spill] sm:$0xff] %v6516_v0  ;;  %v3299_v7 = vmax.f32 %v6511_v12, %v6516_v0  ;;  %v3296_v28 = vmax.f32 %v3295_v36, %v6506_v57 }
 0x4fe   : > { %3297 = vmax.xlane.f32.xlu1 %v3296_v28  ;;  %v3300_v61 = vmax.f32 %v3299_v7, %v6513_v32 }
 0x500   : > { %v3301_v52 = vmax.f32 %v3300_v61, %v6518_v19 }
 0x502   : > { %3302 = vmax.xlane.f32.xlu1 %v3301_v52 }
 0x513   : > { %v3148_v43 = vpop.xlane.xlu1 %3147 }
 0x514   : > { %v3304_v38 = vsub.f32 %v6141_v1, %v3148_v43  ;;  %v3305_v60 = vsub.f32 %v6145_v3, %v3148_v43  ;;  %v3306_v48 = vsub.f32 %v6143_v2, %v3148_v43  ;;  %v3307_v53 = vsub.f32 %v6147_v4, %v3148_v43 }
 0x516   : > { %v3432_v44 = vmul.f32 1.442695, %v3304_v38  ;;  %v3434_v34 = vmul.f32 1.442695, %v3305_v60  ;;  %v3436_v0 = vmul.f32 1.442695, %v3306_v48 }
 0x517   : > { %v3438_v12 = vmul.f32 1.442695, %v3307_v53  ;;  %v3153_v36 = vpop.xlane.xlu1 %3152 }
 0x518   : > { %5059 = vpow2.f32 %v3432_v44  ;;  %v3308_v28 = vsub.f32 %v6151_v6, %v3153_v36  ;;  %v3309_v61 = vsub.f32 %v6156_v10, %v3153_v36  ;;  %v3310_v7 = vsub.f32 %v6153_v8, %v3153_v36 }
 0x519   : > { %5061 = vpow2.f32 %v3434_v34  ;;  %v3311_v1 = vsub.f32 %v6158_v31, %v3153_v36 }
 0x51a   : > { %5063 = vpow2.f32 %v3436_v0  ;;  %v3440_v3 = vmul.f32 1.442695, %v3308_v28  ;;  %v3442_v2 = vmul.f32 1.442695, %v3309_v61  ;;  %v3444_v52 = vmul.f32 1.442695, %v3310_v7 }
 0x51b   : > { %5065 = vpow2.f32 %v3438_v12  ;;  %v3446_v4 = vmul.f32 1.442695, %v3311_v1  ;;  %v3158_v38 = vpop.xlane.xlu1 %3157 }
 0x51c   : > { %5067 = vpow2.f32 %v3440_v3  ;;  %v3312_v53 = vsub.f32 %v6163_v40, %v3158_v38  ;;  %v3313_v44 = vsub.f32 %v6168_v51, %v3158_v38  ;;  %v3314_v6 = vsub.f32 %v6165_v41, %v3158_v38 }
 0x51d   : > { %5069 = vpow2.f32 %v3442_v2  ;;  %v3315_v8 = vsub.f32 %v6170_v54, %v3158_v38 }
 0x51e   : > { %5071 = vpow2.f32 %v3444_v52  ;;  %v3448_v10 = vmul.f32 1.442695, %v3312_v53  ;;  %v3450_v31 = vmul.f32 1.442695, %v3313_v44  ;;  %v3452_v34 = vmul.f32 1.442695, %v3314_v6 }
 0x51f   : > { %5073 = vpow2.f32 %v3446_v4  ;;  %v3454_v0 = vmul.f32 1.442695, %v3315_v8  ;;  %v3163_v48 = vpop.xlane.xlu1 %3162 }
 0x520   : > { %5075 = vpow2.f32 %v3448_v10  ;;  %v3316_v12 = vsub.f32 %v6175_v13, %v3163_v48  ;;  %v3317_v43 = vsub.f32 %v6180_v16, %v3163_v48  ;;  %v3318_v40 = vsub.f32 %v6177_v14, %v3163_v48 }
 0x521   : > { %5077 = vpow2.f32 %v3450_v31  ;;  %v3319_v41 = vsub.f32 %v6182_v17, %v3163_v48 }
 0x522   : > { %v6541_v51 = vpop.eup %5059  ;;  %5079 = vpow2.f32 %v3452_v34  ;;  %v3456_v54 = vmul.f32 1.442695, %v3316_v12  ;;  %v3458_v60 = vmul.f32 1.442695, %v3317_v43  ;;  %v3460_v36 = vmul.f32 1.442695, %v3318_v40 }
 0x523   : > { %v6543_v28 = vpop.eup %5061  ;;  %5081 = vpow2.f32 %v3454_v0  ;;  %v3462_v61 = vmul.f32 1.442695, %v3319_v41  ;;  %v3168_v7 = vpop.xlane.xlu1 %3167 }
 0x524   : > { %v6545_v1 = vpop.eup %5063  ;;  %5083 = vpow2.f32 %v3456_v54  ;;  %v3320_v13 = vsub.f32 %v6187_v20, %v3168_v7  ;;  %v3321_v14 = vsub.f32 %v6192_v22, %v3168_v7  ;;  %v3322_v16 = vsub.f32 %v6189_v21, %v3168_v7 }
 0x525   : > { %v6550_v17 = vpop.eup %5065  ;;  %5085 = vpow2.f32 %v3458_v60  ;;  %v3323_v3 = vsub.f32 %v6194_v23, %v3168_v7  ;;  %v3688_v2 = vadd.f32 %v6543_v28, %v6541_v51 }
 0x526   : > { %v6555_v52 = vpop.eup %5067  ;;  %5087 = vpow2.f32 %v3460_v36  ;;  %v3464_v4 = vmul.f32 1.442695, %v3320_v13  ;;  %v3466_v38 = vmul.f32 1.442695, %v3321_v14  ;;  %v3468_v53 = vmul.f32 1.442695, %v3322_v16 }
 0x527   : > { %v6557_v44 = vpop.eup %5069  ;;  %5089 = vpow2.f32 %v3462_v61  ;;  %v3470_v20 = vmul.f32 1.442695, %v3323_v3  ;;  %v3173_v22 = vpop.xlane.xlu1 %3172  ;;  %v3689_v21 = vadd.f32 %v6545_v1, %v3688_v2 }
 0x528   : > { %v6560_v6 = vpop.eup %5071  ;;  %5091 = vpow2.f32 %v3464_v4  ;;  %v3324_v23 = vsub.f32 %v6199_v26, %v3173_v22  ;;  %v3325_v8 = vsub.f32 %v6204_v29, %v3173_v22  ;;  %v3326_v10 = vsub.f32 %v6201_v27, %v3173_v22 }
 0x529   : > { %v6565_v31 = vpop.eup %5073  ;;  %5093 = vpow2.f32 %v3466_v38  ;;  %v3327_v34 = vsub.f32 %v6206_v30, %v3173_v22  ;;  %v3690_v0 = vadd.f32 %v6550_v17, %v3689_v21  ;;  %v3693_v48 = vadd.f32 %v6557_v44, %v6555_v52 }
 0x52a   : > { %v6571_v12 = vpop.eup %5075  ;;  %5095 = vpow2.f32 %v3468_v53  ;;  %v3472_v43 = vmul.f32 1.442695, %v3324_v23  ;;  %v3474_v40 = vmul.f32 1.442695, %v3325_v8  ;;  %v3476_v26 = vmul.f32 1.442695, %v3326_v10 }
 0x52b   : > { %v6573_v41 = vpop.eup %5077  ;;  %5097 = vpow2.f32 %v3470_v20  ;;  %v3478_v27 = vmul.f32 1.442695, %v3327_v34  ;;  %3691 = vadd.xlane.f32.xlu1 %v3690_v0  ;;  %v3178_v29 = vpop.xlane.xlu1 %3177  ;;  %v3694_v54 = vadd.f32 %v6560_v6, %v3693_v48 }
 0x52c   : > { %v6576_v30 = vpop.eup %5079  ;;  %5099 = vpow2.f32 %v3472_v43  ;;  %v3328_v60 = vsub.f32 %v6211_v35, %v3178_v29  ;;  %v3329_v36 = vsub.f32 %v6216_v39, %v3178_v29  ;;  %v3330_v61 = vsub.f32 %v6213_v37, %v3178_v29 }
 0x52d   : > { %v6581_v7 = vpop.eup %5081  ;;  %5101 = vpow2.f32 %v3474_v40  ;;  %v3331_v13 = vsub.f32 %v6218_v42, %v3178_v29  ;;  %v3695_v14 = vadd.f32 %v6565_v31, %v3694_v54  ;;  %v3698_v16 = vadd.f32 %v6573_v41, %v6571_v12 }
 0x52e   : > { %v6587_v3 = vpop.eup %5083  ;;  %5103 = vpow2.f32 %v3476_v26  ;;  %v3480_v2 = vmul.f32 1.442695, %v3328_v60  ;;  %v3482_v4 = vmul.f32 1.442695, %v3329_v36  ;;  %v3484_v35 = vmul.f32 1.442695, %v3330_v61 }
 0x52f   : > { %v6589_v38 = vpop.eup %5085  ;;  %5105 = vpow2.f32 %v3478_v27  ;;  %v3486_v37 = vmul.f32 1.442695, %v3331_v13  ;;  %3696 = vadd.xlane.f32.xlu1 %v3695_v14  ;;  %v3183_v39 = vpop.xlane.xlu1 %3182  ;;  %v3699_v53 = vadd.f32 %v6576_v30, %v3698_v16 }
 0x530   : > { %v6592_v42 = vpop.eup %5087  ;;  %5107 = vpow2.f32 %v3480_v2  ;;  %v3332_v20 = vsub.f32 %v6223_v46, %v3183_v39  ;;  %v3333_v22 = vsub.f32 %v6228_v49, %v3183_v39  ;;  %v3334_v21 = vsub.f32 %v6225_v47, %v3183_v39 }
 0x531   : > { %v6597_v23 = vpop.eup %5089  ;;  %5109 = vpow2.f32 %v3482_v4  ;;  %v3335_v8 = vsub.f32 %v6230_v50, %v3183_v39  ;;  %v3700_v10 = vadd.f32 %v6581_v7, %v3699_v53  ;;  %v3703_v34 = vadd.f32 %v6589_v38, %v6587_v3 }
 0x532   : > { %v6603_v0 = vpop.eup %5091  ;;  %5111 = vpow2.f32 %v3484_v35  ;;  %v3488_v48 = vmul.f32 1.442695, %v3332_v20  ;;  %v3490_v43 = vmul.f32 1.442695, %v3333_v22  ;;  %v3492_v46 = vmul.f32 1.442695, %v3334_v21 }
 0x533   : > { %v6605_v40 = vpop.eup %5093  ;;  %5113 = vpow2.f32 %v3486_v37  ;;  %v3494_v47 = vmul.f32 1.442695, %v3335_v8  ;;  %3701 = vadd.xlane.f32.xlu1 %v3700_v10  ;;  %v3188_v49 = vpop.xlane.xlu1 %3187  ;;  %v3704_v26 = vadd.f32 %v6592_v42, %v3703_v34 }
 0x534   : > { %v6608_v50 = vpop.eup %5095  ;;  %5115 = vpow2.f32 %v3488_v48  ;;  %v3336_v27 = vsub.f32 %v6235_v55, %v3188_v49  ;;  %v3337_v29 = vsub.f32 %v6240_v58, %v3188_v49  ;;  %v3338_v54 = vsub.f32 %v6237_v56, %v3188_v49 }
 0x535   : > { %v6613_v60 = vpop.eup %5097  ;;  %5117 = vpow2.f32 %v3490_v43  ;;  %v3339_v36 = vsub.f32 %v6242_v59, %v3188_v49  ;;  %v3705_v61 = vadd.f32 %v6597_v23, %v3704_v26  ;;  %v3708_v13 = vadd.f32 %v6605_v40, %v6603_v0 }
 0x536   : > { %v6619_v14 = vpop.eup %5099  ;;  %5119 = vpow2.f32 %v3492_v46  ;;  %v3496_v16 = vmul.f32 1.442695, %v3336_v27  ;;  %v3498_v2 = vmul.f32 1.442695, %v3337_v29  ;;  %v3500_v55 = vmul.f32 1.442695, %v3338_v54 }
 0x537   : > { %v6621_v4 = vpop.eup %5101  ;;  %5121 = vpow2.f32 %v3494_v47  ;;  %v3502_v56 = vmul.f32 1.442695, %v3339_v36  ;;  %3706 = vadd.xlane.f32.xlu1 %v3705_v61  ;;  %v3193_v58 = vpop.xlane.xlu1 %3192  ;;  %v3709_v35 = vadd.f32 %v6608_v50, %v3708_v13 }
 0x538   : > { %v6624_v59 = vpop.eup %5103  ;;  %5123 = vpow2.f32 %v3496_v16  ;;  %v3340_v37 = vsub.f32 %v6247_v62, %v3193_v58  ;;  %v3341_v39 = vsub.f32 %v6252_v5, %v3193_v58  ;;  %v3342_v53 = vsub.f32 %v6249_v63, %v3193_v58 }
 0x539   : > { %v6629_v20 = vpop.eup %5105  ;;  %5125 = vpow2.f32 %v3498_v2  ;;  %v3343_v22 = vsub.f32 %v6254_v9, %v3193_v58  ;;  %v3710_v21 = vadd.f32 %v6613_v60, %v3709_v35  ;;  %v3713_v8 = vadd.f32 %v6621_v4, %v6619_v14 }
 0x53a   : > { %v6635_v10 = vpop.eup %5107  ;;  %5127 = vpow2.f32 %v3500_v55  ;;  %v3504_v34 = vmul.f32 1.442695, %v3340_v37  ;;  %v3506_v48 = vmul.f32 1.442695, %v3341_v39  ;;  %v3508_v62 = vmul.f32 1.442695, %v3342_v53 }
 0x53b   : > { %v6637_v43 = vpop.eup %5109  ;;  %5129 = vpow2.f32 %v3502_v56  ;;  %v3510_v63 = vmul.f32 1.442695, %v3343_v22  ;;  %3711 = vadd.xlane.f32.xlu1 %v3710_v21  ;;  %v3198_v5 = vpop.xlane.xlu1 %3197  ;;  %v3714_v46 = vadd.f32 %v6624_v59, %v3713_v8  ;;  %v7531_v39 = vld [vmem:[#allocation18_spill] sm:$0xff] }
 0x53c   : > { %v6640_v9 = vpop.eup %5111  ;;  %5131 = vpow2.f32 %v3504_v34  ;;  %v3344_v47 = vsub.f32 %v6259_v45, %v3198_v5  ;;  %v3345_v49 = vsub.f32 %v6264_v15, %v3198_v5  ;;  %v3346_v26 = vsub.f32 %v6261_v11, %v3198_v5 }
 0x53d   : > { %v6645_v27 = vpop.eup %5113  ;;  %5133 = vpow2.f32 %v3506_v48  ;;  %v3347_v29 = vsub.f32 %v6266_v18, %v3198_v5  ;;  %v3715_v54 = vadd.f32 %v6629_v20, %v3714_v46  ;;  %v3718_v36 = vadd.f32 %v6637_v43, %v6635_v10  ;;  %v7532_v46 = vld [vmem:[#allocation19_spill] sm:$0xff] }
 0x53e   : > { %v6651_v61 = vpop.eup %5115  ;;  %5135 = vpow2.f32 %v3508_v62  ;;  %v3512_v13 = vmul.f32 1.442695, %v3344_v47  ;;  %v3514_v16 = vmul.f32 1.442695, %v3345_v49  ;;  %v3516_v45 = vmul.f32 1.442695, %v3346_v26 }
 0x53f   : > { %v6653_v2 = vpop.eup %5117  ;;  %5137 = vpow2.f32 %v3510_v63  ;;  %v3518_v11 = vmul.f32 1.442695, %v3347_v29  ;;  %3716 = vadd.xlane.f32.xlu1 %v3715_v54  ;;  %v3203_v15 = vpop.xlane.xlu1 %3202  ;;  %v3719_v55 = vadd.f32 %v6640_v9, %v3718_v36  ;;  %v7533_v49 = vld [vmem:[#allocation21_spill] sm:$0xff]  ;;  %v7534_v29 = vld [vmem:[#allocation20_spill] sm:$0xff] }
 0x540   : > { %v6656_v18 = vpop.eup %5119  ;;  %5139 = vpow2.f32 %v3512_v13  ;;  %v3348_v56 = vsub.f32 %v6271_v24, %v3203_v15  ;;  %v3349_v58 = vsub.f32 %v6276_v33, %v3203_v15  ;;  %v3350_v35 = vsub.f32 %v6273_v25, %v3203_v15  ;;  %v7535_v13 = vld [vmem:[#allocation22_spill] sm:$0xff] }
 0x541   : > { %v6661_v37 = vpop.eup %5121  ;;  %5141 = vpow2.f32 %v3514_v16  ;;  %v3351_v53 = vsub.f32 %v7531_v39, %v3203_v15  ;;  %v3720_v22 = vadd.f32 %v6645_v27, %v3719_v55  ;;  %v3723_v21 = vadd.f32 %v6653_v2, %v6651_v61 }
 0x542   : > { %v6667_v8 = vpop.eup %5123  ;;  %5143 = vpow2.f32 %v3516_v45  ;;  %v3520_v34 = vmul.f32 1.442695, %v3348_v56  ;;  %v3522_v48 = vmul.f32 1.442695, %v3349_v58  ;;  %v3524_v24 = vmul.f32 1.442695, %v3350_v35 }
 0x543   : > { %v6669_v62 = vpop.eup %5125  ;;  %5145 = vpow2.f32 %v3518_v11  ;;  %v3526_v25 = vmul.f32 1.442695, %v3351_v53  ;;  %3721 = vadd.xlane.f32.xlu1 %v3720_v22  ;;  %v3208_v33 = vpop.xlane.xlu1 %3207  ;;  %v3724_v63 = vadd.f32 %v6656_v18, %v3723_v21 }
 0x544   : > { %v6672_v5 = vpop.eup %5127  ;;  %5147 = vpow2.f32 %v3520_v34  ;;  %v3352_v47 = vsub.f32 %v7532_v46, %v3208_v33  ;;  %v3353_v26 = vsub.f32 %v7533_v49, %v3208_v33  ;;  %v3354_v54 = vsub.f32 %v7534_v29, %v3208_v33  ;;  %v7538_v34 = vld [vmem:[#allocation23_spill] sm:$0xff]  ;;  %v7540_v46 = vld [vmem:[#allocation24_spill] sm:$0xff]  ;;  %v7542_v49 = vld [vmem:[#allocation26_spill] sm:$0xff] }
 0x545   : > { %v6677_v36 = vpop.eup %5129  ;;  %5149 = vpow2.f32 %v3522_v48  ;;  %v3355_v16 = vsub.f32 %v7535_v13, %v3208_v33  ;;  %v3725_v45 = vadd.f32 %v6661_v37, %v3724_v63  ;;  %v3728_v11 = vadd.f32 %v6669_v62, %v6667_v8  ;;  %v7539_v33 = vld [vmem:[#allocation25_spill] sm:$0xff] }
 0x546   : > { %v6683_v15 = vpop.eup %5131  ;;  %5151 = vpow2.f32 %v3524_v24  ;;  %v3528_v55 = vmul.f32 1.442695, %v3352_v47  ;;  %v3530_v56 = vmul.f32 1.442695, %v3353_v26  ;;  %v3532_v58 = vmul.f32 1.442695, %v3354_v54 }
 0x547   : > { %7536 = vst [vmem:[#allocation18_spill] sm:$0xff] %v6683_v15  ;;  %v6685_v35 = vpop.eup %5133  ;;  %5153 = vpow2.f32 %v3526_v25  ;;  %v3534_v39 = vmul.f32 1.442695, %v3355_v16  ;;  %3726 = vadd.xlane.f32.xlu1 %v3725_v45  ;;  %v3213_v53 = vpop.xlane.xlu1 %3212  ;;  %v3729_v22 = vadd.f32 %v6672_v5, %v3728_v11 }
 0x548   : > { %v6688_v21 = vpop.eup %5135  ;;  %5155 = vpow2.f32 %v3528_v55  ;;  %v3356_v48 = vsub.f32 %v7538_v34, %v3213_v53  ;;  %v3357_v63 = vsub.f32 %v7539_v33, %v3213_v53  ;;  %v3358_v24 = vsub.f32 %v7540_v46, %v3213_v53  ;;  %v7547_v46 = vld [vmem:[#allocation29_spill] sm:$0xff] }
 0x549   : > { %7537 = vst [vmem:[#allocation19_spill] sm:$0xff] %v6688_v21  ;;  %v6693_v47 = vpop.eup %5137  ;;  %5157 = vpow2.f32 %v3530_v56  ;;  %v3359_v26 = vsub.f32 %v7542_v49, %v3213_v53  ;;  %v3730_v25 = vadd.f32 %v6677_v36, %v3729_v22  ;;  %v3733_v29 = vadd.f32 %v6685_v35, %v6683_v15  ;;  %v7546_v22 = vld [vmem:[#allocation27_spill] sm:$0xff]  ;;  %v7548_v15 = vld [vmem:[#allocation28_spill] sm:$0xff] }
 0x54a   : > { %7541 = vst [vmem:[#allocation21_spill] sm:$0xff] %v6693_v47  ;;  %v6699_v54 = vpop.eup %5139  ;;  %5159 = vpow2.f32 %v3532_v58  ;;  %v3536_v13 = vmul.f32 1.442695, %v3356_v48  ;;  %v3538_v16 = vmul.f32 1.442695, %v3357_v63  ;;  %v7550_v63 = vld [vmem:[#allocation30_spill] sm:$0xff] }
 0x54b   : > { %7543 = vst [vmem:[#allocation20_spill] sm:$0xff] %v6699_v54  ;;  %v3540_v45 = vmul.f32 1.442695, %v3358_v24  ;;  %v6701_v11 = vpop.eup %5141  ;;  %5161 = vpow2.f32 %v3534_v39  ;;  %v3542_v55 = vmul.f32 1.442695, %v3359_v26  ;;  %3731 = vadd.xlane.f32.xlu1 %v3730_v25  ;;  %v3218_v34 = vpop.xlane.xlu1 %3217  ;;  %v3734_v56 = vadd.f32 %v6688_v21, %v3733_v29 }
 0x54c   : > { %7544 = vst [vmem:[#allocation22_spill] sm:$0xff] %v6701_v11  ;;  %v6704_v53 = vpop.eup %5143  ;;  %5163 = vpow2.f32 %v3536_v13  ;;  %v3360_v33 = vsub.f32 %v7546_v22, %v3218_v34  ;;  %v3361_v49 = vsub.f32 %v7547_v46, %v3218_v34  ;;  %v3362_v58 = vsub.f32 %v7548_v15, %v3218_v34 }
 0x54d   : > { %7545 = vst [vmem:[#allocation23_spill] sm:$0xff] %v6704_v53  ;;  %v6709_v48 = vpop.eup %5145  ;;  %5165 = vpow2.f32 %v3538_v16  ;;  %v3363_v24 = vsub.f32 %v7550_v63, %v3218_v34  ;;  %v3735_v39 = vadd.f32 %v6693_v47, %v3734_v56  ;;  %v3738_v26 = vadd.f32 %v6701_v11, %v6699_v54  ;;  %v7554_v56 = vld [vmem:[#allocation31_spill] sm:$0xff]  ;;  %v7555_v54 = vld [vmem:[#allocation33_spill] sm:$0xff]  ;;  %v7556_v47 = vld [vmem:[#allocation32_spill] sm:$0xff] }
 0x54e   : > { %7549 = vst [vmem:[#allocation25_spill] sm:$0xff] %v6709_v48  ;;  %v6715_v25 = vpop.eup %5147  ;;  %5167 = vpow2.f32 %v3540_v45  ;;  %v3544_v29 = vmul.f32 1.442695, %v3360_v33  ;;  %v3546_v13 = vmul.f32 1.442695, %v3361_v49  ;;  %v7558_v49 = vld [vmem:[#allocation34_spill] sm:$0xff] }
 0x54f   : > { %7551 = vst [vmem:[#allocation24_spill] sm:$0xff] %v6715_v25  ;;  %v3548_v22 = vmul.f32 1.442695, %v3362_v58  ;;  %v6717_v21 = vpop.eup %5149  ;;  %5169 = vpow2.f32 %v3542_v55  ;;  %v3550_v15 = vmul.f32 1.442695, %v3363_v24  ;;  %3736 = vadd.xlane.f32.xlu1 %v3735_v39  ;;  %v3223_v46 = vpop.xlane.xlu1 %3222  ;;  %v3739_v16 = vadd.f32 %v6704_v53, %v3738_v26 }
 0x550   : > { %7552 = vst [vmem:[#allocation26_spill] sm:$0xff] %v6717_v21  ;;  %v6720_v34 = vpop.eup %5151  ;;  %5171 = vpow2.f32 %v3544_v29  ;;  %v3364_v63 = vsub.f32 %v7554_v56, %v3223_v46  ;;  %v3365_v11 = vsub.f32 %v7555_v54, %v3223_v46  ;;  %v3366_v45 = vsub.f32 %v7556_v47, %v3223_v46 }
 0x551   : > { %7553 = vst [vmem:[#allocation27_spill] sm:$0xff] %v6720_v34  ;;  %v6725_v33 = vpop.eup %5153  ;;  %5173 = vpow2.f32 %v3546_v13  ;;  %v3367_v58 = vsub.f32 %v7558_v49, %v3223_v46  ;;  %v3740_v55 = vadd.f32 %v6709_v48, %v3739_v16  ;;  %v3743_v24 = vadd.f32 %v6717_v21, %v6715_v25  ;;  %v7562_v16 = vld [vmem:[#allocation35_spill] sm:$0xff]  ;;  %v7563_v25 = vld [vmem:[#allocation37_spill] sm:$0xff]  ;;  %v7564_v48 = vld [vmem:[#allocation36_spill] sm:$0xff] }
 0x552   : > { %7557 = vst [vmem:[#allocation29_spill] sm:$0xff] %v6725_v33  ;;  %v6731_v39 = vpop.eup %5155  ;;  %5175 = vpow2.f32 %v3548_v22  ;;  %v3552_v26 = vmul.f32 1.442695, %v3364_v63  ;;  %v3554_v29 = vmul.f32 1.442695, %v3365_v11  ;;  %v7566_v11 = vld [vmem:[#allocation38_spill] sm:$0xff] }
 0x553   : > { %7559 = vst [vmem:[#allocation28_spill] sm:$0xff] %v6731_v39  ;;  %v3556_v56 = vmul.f32 1.442695, %v3366_v45  ;;  %v6733_v53 = vpop.eup %5157  ;;  %5177 = vpow2.f32 %v3550_v15  ;;  %v3558_v47 = vmul.f32 1.442695, %v3367_v58  ;;  %3741 = vadd.xlane.f32.xlu1 %v3740_v55  ;;  %v3228_v54 = vpop.xlane.xlu1 %3227  ;;  %v3744_v13 = vadd.f32 %v6720_v34, %v3743_v24 }
 0x554   : > { %7560 = vst [vmem:[#allocation30_spill] sm:$0xff] %v6733_v53  ;;  %v6736_v46 = vpop.eup %5159  ;;  %5179 = vpow2.f32 %v3552_v26  ;;  %v3368_v49 = vsub.f32 %v7562_v16, %v3228_v54  ;;  %v3369_v21 = vsub.f32 %v7563_v25, %v3228_v54  ;;  %v3370_v22 = vsub.f32 %v7564_v48, %v3228_v54 }
 0x555   : > { %7561 = vst [vmem:[#allocation31_spill] sm:$0xff] %v6736_v46  ;;  %v6741_v63 = vpop.eup %5161  ;;  %5181 = vpow2.f32 %v3554_v29  ;;  %v3371_v45 = vsub.f32 %v7566_v11, %v3228_v54  ;;  %v3745_v15 = vadd.f32 %v6725_v33, %v3744_v13  ;;  %v3748_v58 = vadd.f32 %v6733_v53, %v6731_v39  ;;  %v7570_v13 = vld [vmem:[#allocation39_spill] sm:$0xff]  ;;  %v7571_v39 = vld [vmem:[#allocation41_spill] sm:$0xff]  ;;  %v7572_v33 = vld [vmem:[#allocation40_spill] sm:$0xff] }
 0x556   : > { %7565 = vst [vmem:[#allocation33_spill] sm:$0xff] %v6741_v63  ;;  %v6747_v55 = vpop.eup %5163  ;;  %5183 = vpow2.f32 %v3556_v56  ;;  %v3560_v24 = vmul.f32 1.442695, %v3368_v49  ;;  %v3562_v26 = vmul.f32 1.442695, %v3369_v21  ;;  %v7574_v21 = vld [vmem:[#allocation42_spill] sm:$0xff] }
 0x557   : > { %7567 = vst [vmem:[#allocation32_spill] sm:$0xff] %v6747_v55  ;;  %v3564_v16 = vmul.f32 1.442695, %v3370_v22  ;;  %v6749_v34 = vpop.eup %5165  ;;  %5185 = vpow2.f32 %v3558_v47  ;;  %v3566_v48 = vmul.f32 1.442695, %v3371_v45  ;;  %3746 = vadd.xlane.f32.xlu1 %v3745_v15  ;;  %v3233_v25 = vpop.xlane.xlu0 %3232  ;;  %v3749_v29 = vadd.f32 %v6736_v46, %v3748_v58 }
 0x558   : > { %7568 = vst [vmem:[#allocation34_spill] sm:$0xff] %v6749_v34  ;;  %v6752_v54 = vpop.eup %5167  ;;  %5187 = vpow2.f32 %v3560_v24  ;;  %v3372_v11 = vsub.f32 %v7570_v13, %v3233_v25  ;;  %v3373_v53 = vsub.f32 %v7571_v39, %v3233_v25  ;;  %v3374_v56 = vsub.f32 %v7572_v33, %v3233_v25 }
 0x559   : > { %7569 = vst [vmem:[#allocation35_spill] sm:$0xff] %v6752_v54  ;;  %v6757_v49 = vpop.eup %5169  ;;  %5189 = vpow2.f32 %v3562_v26  ;;  %v3375_v22 = vsub.f32 %v7574_v21, %v3233_v25  ;;  %v3750_v47 = vadd.f32 %v6741_v63, %v3749_v29  ;;  %v3753_v45 = vadd.f32 %v6749_v34, %v6747_v55  ;;  %v7578_v29 = vld [vmem:[#allocation43_spill] sm:$0xff]  ;;  %v7579_v55 = vld [vmem:[#allocation45_spill] sm:$0xff]  ;;  %v7580_v63 = vld [vmem:[#allocation44_spill] sm:$0xff] }
 0x55a   : > { %7573 = vst [vmem:[#allocation37_spill] sm:$0xff] %v6757_v49  ;;  %v6763_v15 = vpop.eup %5171  ;;  %5191 = vpow2.f32 %v3564_v16  ;;  %v3568_v58 = vmul.f32 1.442695, %v3372_v11  ;;  %v3570_v24 = vmul.f32 1.442695, %v3373_v53  ;;  %v7582_v53 = vld [vmem:[#allocation46_spill] sm:$0xff] }
 0x55b   : > { %7575 = vst [vmem:[#allocation36_spill] sm:$0xff] %v6763_v15  ;;  %v3572_v13 = vmul.f32 1.442695, %v3374_v56  ;;  %v6765_v46 = vpop.eup %5173  ;;  %5193 = vpow2.f32 %v3566_v48  ;;  %v3574_v33 = vmul.f32 1.442695, %v3375_v22  ;;  %3751 = vadd.xlane.f32.xlu0 %v3750_v47  ;;  %v3238_v39 = vpop.xlane.xlu1 %3237  ;;  %v3754_v26 = vadd.f32 %v6752_v54, %v3753_v45 }
 0x55c   : > { %7576 = vst [vmem:[#allocation38_spill] sm:$0xff] %v6765_v46  ;;  %v6768_v25 = vpop.eup %5175  ;;  %5195 = vpow2.f32 %v3568_v58  ;;  %v3376_v21 = vsub.f32 %v7578_v29, %v3238_v39  ;;  %v3377_v34 = vsub.f32 %v7579_v55, %v3238_v39  ;;  %v3378_v16 = vsub.f32 %v7580_v63, %v3238_v39 }
 0x55d   : > { %7577 = vst [vmem:[#allocation39_spill] sm:$0xff] %v6768_v25  ;;  %v6773_v11 = vpop.eup %5177  ;;  %5197 = vpow2.f32 %v3570_v24  ;;  %v3379_v56 = vsub.f32 %v7582_v53, %v3238_v39  ;;  %v3755_v48 = vadd.f32 %v6757_v49, %v3754_v26  ;;  %v3758_v22 = vadd.f32 %v6765_v46, %v6763_v15  ;;  %v7586_v26 = vld [vmem:[#allocation47_spill] sm:$0xff]  ;;  %v7587_v15 = vld [vmem:[#allocation49_spill] sm:$0xff]  ;;  %v7588_v49 = vld [vmem:[#allocation48_spill] sm:$0xff] }
 0x55e   : > { %7581 = vst [vmem:[#allocation41_spill] sm:$0xff] %v6773_v11  ;;  %v6779_v47 = vpop.eup %5179  ;;  %5199 = vpow2.f32 %v3572_v13  ;;  %v3576_v45 = vmul.f32 1.442695, %v3376_v21  ;;  %v3578_v58 = vmul.f32 1.442695, %v3377_v34  ;;  %v7590_v34 = vld [vmem:[#allocation50_spill] sm:$0xff] }
 0x55f   : > { %7583 = vst [vmem:[#allocation40_spill] sm:$0xff] %v6779_v47  ;;  %v3580_v29 = vmul.f32 1.442695, %v3378_v16  ;;  %v6781_v54 = vpop.eup %5181  ;;  %5201 = vpow2.f32 %v3574_v33  ;;  %v3582_v63 = vmul.f32 1.442695, %v3379_v56  ;;  %3756 = vadd.xlane.f32.xlu1 %v3755_v48  ;;  %v3243_v55 = vpop.xlane.xlu1 %3242  ;;  %v3759_v24 = vadd.f32 %v6768_v25, %v3758_v22 }
 0x560   : > { %7584 = vst [vmem:[#allocation42_spill] sm:$0xff] %v6781_v54  ;;  %v6784_v39 = vpop.eup %5183  ;;  %5203 = vpow2.f32 %v3576_v45  ;;  %v3380_v53 = vsub.f32 %v7586_v26, %v3243_v55  ;;  %v3381_v46 = vsub.f32 %v7587_v15, %v3243_v55  ;;  %v3382_v13 = vsub.f32 %v7588_v49, %v3243_v55 }
 0x561   : > { %7585 = vst [vmem:[#allocation43_spill] sm:$0xff] %v6784_v39  ;;  %v6789_v21 = vpop.eup %5185  ;;  %5205 = vpow2.f32 %v3578_v58  ;;  %v3383_v16 = vsub.f32 %v7590_v34, %v3243_v55  ;;  %v3760_v33 = vadd.f32 %v6773_v11, %v3759_v24  ;;  %v3763_v56 = vadd.f32 %v6781_v54, %v6779_v47  ;;  %v7594_v24 = vld [vmem:[#allocation51_spill] sm:$0xff]  ;;  %v7595_v47 = vld [vmem:[#allocation53_spill] sm:$0xff]  ;;  %v7596_v11 = vld [vmem:[#allocation52_spill] sm:$0xff] }
 0x562   : > { %7589 = vst [vmem:[#allocation45_spill] sm:$0xff] %v6789_v21  ;;  %v6795_v48 = vpop.eup %5187  ;;  %5207 = vpow2.f32 %v3580_v29  ;;  %v3584_v22 = vmul.f32 1.442695, %v3380_v53  ;;  %v3586_v45 = vmul.f32 1.442695, %v3381_v46  ;;  %v7598_v46 = vld [vmem:[#allocation54_spill] sm:$0xff] }
 0x563   : > { %7591 = vst [vmem:[#allocation44_spill] sm:$0xff] %v6795_v48  ;;  %v3588_v26 = vmul.f32 1.442695, %v3382_v13  ;;  %v6797_v25 = vpop.eup %5189  ;;  %5209 = vpow2.f32 %v3582_v63  ;;  %v3590_v49 = vmul.f32 1.442695, %v3383_v16  ;;  %3761 = vadd.xlane.f32.xlu0 %v3760_v33  ;;  %v3248_v15 = vpop.xlane.xlu1 %3247  ;;  %v3764_v58 = vadd.f32 %v6784_v39, %v3763_v56 }
 0x564   : > { %7592 = vst [vmem:[#allocation46_spill] sm:$0xff] %v6797_v25  ;;  %v6800_v55 = vpop.eup %5191  ;;  %5211 = vpow2.f32 %v3584_v22  ;;  %v3384_v34 = vsub.f32 %v7594_v24, %v3248_v15  ;;  %v3385_v54 = vsub.f32 %v7595_v47, %v3248_v15  ;;  %v3386_v29 = vsub.f32 %v7596_v11, %v3248_v15 }
 0x565   : > { %7593 = vst [vmem:[#allocation47_spill] sm:$0xff] %v6800_v55  ;;  %v6805_v53 = vpop.eup %5193  ;;  %5213 = vpow2.f32 %v3586_v45  ;;  %v3387_v13 = vsub.f32 %v7598_v46, %v3248_v15  ;;  %v3765_v63 = vadd.f32 %v6789_v21, %v3764_v58  ;;  %v3768_v16 = vadd.f32 %v6797_v25, %v6795_v48  ;;  %v7602_v58 = vld [vmem:[#allocation55_spill] sm:$0xff]  ;;  %v7603_v48 = vld [vmem:[#allocation57_spill] sm:$0xff]  ;;  %v7604_v21 = vld [vmem:[#allocation56_spill] sm:$0xff] }
 0x566   : > { %7597 = vst [vmem:[#allocation49_spill] sm:$0xff] %v6805_v53  ;;  %v6811_v33 = vpop.eup %5195  ;;  %5215 = vpow2.f32 %v3588_v26  ;;  %v3592_v56 = vmul.f32 1.442695, %v3384_v34  ;;  %v3594_v22 = vmul.f32 1.442695, %v3385_v54  ;;  %v7606_v54 = vld [vmem:[#allocation58_spill] sm:$0xff] }
 0x567   : > { %7599 = vst [vmem:[#allocation48_spill] sm:$0xff] %v6811_v33  ;;  %v3596_v24 = vmul.f32 1.442695, %v3386_v29  ;;  %v6813_v39 = vpop.eup %5197  ;;  %5217 = vpow2.f32 %v3590_v49  ;;  %v3598_v11 = vmul.f32 1.442695, %v3387_v13  ;;  %3766 = vadd.xlane.f32.xlu1 %v3765_v63  ;;  %v3253_v47 = vpop.xlane.xlu1 %3252  ;;  %v3769_v45 = vadd.f32 %v6800_v55, %v3768_v16 }
 0x568   : > { %7600 = vst [vmem:[#allocation50_spill] sm:$0xff] %v6813_v39  ;;  %v6816_v15 = vpop.eup %5199  ;;  %5219 = vpow2.f32 %v3592_v56  ;;  %v3388_v46 = vsub.f32 %v7602_v58, %v3253_v47  ;;  %v3389_v25 = vsub.f32 %v7603_v48, %v3253_v47  ;;  %v3390_v26 = vsub.f32 %v7604_v21, %v3253_v47 }
 0x569   : > { %7601 = vst [vmem:[#allocation51_spill] sm:$0xff] %v6816_v15  ;;  %v6821_v34 = vpop.eup %5201  ;;  %5221 = vpow2.f32 %v3594_v22  ;;  %v3391_v29 = vsub.f32 %v7606_v54, %v3253_v47  ;;  %v3770_v49 = vadd.f32 %v6805_v53, %v3769_v45  ;;  %v3773_v13 = vadd.f32 %v6813_v39, %v6811_v33  ;;  %v7610_v45 = vld [vmem:[#allocation59_spill] sm:$0xff]  ;;  %v7611_v33 = vld [vmem:[#allocation61_spill] sm:$0xff]  ;;  %v7612_v53 = vld [vmem:[#allocation60_spill] sm:$0xff] }
 0x56a   : > { %7605 = vst [vmem:[#allocation53_spill] sm:$0xff] %v6821_v34  ;;  %v6827_v63 = vpop.eup %5203  ;;  %5223 = vpow2.f32 %v3596_v24  ;;  %v3600_v16 = vmul.f32 1.442695, %v3388_v46  ;;  %v3602_v56 = vmul.f32 1.442695, %v3389_v25  ;;  %v7614_v25 = vld [vmem:[#allocation62_spill] sm:$0xff] }
 0x56b   : > { %7607 = vst [vmem:[#allocation52_spill] sm:$0xff] %v6827_v63  ;;  %v3604_v58 = vmul.f32 1.442695, %v3390_v26  ;;  %v6829_v55 = vpop.eup %5205  ;;  %5225 = vpow2.f32 %v3598_v11  ;;  %v3606_v21 = vmul.f32 1.442695, %v3391_v29  ;;  %3771 = vadd.xlane.f32.xlu0 %v3770_v49  ;;  %v3258_v48 = vpop.xlane.xlu1 %3257  ;;  %v3774_v22 = vadd.f32 %v6816_v15, %v3773_v13 }
 0x56c   : > { %7608 = vst [vmem:[#allocation54_spill] sm:$0xff] %v6829_v55  ;;  %v6832_v47 = vpop.eup %5207  ;;  %5227 = vpow2.f32 %v3600_v16  ;;  %v3392_v54 = vsub.f32 %v7610_v45, %v3258_v48  ;;  %v3393_v39 = vsub.f32 %v7611_v33, %v3258_v48  ;;  %v3394_v24 = vsub.f32 %v7612_v53, %v3258_v48 }
 0x56d   : > { %7609 = vst [vmem:[#allocation55_spill] sm:$0xff] %v6832_v47  ;;  %v6837_v46 = vpop.eup %5209  ;;  %5229 = vpow2.f32 %v3602_v56  ;;  %v3395_v26 = vsub.f32 %v7614_v25, %v3258_v48  ;;  %v3775_v11 = vadd.f32 %v6821_v34, %v3774_v22  ;;  %v3778_v29 = vadd.f32 %v6829_v55, %v6827_v63  ;;  %v7618_v22 = vld [vmem:[#allocation63_spill] sm:$0xff]  ;;  %v7619_v63 = vld [vmem:[#allocation65_spill] sm:$0xff]  ;;  %v7620_v34 = vld [vmem:[#allocation64_spill] sm:$0xff] }
 0x56e   : > { %7613 = vst [vmem:[#allocation57_spill] sm:$0xff] %v6837_v46  ;;  %v6843_v49 = vpop.eup %5211  ;;  %5231 = vpow2.f32 %v3604_v58  ;;  %v3608_v13 = vmul.f32 1.442695, %v3392_v54  ;;  %v3610_v16 = vmul.f32 1.442695, %v3393_v39  ;;  %v7622_v39 = vld [vmem:[#allocation66_spill] sm:$0xff] }
 0x56f   : > { %7615 = vst [vmem:[#allocation56_spill] sm:$0xff] %v6843_v49  ;;  %v3612_v45 = vmul.f32 1.442695, %v3394_v24  ;;  %v6845_v15 = vpop.eup %5213  ;;  %5233 = vpow2.f32 %v3606_v21  ;;  %v3614_v53 = vmul.f32 1.442695, %v3395_v26  ;;  %3776 = vadd.xlane.f32.xlu1 %v3775_v11  ;;  %v3263_v33 = vpop.xlane.xlu1 %3262  ;;  %v3779_v56 = vadd.f32 %v6832_v47, %v3778_v29 }
 0x570   : > { %7616 = vst [vmem:[#allocation58_spill] sm:$0xff] %v6845_v15  ;;  %v6848_v48 = vpop.eup %5215  ;;  %5235 = vpow2.f32 %v3608_v13  ;;  %v3396_v25 = vsub.f32 %v7618_v22, %v3263_v33  ;;  %v3397_v55 = vsub.f32 %v7619_v63, %v3263_v33  ;;  %v3398_v58 = vsub.f32 %v7620_v34, %v3263_v33 }
 0x571   : > { %7617 = vst [vmem:[#allocation59_spill] sm:$0xff] %v6848_v48  ;;  %v6853_v54 = vpop.eup %5217  ;;  %5237 = vpow2.f32 %v3610_v16  ;;  %v3399_v24 = vsub.f32 %v7622_v39, %v3263_v33  ;;  %v3780_v21 = vadd.f32 %v6837_v46, %v3779_v56  ;;  %v3783_v26 = vadd.f32 %v6845_v15, %v6843_v49  ;;  %v7626_v56 = vld [vmem:[#allocation67_spill] sm:$0xff]  ;;  %v7627_v49 = vld [vmem:[#allocation69_spill] sm:$0xff]  ;;  %v7628_v46 = vld [vmem:[#allocation68_spill] sm:$0xff] }
 0x572   : > { %7621 = vst [vmem:[#allocation61_spill] sm:$0xff] %v6853_v54  ;;  %v6859_v11 = vpop.eup %5219  ;;  %5239 = vpow2.f32 %v3612_v45  ;;  %v3616_v29 = vmul.f32 1.442695, %v3396_v25  ;;  %v3618_v13 = vmul.f32 1.442695, %v3397_v55  ;;  %v7630_v55 = vld [vmem:[#allocation70_spill] sm:$0xff] }
 0x573   : > { %7623 = vst [vmem:[#allocation60_spill] sm:$0xff] %v6859_v11  ;;  %v3620_v22 = vmul.f32 1.442695, %v3398_v58  ;;  %v6861_v47 = vpop.eup %5221  ;;  %5241 = vpow2.f32 %v3614_v53  ;;  %v3622_v34 = vmul.f32 1.442695, %v3399_v24  ;;  %3781 = vadd.xlane.f32.xlu0 %v3780_v21  ;;  %v3268_v63 = vpop.xlane.xlu1 %3267  ;;  %v3784_v16 = vadd.f32 %v6848_v48, %v3783_v26 }
 0x574   : > { %7624 = vst [vmem:[#allocation62_spill] sm:$0xff] %v6861_v47  ;;  %v6864_v33 = vpop.eup %5223  ;;  %5243 = vpow2.f32 %v3616_v29  ;;  %v3400_v39 = vsub.f32 %v7626_v56, %v3268_v63  ;;  %v3401_v15 = vsub.f32 %v7627_v49, %v3268_v63  ;;  %v3402_v45 = vsub.f32 %v7628_v46, %v3268_v63 }
 0x575   : > { %7625 = vst [vmem:[#allocation63_spill] sm:$0xff] %v6864_v33  ;;  %v6869_v25 = vpop.eup %5225  ;;  %5245 = vpow2.f32 %v3618_v13  ;;  %v3403_v58 = vsub.f32 %v7630_v55, %v3268_v63  ;;  %v3785_v53 = vadd.f32 %v6853_v54, %v3784_v16  ;;  %v3788_v24 = vadd.f32 %v6861_v47, %v6859_v11  ;;  %v7634_v16 = vld [vmem:[#allocation71_spill] sm:$0xff]  ;;  %v7635_v11 = vld [vmem:[#allocation73_spill] sm:$0xff]  ;;  %v7636_v54 = vld [vmem:[#allocation72_spill] sm:$0xff] }
 0x576   : > { %7629 = vst [vmem:[#allocation65_spill] sm:$0xff] %v6869_v25  ;;  %v6875_v21 = vpop.eup %5227  ;;  %5247 = vpow2.f32 %v3620_v22  ;;  %v3624_v26 = vmul.f32 1.442695, %v3400_v39  ;;  %v3626_v29 = vmul.f32 1.442695, %v3401_v15  ;;  %v7638_v15 = vld [vmem:[#allocation74_spill] sm:$0xff] }
 0x577   : > { %7631 = vst [vmem:[#allocation64_spill] sm:$0xff] %v6875_v21  ;;  %v3628_v56 = vmul.f32 1.442695, %v3402_v45  ;;  %v6877_v48 = vpop.eup %5229  ;;  %5249 = vpow2.f32 %v3622_v34  ;;  %v3630_v46 = vmul.f32 1.442695, %v3403_v58  ;;  %3786 = vadd.xlane.f32.xlu1 %v3785_v53  ;;  %v3273_v49 = vpop.xlane.xlu1 %3272  ;;  %v3789_v13 = vadd.f32 %v6864_v33, %v3788_v24 }
 0x578   : > { %7632 = vst [vmem:[#allocation66_spill] sm:$0xff] %v6877_v48  ;;  %v6880_v63 = vpop.eup %5231  ;;  %5251 = vpow2.f32 %v3624_v26  ;;  %v3404_v55 = vsub.f32 %v7634_v16, %v3273_v49  ;;  %v3405_v47 = vsub.f32 %v7635_v11, %v3273_v49  ;;  %v3406_v22 = vsub.f32 %v7636_v54, %v3273_v49 }
 0x579   : > { %7633 = vst [vmem:[#allocation67_spill] sm:$0xff] %v6880_v63  ;;  %v6885_v39 = vpop.eup %5233  ;;  %5253 = vpow2.f32 %v3626_v29  ;;  %v3407_v45 = vsub.f32 %v7638_v15, %v3273_v49  ;;  %v3790_v34 = vadd.f32 %v6869_v25, %v3789_v13  ;;  %v3793_v58 = vadd.f32 %v6877_v48, %v6875_v21  ;;  %v7642_v13 = vld [vmem:[#allocation75_spill] sm:$0xff]  ;;  %v7643_v21 = vld [vmem:[#allocation77_spill] sm:$0xff]  ;;  %v7644_v25 = vld [vmem:[#allocation76_spill] sm:$0xff] }
 0x57a   : > { %7637 = vst [vmem:[#allocation69_spill] sm:$0xff] %v6885_v39  ;;  %v6891_v53 = vpop.eup %5235  ;;  %5255 = vpow2.f32 %v3628_v56  ;;  %v3632_v24 = vmul.f32 1.442695, %v3404_v55  ;;  %v3634_v26 = vmul.f32 1.442695, %v3405_v47  ;;  %v7646_v47 = vld [vmem:[#allocation78_spill] sm:$0xff] }
 0x57b   : > { %7639 = vst [vmem:[#allocation68_spill] sm:$0xff] %v6891_v53  ;;  %v3636_v16 = vmul.f32 1.442695, %v3406_v22  ;;  %v6893_v33 = vpop.eup %5237  ;;  %5257 = vpow2.f32 %v3630_v46  ;;  %v3638_v54 = vmul.f32 1.442695, %v3407_v45  ;;  %3791 = vadd.xlane.f32.xlu0 %v3790_v34  ;;  %v3278_v11 = vpop.xlane.xlu1 %3277  ;;  %v3794_v29 = vadd.f32 %v6880_v63, %v3793_v58 }
 0x57c   : > { %7640 = vst [vmem:[#allocation70_spill] sm:$0xff] %v6893_v33  ;;  %v6896_v49 = vpop.eup %5239  ;;  %5259 = vpow2.f32 %v3632_v24  ;;  %v3408_v15 = vsub.f32 %v7642_v13, %v3278_v11  ;;  %v3409_v48 = vsub.f32 %v7643_v21, %v3278_v11  ;;  %v3410_v56 = vsub.f32 %v7644_v25, %v3278_v11 }
 0x57d   : > { %7641 = vst [vmem:[#allocation71_spill] sm:$0xff] %v6896_v49  ;;  %v6901_v55 = vpop.eup %5241  ;;  %5261 = vpow2.f32 %v3634_v26  ;;  %v3411_v22 = vsub.f32 %v7646_v47, %v3278_v11  ;;  %v3795_v46 = vadd.f32 %v6885_v39, %v3794_v29  ;;  %v3798_v45 = vadd.f32 %v6893_v33, %v6891_v53  ;;  %v7650_v29 = vld [vmem:[#allocation79_spill] sm:$0xff]  ;;  %v7651_v53 = vld [vmem:[#allocation81_spill] sm:$0xff]  ;;  %v7652_v39 = vld [vmem:[#allocation80_spill] sm:$0xff] }
 0x57e   : > { %7645 = vst [vmem:[#allocation73_spill] sm:$0xff] %v6901_v55  ;;  %v6907_v34 = vpop.eup %5243  ;;  %5263 = vpow2.f32 %v3636_v16  ;;  %v3640_v58 = vmul.f32 1.442695, %v3408_v15  ;;  %v3642_v24 = vmul.f32 1.442695, %v3409_v48  ;;  %v7654_v48 = vld [vmem:[#allocation82_spill] sm:$0xff] }
 0x57f   : > { %7647 = vst [vmem:[#allocation72_spill] sm:$0xff] %v6907_v34  ;;  %v3644_v13 = vmul.f32 1.442695, %v3410_v56  ;;  %v6909_v63 = vpop.eup %5245  ;;  %5265 = vpow2.f32 %v3638_v54  ;;  %v3646_v25 = vmul.f32 1.442695, %v3411_v22  ;;  %3796 = vadd.xlane.f32.xlu1 %v3795_v46  ;;  %v3283_v21 = vpop.xlane.xlu1 %3282  ;;  %v3799_v26 = vadd.f32 %v6896_v49, %v3798_v45 }
 0x580   : > { %7648 = vst [vmem:[#allocation74_spill] sm:$0xff] %v6909_v63  ;;  %v6912_v11 = vpop.eup %5247  ;;  %5267 = vpow2.f32 %v3640_v58  ;;  %v3412_v47 = vsub.f32 %v7650_v29, %v3283_v21  ;;  %v3413_v33 = vsub.f32 %v7651_v53, %v3283_v21  ;;  %v3414_v16 = vsub.f32 %v7652_v39, %v3283_v21 }
 0x581   : > { %7649 = vst [vmem:[#allocation75_spill] sm:$0xff] %v6912_v11  ;;  %v6917_v15 = vpop.eup %5249  ;;  %5269 = vpow2.f32 %v3642_v24  ;;  %v3415_v56 = vsub.f32 %v7654_v48, %v3283_v21  ;;  %v3800_v54 = vadd.f32 %v6901_v55, %v3799_v26  ;;  %v3803_v22 = vadd.f32 %v6909_v63, %v6907_v34  ;;  %v7658_v26 = vld [vmem:[#allocation83_spill] sm:$0xff]  ;;  %v7659_v34 = vld [vmem:[#allocation85_spill] sm:$0xff]  ;;  %v7660_v55 = vld [vmem:[#allocation84_spill] sm:$0xff] }
 0x582   : > { %7653 = vst [vmem:[#allocation77_spill] sm:$0xff] %v6917_v15  ;;  %v6923_v46 = vpop.eup %5251  ;;  %5271 = vpow2.f32 %v3644_v13  ;;  %v3648_v45 = vmul.f32 1.442695, %v3412_v47  ;;  %v3650_v58 = vmul.f32 1.442695, %v3413_v33  ;;  %v7662_v33 = vld [vmem:[#allocation86_spill] sm:$0xff] }
 0x583   : > { %7655 = vst [vmem:[#allocation76_spill] sm:$0xff] %v6923_v46  ;;  %v3652_v29 = vmul.f32 1.442695, %v3414_v16  ;;  %v6925_v49 = vpop.eup %5253  ;;  %5273 = vpow2.f32 %v3646_v25  ;;  %v3654_v39 = vmul.f32 1.442695, %v3415_v56  ;;  %3801 = vadd.xlane.f32.xlu0 %v3800_v54  ;;  %v3288_v53 = vpop.xlane.xlu1 %3287  ;;  %v3804_v24 = vadd.f32 %v6912_v11, %v3803_v22 }
 0x584   : > { %7656 = vst [vmem:[#allocation78_spill] sm:$0xff] %v6925_v49  ;;  %v6928_v21 = vpop.eup %5255  ;;  %5275 = vpow2.f32 %v3648_v45  ;;  %v3416_v48 = vsub.f32 %v7658_v26, %v3288_v53  ;;  %v3417_v63 = vsub.f32 %v7659_v34, %v3288_v53  ;;  %v3418_v13 = vsub.f32 %v7660_v55, %v3288_v53 }
 0x585   : > { %7657 = vst [vmem:[#allocation79_spill] sm:$0xff] %v6928_v21  ;;  %v6933_v47 = vpop.eup %5257  ;;  %5277 = vpow2.f32 %v3650_v58  ;;  %v3419_v16 = vsub.f32 %v7662_v33, %v3288_v53  ;;  %v3805_v25 = vadd.f32 %v6917_v15, %v3804_v24  ;;  %v3808_v56 = vadd.f32 %v6925_v49, %v6923_v46  ;;  %v7665_v24 = vld [vmem:[#allocation87_spill] sm:$0xff]  ;;  %v7666_v46 = vld [vmem:[#allocation89_spill] sm:$0xff]  ;;  %v7667_v15 = vld [vmem:[#allocation88_spill] sm:$0xff] }
 0x586   : > { %7661 = vst [vmem:[#allocation81_spill] sm:$0xff] %v6933_v47  ;;  %v6939_v54 = vpop.eup %5259  ;;  %5279 = vpow2.f32 %v3652_v29  ;;  %v3656_v22 = vmul.f32 1.442695, %v3416_v48  ;;  %v3658_v45 = vmul.f32 1.442695, %v3417_v63  ;;  %v7668_v63 = vld [vmem:[#allocation90_spill] sm:$0xff] }
 0x587   : > { %7663 = vst [vmem:[#allocation80_spill] sm:$0xff] %v6939_v54  ;;  %v3660_v26 = vmul.f32 1.442695, %v3418_v13  ;;  %v6941_v11 = vpop.eup %5261  ;;  %5281 = vpow2.f32 %v3654_v39  ;;  %v3662_v55 = vmul.f32 1.442695, %v3419_v16  ;;  %3806 = vadd.xlane.f32.xlu1 %v3805_v25  ;;  %v3293_v34 = vpop.xlane.xlu1 %3292  ;;  %v3809_v58 = vadd.f32 %v6928_v21, %v3808_v56 }
 0x588   : > { %7664 = vst [vmem:[#allocation82_spill] sm:$0xff] %v6941_v11  ;;  %v6944_v53 = vpop.eup %5263  ;;  %5283 = vpow2.f32 %v3656_v22  ;;  %v3420_v33 = vsub.f32 %v7665_v24, %v3293_v34  ;;  %v3421_v49 = vsub.f32 %v7666_v46, %v3293_v34  ;;  %v3422_v29 = vsub.f32 %v7667_v15, %v3293_v34 }
 0x589   : > { %v6949_v48 = vpop.eup %5265  ;;  %5285 = vpow2.f32 %v3658_v45  ;;  %v3423_v13 = vsub.f32 %v7668_v63, %v3293_v34  ;;  %v3810_v39 = vadd.f32 %v6933_v47, %v3809_v58  ;;  %v3813_v16 = vadd.f32 %v6941_v11, %v6939_v54  ;;  %v7671_v58 = vld [vmem:[#allocation91_spill] sm:$0xff]  ;;  %v7672_v54 = vld [vmem:[#allocation93_spill] sm:$0xff]  ;;  %v7673_v47 = vld [vmem:[#allocation92_spill] sm:$0xff] }
 0x58a   : > { %v6955_v25 = vpop.eup %5267  ;;  %5287 = vpow2.f32 %v3660_v26  ;;  %v3664_v56 = vmul.f32 1.442695, %v3420_v33  ;;  %v3666_v22 = vmul.f32 1.442695, %v3421_v49  ;;  %v3668_v24 = vmul.f32 1.442695, %v3422_v29 }
 0x58b   : > { %7669 = vst [vmem:[#allocation83_spill] sm:$0xff] %v6955_v25  ;;  %v6957_v21 = vpop.eup %5269  ;;  %5289 = vpow2.f32 %v3662_v55  ;;  %v3670_v15 = vmul.f32 1.442695, %v3423_v13  ;;  %3811 = vadd.xlane.f32.xlu0 %v3810_v39  ;;  %v3298_v46 = vpop.xlane.xlu1 %3297  ;;  %v3814_v45 = vadd.f32 %v6944_v53, %v3813_v16 }
 0x58c   : > { %7670 = vst [vmem:[#allocation85_spill] sm:$0xff] %v6957_v21  ;;  %v6960_v34 = vpop.eup %5271  ;;  %5291 = vpow2.f32 %v3664_v56  ;;  %v3424_v63 = vsub.f32 %v7671_v58, %v3298_v46  ;;  %v3425_v11 = vsub.f32 %v7672_v54, %v3298_v46  ;;  %v3426_v26 = vsub.f32 %v7673_v47, %v3298_v46 }
 0x58d   : > { %v6965_v33 = vpop.eup %5273  ;;  %5293 = vpow2.f32 %v3666_v22  ;;  %v3427_v49 = vsub.f32 %v6506_v57, %v3298_v46  ;;  %v3815_v55 = vadd.f32 %v6949_v48, %v3814_v45  ;;  %v3818_v29 = vadd.f32 %v6957_v21, %v6955_v25  ;;  %v7674_v46 = vld [vmem:[#allocation94_spill] sm:$0xff]  ;;  %v7675_v25 = vld [vmem:[#allocation95_spill] sm:$0xff] }
 0x58e   : > { %v6971_v13 = vpop.eup %5275  ;;  %5295 = vpow2.f32 %v3668_v24  ;;  %v3672_v39 = vmul.f32 1.442695, %v3424_v63  ;;  %v3674_v16 = vmul.f32 1.442695, %v3425_v11  ;;  %v3676_v56 = vmul.f32 1.442695, %v3426_v26 }
 0x58f   : > { %v6973_v58 = vpop.eup %5277  ;;  %5297 = vpow2.f32 %v3670_v15  ;;  %v3678_v47 = vmul.f32 1.442695, %v3427_v49  ;;  %3816 = vadd.xlane.f32.xlu1 %v3815_v55  ;;  %v3303_v54 = vpop.xlane.xlu1 %3302  ;;  %v3819_v22 = vadd.f32 %v6960_v34, %v3818_v29 }
 0x590   : > { %v6976_v57 = vpop.eup %5279  ;;  %5299 = vpow2.f32 %v3672_v39  ;;  %v3428_v45 = vsub.f32 %v7674_v46, %v3303_v54  ;;  %v3429_v21 = vsub.f32 %v7675_v25, %v3303_v54  ;;  %v3430_v24 = vsub.f32 %v6513_v32, %v3303_v54 }
 0x591   : > { %v6981_v63 = vpop.eup %5281  ;;  %5301 = vpow2.f32 %v3674_v16  ;;  %v3431_v11 = vsub.f32 %v6518_v19, %v3303_v54  ;;  %v3820_v15 = vadd.f32 %v6965_v33, %v3819_v22  ;;  %v3823_v26 = vadd.f32 %v6973_v58, %v6971_v13 }
 0x592   : > { %v6987_v49 = vpop.eup %5283  ;;  %5303 = vpow2.f32 %v3676_v56  ;;  %v3680_v55 = vmul.f32 1.442695, %v3428_v45  ;;  %v3682_v29 = vmul.f32 1.442695, %v3429_v21  ;;  %v3684_v25 = vmul.f32 1.442695, %v3430_v24 }
 0x593   : > { %v6989_v39 = vpop.eup %5285  ;;  %5305 = vpow2.f32 %v3678_v47  ;;  %3821 = vadd.xlane.f32.xlu0 %v3820_v15  ;;  %v3824_v32 = vadd.f32 %v6976_v57, %v3823_v26  ;;  %v3686_v22 = vmul.f32 1.442695, %v3431_v11 }
 0x594   : > { %v6992_v16 = vpop.eup %5287  ;;  %5307 = vpow2.f32 %v3680_v55  ;;  %v3828_v19 = vadd.f32 %v6989_v39, %v6987_v49 }
 0x595   : > { %v6996_v54 = vpop.eup %5289  ;;  %5309 = vpow2.f32 %v3682_v29  ;;  %v3825_v56 = vadd.f32 %v6981_v63, %v3824_v32 }
 0x596   : > { %v6999_v21 = vpop.eup %5291  ;;  %v3829_v47 = vadd.f32 %v6992_v16, %v3828_v19  ;;  %5311 = vpow2.f32 %v3684_v25 }
 0x597   : > { %7676 = vst [vmem:[#allocation84_spill] sm:$0xff] %v6999_v21  ;;  %v7002_v46 = vpop.eup %5293  ;;  %3826 = vadd.xlane.f32.xlu1 %v3825_v56  ;;  %5313 = vpow2.f32 %v3686_v22 }
 0x598   : > { %7677 = vst [vmem:[#allocation86_spill] sm:$0xff] %v7002_v46  ;;  %v7004_v45 = vpop.eup %5295  ;;  %v3830_v24 = vadd.f32 %v6996_v54, %v3829_v47  ;;  %v3833_v15 = vadd.f32 %v7002_v46, %v6999_v21 }
 0x599   : > { %7678 = vst [vmem:[#allocation87_spill] sm:$0xff] %v7004_v45  ;;  %v7009_v26 = vpop.eup %5297 }
 0x59a   : > { %7679 = vst [vmem:[#allocation89_spill] sm:$0xff] %v7009_v26  ;;  %v7011_v11 = vpop.eup %5299  ;;  %3831 = vadd.xlane.f32.xlu0 %v3830_v24  ;;  %v3834_v55 = vadd.f32 %v7004_v45, %v3833_v15 }
 0x59b   : > { %7680 = vst [vmem:[#allocation88_spill] sm:$0xff] %v7011_v11  ;;  %v7014_v29 = vpop.eup %5301 }
 0x59c   : > { %7681 = vst [vmem:[#allocation90_spill] sm:$0xff] %v7014_v29  ;;  %v7016_v32 = vpop.eup %5303  ;;  %v3835_v25 = vadd.f32 %v7009_v26, %v3834_v55  ;;  %v3838_v19 = vadd.f32 %v7014_v29, %v7011_v11 }
 0x59d   : > { %7682 = vst [vmem:[#allocation91_spill] sm:$0xff] %v7016_v32  ;;  %v7021_v56 = vpop.eup %5305 }
 0x59e   : > { %7683 = vst [vmem:[#allocation93_spill] sm:$0xff] %v7021_v56  ;;  %v7023_v47 = vpop.eup %5307  ;;  %3836 = vadd.xlane.f32.xlu1 %v3835_v25  ;;  %v3839_v22 = vadd.f32 %v7016_v32, %v3838_v19 }
 0x59f   : > { %7684 = vst [vmem:[#allocation92_spill] sm:$0xff] %v7023_v47  ;;  %v7026_v24 = vpop.eup %5309 }
 0x5a0   : > { %7685 = vst [vmem:[#allocation94_spill] sm:$0xff] %v7026_v24  ;;  %v3840_v15 = vadd.f32 %v7021_v56, %v3839_v22  ;;  %v3843_v45 = vadd.f32 %v7026_v24, %v7023_v47  ;;  %v7031_v21 = vpop.eup %5311 }
 0x5a1   : > { %7686 = vst [vmem:[#allocation95_spill] sm:$0xff] %v7031_v21  ;;  %v7034_v11 = vpop.eup %5313 }
 0x5a2   : > { %3841 = vadd.xlane.f32.xlu0 %v3840_v15  ;;  %v3844_v55 = vadd.f32 %v7031_v21, %v3843_v45  ;;  %7687 = vst [vmem:[#allocation96_spill] sm:$0xff] %v7034_v11  ;;  %v4011_v15 = vld [vmem:[%s7038_s21 + $0x8] sm:$0xff] }
 0x5a3   : > { %4098 = vmatprep.mubr.f32.mxu0 %v4011_v15  ;;  %4187 = vmatprep.mubr.f32.mxu1 %v4011_v15 }
 0x5a4   : > { %v3845_v29 = vadd.f32 %v7034_v11, %v3844_v55 }
 0x5a6   : > { %3846 = vadd.xlane.f32.xlu1 %v3845_v29 }
 0x5b8   : > { %v3692_v25 = vpop.xlane.xlu1 %3691 }
 0x5b9   : > { %5315 = vrcp.f32 %v3692_v25 }
 0x5bc   : > { %v3697_v19 = vpop.xlane.xlu1 %3696 }
 0x5bd   : > { %5317 = vrcp.f32 %v3697_v19 }
 0x5c0   : > { %v3702_v32 = vpop.xlane.xlu1 %3701 }
 0x5c1   : > { %5319 = vrcp.f32 %v3702_v32 }
 0x5c3   : > { %v5316_v22 = vpop.eup %5315 }
 0x5c4   : > { %v3707_v56 = vpop.xlane.xlu1 %3706  ;;  %v3881_v55 = vmul.f32 %v5316_v22, %v6543_v28  ;;  %v3883_v29 = vmul.f32 %v5316_v22, %v6550_v17  ;;  %v3880_v25 = vmul.f32 %v5316_v22, %v6541_v51  ;;  %v3882_v19 = vmul.f32 %v5316_v22, %v6545_v1 }
 0x5c5   : > { %5321 = vrcp.f32 %v3707_v56 }
 0x5c7   : > { %v5318_v45 = vpop.eup %5317 }
 0x5c8   : > { %v3712_v21 = vpop.xlane.xlu1 %3711  ;;  %v3885_v32 = vmul.f32 %v5318_v45, %v6557_v44  ;;  %v3887_v47 = vmul.f32 %v5318_v45, %v6565_v31  ;;  %v3884_v11 = vmul.f32 %v5318_v45, %v6555_v52  ;;  %v3886_v56 = vmul.f32 %v5318_v45, %v6560_v6 }
 0x5c9   : > { %5323 = vrcp.f32 %v3712_v21 }
 0x5ca   : > { %v4812_v15 = vpack.c.bf16 %v3885_v32, %v3881_v55  ;;  %v4876_v24 = vpack.c.bf16 %v3887_v47, %v3883_v29  ;;  %v4814_v26 = vpack.c.bf16 %v3884_v11, %v3880_v25  ;;  %v4878_v28 = vpack.c.bf16 %v3886_v56, %v3882_v19 }
 0x5cb   : > { %v5320_v46 = vpop.eup %5319 }
 0x5cc   : > { %4813 = vmatprep.subr.bf16.mxu0 %v4812_v15  ;;  %4877 = vmatprep.subr.bf16.mxu1 %v4876_v24  ;;  %v3717_v51 = vpop.xlane.xlu1 %3716  ;;  %v3889_v17 = vmul.f32 %v5320_v46, %v6573_v41  ;;  %v3891_v44 = vmul.f32 %v5320_v46, %v6581_v7  ;;  %v3888_v52 = vmul.f32 %v5320_v46, %v6571_v12 }
 0x5cd   : > { %5325 = vrcp.f32 %v3717_v51  ;;  %4815 = vmatpush1.bf16.msra.mxu0 %v4814_v26  ;;  %4879 = vmatpush1.bf16.msra.mxu1 %v4878_v28  ;;  %v3890_v6 = vmul.f32 %v5320_v46, %v6576_v30 }
 0x5cf   : > { %v5322_v1 = vpop.eup %5321 }
 0x5d0   : > { %v3722_v31 = vpop.xlane.xlu1 %3721  ;;  %v3893_v21 = vmul.f32 %v5322_v1, %v6589_v38  ;;  %v3895_v11 = vmul.f32 %v5322_v1, %v6597_v23  ;;  %v3892_v47 = vmul.f32 %v5322_v1, %v6587_v3  ;;  %v3894_v24 = vmul.f32 %v5322_v1, %v6592_v42 }
 0x5d1   : > { %5327 = vrcp.f32 %v3722_v31 }
 0x5d2   : > { %v4816_v26 = vpack.c.bf16 %v3893_v21, %v3889_v17  ;;  %v4880_v22 = vpack.c.bf16 %v3895_v11, %v3891_v44  ;;  %v4818_v45 = vpack.c.bf16 %v3892_v47, %v3888_v52  ;;  %v4882_v41 = vpack.c.bf16 %v3894_v24, %v3890_v6  ;;  %v7688_v47 = vld [vmem:[#allocation21_spill] sm:$0xff] }
 0x5d3   : > { %v5324_v55 = vpop.eup %5323 }
 0x5d4   : > { %4817 = vmatprep.subr.bf16.mxu0 %v4816_v26  ;;  %4881 = vmatprep.subr.bf16.mxu1 %v4880_v22  ;;  %v3727_v12 = vpop.xlane.xlu1 %3726  ;;  %v3897_v7 = vmul.f32 %v5324_v55, %v6605_v40  ;;  %v3899_v38 = vmul.f32 %v5324_v55, %v6613_v60  ;;  %v3896_v3 = vmul.f32 %v5324_v55, %v6603_v0  ;;  %v7689_v26 = vld [vmem:[#allocation18_spill] sm:$0xff] }
 0x5d5   : > { %5329 = vrcp.f32 %v3727_v12  ;;  %4819 = vmatpush1.bf16.msra.mxu0 %v4818_v45  ;;  %4883 = vmatpush1.bf16.msra.mxu1 %v4882_v41  ;;  %v3898_v42 = vmul.f32 %v5324_v55, %v6608_v50  ;;  %v7690_v45 = vld [vmem:[#allocation19_spill] sm:$0xff] }
 0x5d7   : > { %v5326_v30 = vpop.eup %5325 }
 0x5d8   : > { %v3732_v23 = vpop.xlane.xlu1 %3731  ;;  %v3901_v46 = vmul.f32 %v5326_v30, %v6621_v4  ;;  %v3903_v29 = vmul.f32 %v5326_v30, %v6629_v20  ;;  %v3900_v25 = vmul.f32 %v5326_v30, %v6619_v14  ;;  %v3902_v19 = vmul.f32 %v5326_v30, %v6624_v59 }
 0x5d9   : > { %5331 = vrcp.f32 %v3732_v23 }
 0x5da   : > { %v4820_v32 = vpack.c.bf16 %v3901_v46, %v3897_v7  ;;  %v4884_v56 = vpack.c.bf16 %v3903_v29, %v3899_v38  ;;  %v4822_v15 = vpack.c.bf16 %v3900_v25, %v3896_v3  ;;  %v4886_v40 = vpack.c.bf16 %v3902_v19, %v3898_v42  ;;  %v7692_v38 = vld [vmem:[#allocation25_spill] sm:$0xff]  ;;  %v7693_v42 = vld [vmem:[#allocation20_spill] sm:$0xff]  ;;  %v7694_v46 = vld [vmem:[#allocation23_spill] sm:$0xff] }
 0x5db   : > { %v5328_v28 = vpop.eup %5327  ;;  %v7695_v19 = vld [vmem:[#allocation26_spill] sm:$0xff] }
 0x5dc   : > { %4821 = vmatprep.subr.bf16.mxu0 %v4820_v32  ;;  %4885 = vmatprep.subr.bf16.mxu1 %v4884_v56  ;;  %v3737_v0 = vpop.xlane.xlu1 %3736  ;;  %v3905_v60 = vmul.f32 %v5328_v28, %v6637_v43  ;;  %v3907_v4 = vmul.f32 %v5328_v28, %v6645_v27  ;;  %v3904_v14 = vmul.f32 %v5328_v28, %v6635_v10  ;;  %v7696_v56 = vld [vmem:[#allocation29_spill] sm:$0xff] }
 0x5dd   : > { %5333 = vrcp.f32 %v3737_v0  ;;  %4823 = vmatpush1.bf16.msra.mxu0 %v4822_v15  ;;  %4887 = vmatpush1.bf16.msra.mxu1 %v4886_v40  ;;  %v3906_v59 = vmul.f32 %v5328_v28, %v6640_v9  ;;  %v7697_v40 = vld [vmem:[#allocation24_spill] sm:$0xff]  ;;  %v7698_v0 = vld [vmem:[#allocation27_spill] sm:$0xff] }
 0x5df   : > { %v5330_v50 = vpop.eup %5329 }
 0x5e0   : > { %v3742_v20 = vpop.xlane.xlu1 %3741  ;;  %v3909_v51 = vmul.f32 %v5330_v50, %v6653_v2  ;;  %v3911_v1 = vmul.f32 %v5330_v50, %v6661_v37  ;;  %v3908_v17 = vmul.f32 %v5330_v50, %v6651_v61  ;;  %v3910_v44 = vmul.f32 %v5330_v50, %v6656_v18 }
 0x5e1   : > { %5335 = vrcp.f32 %v3742_v20 }
 0x5e2   : > { %v4824_v52 = vpack.c.bf16 %v3909_v51, %v3905_v60  ;;  %v4888_v6 = vpack.c.bf16 %v3911_v1, %v3907_v4  ;;  %v4826_v31 = vpack.c.bf16 %v3908_v17, %v3904_v14  ;;  %v4890_v43 = vpack.c.bf16 %v3910_v44, %v3906_v59  ;;  %v7699_v17 = vld [vmem:[#allocation30_spill] sm:$0xff] }
 0x5e3   : > { %v5332_v21 = vpop.eup %5331 }
 0x5e4   : > { %4825 = vmatprep.subr.bf16.mxu0 %v4824_v52  ;;  %4889 = vmatprep.subr.bf16.mxu1 %v4888_v6  ;;  %v3747_v10 = vpop.xlane.xlu1 %3746  ;;  %v3913_v27 = vmul.f32 %v5332_v21, %v6669_v62  ;;  %v3915_v2 = vmul.f32 %v5332_v21, %v6677_v36  ;;  %v3912_v61 = vmul.f32 %v5332_v21, %v6667_v8  ;;  %v7691_v36 = vld [vmem:[#allocation22_spill] sm:$0xff]  ;;  %v7700_v52 = vld [vmem:[#allocation33_spill] sm:$0xff] }
 0x5e5   : > { %5337 = vrcp.f32 %v3747_v10  ;;  %4827 = vmatpush1.bf16.msra.mxu0 %v4826_v31  ;;  %4891 = vmatpush1.bf16.msra.mxu1 %v4890_v43  ;;  %v3914_v18 = vmul.f32 %v5332_v21, %v6672_v5  ;;  %v7701_v31 = vld [vmem:[#allocation28_spill] sm:$0xff]  ;;  %v7702_v21 = vld [vmem:[#allocation31_spill] sm:$0xff] }
 0x5e7   : > { %v5334_v9 = vpop.eup %5333 }
 0x5e8   : > { %v3752_v37 = vpop.xlane.xlu0 %3751  ;;  %v3917_v11 = vmul.f32 %v5334_v9, %v6685_v35  ;;  %v3919_v24 = vmul.f32 %v5334_v9, %v7688_v47  ;;  %v3916_v22 = vmul.f32 %v5334_v9, %v7689_v26  ;;  %v3918_v41 = vmul.f32 %v5334_v9, %v7690_v45  ;;  %v7706_v47 = vld [vmem:[#allocation35_spill] sm:$0xff] }
 0x5e9   : > { %5339 = vrcp.f32 %v3752_v37  ;;  %v7705_v37 = vld [vmem:[#allocation32_spill] sm:$0xff] }
 0x5ea   : > { %v4828_v55 = vpack.c.bf16 %v3917_v11, %v3913_v27  ;;  %v4892_v12 = vpack.c.bf16 %v3919_v24, %v3915_v2  ;;  %v4830_v30 = vpack.c.bf16 %v3916_v22, %v3912_v61  ;;  %v4894_v62 = vpack.c.bf16 %v3918_v41, %v3914_v18  ;;  %v7703_v27 = vld [vmem:[#allocation34_spill] sm:$0xff]  ;;  %v7704_v61 = vld [vmem:[#allocation37_spill] sm:$0xff] }
 0x5eb   : > { %v5336_v7 = vpop.eup %5335 }
 0x5ec   : > { %4829 = vmatprep.subr.bf16.mxu0 %v4828_v55  ;;  %4893 = vmatprep.subr.bf16.mxu1 %v4892_v12  ;;  %v3757_v8 = vpop.xlane.xlu1 %3756  ;;  %v3921_v35 = vmul.f32 %v5336_v7, %v7691_v36  ;;  %v3923_v3 = vmul.f32 %v5336_v7, %v7692_v38  ;;  %v3920_v23 = vmul.f32 %v5336_v7, %v7693_v42  ;;  %v7709_v36 = vld [vmem:[#allocation36_spill] sm:$0xff]  ;;  %v7710_v38 = vld [vmem:[#allocation39_spill] sm:$0xff] }
 0x5ed   : > { %5341 = vrcp.f32 %v3757_v8  ;;  %4831 = vmatpush1.bf16.msra.mxu0 %v4830_v30  ;;  %4895 = vmatpush1.bf16.msra.mxu1 %v4894_v62  ;;  %v3922_v29 = vmul.f32 %v5336_v7, %v7694_v46  ;;  %v7707_v62 = vld [vmem:[#allocation38_spill] sm:$0xff]  ;;  %v7708_v8 = vld [vmem:[#allocation41_spill] sm:$0xff] }
 0x5ef   : > { %v5338_v5 = vpop.eup %5337 }
 0x5f0   : > { %v3762_v25 = vpop.xlane.xlu0 %3761  ;;  %v3925_v32 = vmul.f32 %v5338_v5, %v7695_v19  ;;  %v3927_v15 = vmul.f32 %v5338_v5, %v7696_v56  ;;  %v3924_v28 = vmul.f32 %v5338_v5, %v7697_v40  ;;  %v3926_v50 = vmul.f32 %v5338_v5, %v7698_v0  ;;  %v7713_v19 = vld [vmem:[#allocation40_spill] sm:$0xff]  ;;  %v7714_v56 = vld [vmem:[#allocation43_spill] sm:$0xff] }
 0x5f1   : > { %5343 = vrcp.f32 %v3762_v25 }
 0x5f2   : > { %v4832_v60 = vpack.c.bf16 %v3925_v32, %v3921_v35  ;;  %v4896_v4 = vpack.c.bf16 %v3927_v15, %v3923_v3  ;;  %v4834_v14 = vpack.c.bf16 %v3924_v28, %v3920_v23  ;;  %v4898_v59 = vpack.c.bf16 %v3926_v50, %v3922_v29  ;;  %v7711_v23 = vld [vmem:[#allocation42_spill] sm:$0xff]  ;;  %v7712_v29 = vld [vmem:[#allocation45_spill] sm:$0xff] }
 0x5f3   : > { %v5340_v20 = vpop.eup %5339 }
 0x5f4   : > { %4833 = vmatprep.subr.bf16.mxu0 %v4832_v60  ;;  %4897 = vmatprep.subr.bf16.mxu1 %v4896_v4  ;;  %v3767_v51 = vpop.xlane.xlu1 %3766  ;;  %v3929_v44 = vmul.f32 %v5340_v20, %v7699_v17  ;;  %v3931_v6 = vmul.f32 %v5340_v20, %v7700_v52  ;;  %v3928_v43 = vmul.f32 %v5340_v20, %v7701_v31  ;;  %v7717_v17 = vld [vmem:[#allocation44_spill] sm:$0xff]  ;;  %v7718_v52 = vld [vmem:[#allocation47_spill] sm:$0xff] }
 0x5f5   : > { %5345 = vrcp.f32 %v3767_v51  ;;  %4835 = vmatpush1.bf16.msra.mxu0 %v4834_v14  ;;  %4899 = vmatpush1.bf16.msra.mxu1 %v4898_v59  ;;  %v3930_v10 = vmul.f32 %v5340_v20, %v7702_v21  ;;  %v7715_v59 = vld [vmem:[#allocation46_spill] sm:$0xff]  ;;  %v7716_v51 = vld [vmem:[#allocation49_spill] sm:$0xff] }
 0x5f7   : > { %v5342_v1 = vpop.eup %5341 }
 0x5f8   : > { %v3772_v9 = vpop.xlane.xlu0 %3771  ;;  %v3933_v2 = vmul.f32 %v5342_v1, %v7703_v27  ;;  %v3935_v18 = vmul.f32 %v5342_v1, %v7704_v61  ;;  %v3932_v11 = vmul.f32 %v5342_v1, %v7705_v37  ;;  %v3934_v24 = vmul.f32 %v5342_v1, %v7706_v47  ;;  %v7721_v27 = vld [vmem:[#allocation48_spill] sm:$0xff]  ;;  %v7722_v61 = vld [vmem:[#allocation51_spill] sm:$0xff] }
 0x5f9   : > { %5347 = vrcp.f32 %v3772_v9 }
 0x5fa   : > { %v4836_v26 = vpack.c.bf16 %v3933_v2, %v3929_v44  ;;  %v4900_v22 = vpack.c.bf16 %v3935_v18, %v3931_v6  ;;  %v4838_v45 = vpack.c.bf16 %v3932_v11, %v3928_v43  ;;  %v4902_v41 = vpack.c.bf16 %v3934_v24, %v3930_v10  ;;  %v7719_v43 = vld [vmem:[#allocation50_spill] sm:$0xff]  ;;  %v7720_v10 = vld [vmem:[#allocation53_spill] sm:$0xff] }
 0x5fb   : > { %v5344_v55 = vpop.eup %5343 }
 0x5fc   : > { %v3777_v12 = vpop.xlane.xlu1 %3776  ;;  %4837 = vmatprep.subr.bf16.mxu0 %v4836_v26  ;;  %4901 = vmatprep.subr.bf16.mxu1 %v4900_v22  ;;  %v3937_v7 = vmul.f32 %v5344_v55, %v7707_v62  ;;  %v3939_v5 = vmul.f32 %v5344_v55, %v7708_v8  ;;  %v3936_v35 = vmul.f32 %v5344_v55, %v7709_v36  ;;  %v7725_v62 = vld [vmem:[#allocation52_spill] sm:$0xff]  ;;  %v7726_v8 = vld [vmem:[#allocation55_spill] sm:$0xff] }
 0x5fd   : > { %5349 = vrcp.f32 %v3777_v12  ;;  %4839 = vmatpush1.bf16.msra.mxu0 %v4838_v45  ;;  %4903 = vmatpush1.bf16.msra.mxu1 %v4902_v41  ;;  %v3938_v3 = vmul.f32 %v5344_v55, %v7710_v38  ;;  %v7723_v41 = vld [vmem:[#allocation54_spill] sm:$0xff]  ;;  %v7724_v12 = vld [vmem:[#allocation57_spill] sm:$0xff] }
 0x5ff   : > { %v5346_v30 = vpop.eup %5345 }
 0x600   : > { %v3782_v42 = vpop.xlane.xlu0 %3781  ;;  %v3941_v46 = vmul.f32 %v5346_v30, %v7711_v23  ;;  %v3943_v25 = vmul.f32 %v5346_v30, %v7712_v29  ;;  %v3940_v32 = vmul.f32 %v5346_v30, %v7713_v19  ;;  %v3942_v15 = vmul.f32 %v5346_v30, %v7714_v56  ;;  %v7729_v23 = vld [vmem:[#allocation56_spill] sm:$0xff]  ;;  %v7730_v29 = vld [vmem:[#allocation59_spill] sm:$0xff] }
 0x601   : > { %5351 = vrcp.f32 %v3782_v42 }
 0x602   : > { %v4840_v40 = vpack.c.bf16 %v3941_v46, %v3937_v7  ;;  %v4904_v28 = vpack.c.bf16 %v3943_v25, %v3939_v5  ;;  %v4842_v0 = vpack.c.bf16 %v3940_v32, %v3936_v35  ;;  %v4906_v50 = vpack.c.bf16 %v3942_v15, %v3938_v3  ;;  %v7727_v35 = vld [vmem:[#allocation58_spill] sm:$0xff]  ;;  %v7728_v3 = vld [vmem:[#allocation61_spill] sm:$0xff] }
 0x603   : > { %v5348_v60 = vpop.eup %5347 }
 0x604   : > { %v3787_v4 = vpop.xlane.xlu1 %3786  ;;  %4841 = vmatprep.subr.bf16.mxu0 %v4840_v40  ;;  %4905 = vmatprep.subr.bf16.mxu1 %v4904_v28  ;;  %v3945_v20 = vmul.f32 %v5348_v60, %v7715_v59  ;;  %v3947_v1 = vmul.f32 %v5348_v60, %v7716_v51  ;;  %v3944_v44 = vmul.f32 %v5348_v60, %v7717_v17  ;;  %v7733_v59 = vld [vmem:[#allocation60_spill] sm:$0xff]  ;;  %v7734_v51 = vld [vmem:[#allocation63_spill] sm:$0xff] }
 0x605   : > { %5353 = vrcp.f32 %v3787_v4  ;;  %4843 = vmatpush1.bf16.msra.mxu0 %v4842_v0  ;;  %4907 = vmatpush1.bf16.msra.mxu1 %v4906_v50  ;;  %v3946_v6 = vmul.f32 %v5348_v60, %v7718_v52  ;;  %v7731_v50 = vld [vmem:[#allocation62_spill] sm:$0xff]  ;;  %v7732_v4 = vld [vmem:[#allocation65_spill] sm:$0xff] }
 0x607   : > { %v5350_v14 = vpop.eup %5349 }
 0x608   : > { %v3792_v31 = vpop.xlane.xlu0 %3791  ;;  %v3949_v21 = vmul.f32 %v5350_v14, %v7719_v43  ;;  %v3951_v9 = vmul.f32 %v5350_v14, %v7720_v10  ;;  %v3948_v2 = vmul.f32 %v5350_v14, %v7721_v27  ;;  %v3950_v18 = vmul.f32 %v5350_v14, %v7722_v61  ;;  %v7737_v43 = vld [vmem:[#allocation64_spill] sm:$0xff]  ;;  %v7738_v10 = vld [vmem:[#allocation67_spill] sm:$0xff] }
 0x609   : > { %5355 = vrcp.f32 %v3792_v31 }
 0x60a   : > { %v4844_v37 = vpack.c.bf16 %v3949_v21, %v3945_v20  ;;  %v4908_v11 = vpack.c.bf16 %v3951_v9, %v3947_v1  ;;  %v4846_v47 = vpack.c.bf16 %v3948_v2, %v3944_v44  ;;  %v4910_v24 = vpack.c.bf16 %v3950_v18, %v3946_v6  ;;  %v7735_v44 = vld [vmem:[#allocation66_spill] sm:$0xff]  ;;  %v7736_v6 = vld [vmem:[#allocation69_spill] sm:$0xff] }
 0x60b   : > { %v5352_v26 = vpop.eup %5351 }
 0x60c   : > { %v3797_v22 = vpop.xlane.xlu1 %3796  ;;  %4845 = vmatprep.subr.bf16.mxu0 %v4844_v37  ;;  %4909 = vmatprep.subr.bf16.mxu1 %v4908_v11  ;;  %v3953_v55 = vmul.f32 %v5352_v26, %v7723_v41  ;;  %v3955_v30 = vmul.f32 %v5352_v26, %v7724_v12  ;;  %v3952_v7 = vmul.f32 %v5352_v26, %v7725_v62  ;;  %v7741_v41 = vld [vmem:[#allocation68_spill] sm:$0xff]  ;;  %v7742_v12 = vld [vmem:[#allocation71_spill] sm:$0xff] }
 0x60d   : > { %5357 = vrcp.f32 %v3797_v22  ;;  %4847 = vmatpush1.bf16.msra.mxu0 %v4846_v47  ;;  %4911 = vmatpush1.bf16.msra.mxu1 %v4910_v24  ;;  %v3954_v5 = vmul.f32 %v5352_v26, %v7726_v8  ;;  %v7739_v24 = vld [vmem:[#allocation70_spill] sm:$0xff]  ;;  %v7740_v22 = vld [vmem:[#allocation73_spill] sm:$0xff] }
 0x60f   : > { %v5354_v45 = vpop.eup %5353 }
 0x610   : > { %v3802_v36 = vpop.xlane.xlu0 %3801  ;;  %v3957_v38 = vmul.f32 %v5354_v45, %v7727_v35  ;;  %v3959_v42 = vmul.f32 %v5354_v45, %v7728_v3  ;;  %v3956_v46 = vmul.f32 %v5354_v45, %v7729_v23  ;;  %v3958_v25 = vmul.f32 %v5354_v45, %v7730_v29  ;;  %v7745_v35 = vld [vmem:[#allocation72_spill] sm:$0xff]  ;;  %v7746_v3 = vld [vmem:[#allocation75_spill] sm:$0xff] }
 0x611   : > { %5359 = vrcp.f32 %v3802_v36 }
 0x612   : > { %v4848_v19 = vpack.c.bf16 %v3957_v38, %v3953_v55  ;;  %v4912_v32 = vpack.c.bf16 %v3959_v42, %v3955_v30  ;;  %v4850_v56 = vpack.c.bf16 %v3956_v46, %v3952_v7  ;;  %v4914_v15 = vpack.c.bf16 %v3958_v25, %v3954_v5  ;;  %v7743_v7 = vld [vmem:[#allocation74_spill] sm:$0xff]  ;;  %v7744_v5 = vld [vmem:[#allocation77_spill] sm:$0xff] }
 0x613   : > { %v5356_v40 = vpop.eup %5355 }
 0x614   : > { %v3807_v28 = vpop.xlane.xlu1 %3806  ;;  %4849 = vmatprep.subr.bf16.mxu0 %v4848_v19  ;;  %4913 = vmatprep.subr.bf16.mxu1 %v4912_v32  ;;  %v3961_v60 = vmul.f32 %v5356_v40, %v7731_v50  ;;  %v3963_v14 = vmul.f32 %v5356_v40, %v7732_v4  ;;  %v3960_v20 = vmul.f32 %v5356_v40, %v7733_v59  ;;  %v7750_v59 = vld [vmem:[#allocation76_spill] sm:$0xff] }
 0x615   : > { %5361 = vrcp.f32 %v3807_v28  ;;  %4851 = vmatpush1.bf16.msra.mxu0 %v4850_v56  ;;  %4915 = vmatpush1.bf16.msra.mxu1 %v4914_v15  ;;  %v3962_v1 = vmul.f32 %v5356_v40, %v7734_v51  ;;  %v7747_v40 = vld [vmem:[#allocation78_spill] sm:$0xff]  ;;  %v7751_v51 = vld [vmem:[#allocation80_spill] sm:$0xff] }
 0x617   : > { %v5358_v0 = vpop.eup %5357 }
 0x618   : > { %v3812_v17 = vpop.xlane.xlu0 %3811  ;;  %v3965_v52 = vmul.f32 %v5358_v0, %v7735_v44  ;;  %v3967_v31 = vmul.f32 %v5358_v0, %v7736_v6  ;;  %v3964_v21 = vmul.f32 %v5358_v0, %v7737_v43  ;;  %v3966_v9 = vmul.f32 %v5358_v0, %v7738_v10  ;;  %v7748_v0 = vld [vmem:[#allocation81_spill] sm:$0xff] }
 0x619   : > { %5363 = vrcp.f32 %v3812_v17  ;;  %v7752_v17 = vld [vmem:[#allocation79_spill] sm:$0xff] }
 0x61a   : > { %v4852_v27 = vpack.c.bf16 %v3965_v52, %v3961_v60  ;;  %v4916_v2 = vpack.c.bf16 %v3967_v31, %v3963_v14  ;;  %v4854_v61 = vpack.c.bf16 %v3964_v21, %v3960_v20  ;;  %v4918_v18 = vpack.c.bf16 %v3966_v9, %v3962_v1  ;;  %v7749_v60 = vld [vmem:[#allocation82_spill] sm:$0xff] }
 0x61b   : > { %v5360_v37 = vpop.eup %5359 }
 0x61c   : > { %v3817_v11 = vpop.xlane.xlu1 %3816  ;;  %4853 = vmatprep.subr.bf16.mxu0 %v4852_v27  ;;  %4917 = vmatprep.subr.bf16.mxu1 %v4916_v2  ;;  %v3969_v26 = vmul.f32 %v5360_v37, %v7739_v24  ;;  %v3971_v45 = vmul.f32 %v5360_v37, %v7740_v22  ;;  %v3968_v55 = vmul.f32 %v5360_v37, %v7741_v41  ;;  %v7753_v2 = vld [vmem:[#allocation85_spill] sm:$0xff] }
 0x61d   : > { %5365 = vrcp.f32 %v3817_v11  ;;  %4855 = vmatpush1.bf16.msra.mxu0 %v4854_v61  ;;  %4919 = vmatpush1.bf16.msra.mxu1 %v4918_v18  ;;  %v3970_v30 = vmul.f32 %v5360_v37, %v7742_v12  ;;  %v7754_v11 = vld [vmem:[#allocation83_spill] sm:$0xff] }
 0x61f   : > { %v5362_v47 = vpop.eup %5361 }
 0x620   : > { %v3822_v62 = vpop.xlane.xlu0 %3821  ;;  %v3973_v8 = vmul.f32 %v5362_v47, %v7743_v7  ;;  %v3975_v36 = vmul.f32 %v5362_v47, %v7744_v5  ;;  %v3972_v38 = vmul.f32 %v5362_v47, %v7745_v35  ;;  %v3974_v42 = vmul.f32 %v5362_v47, %v7746_v3 }
 0x621   : > { %5367 = vrcp.f32 %v3822_v62 }
 0x622   : > { %v4856_v23 = vpack.c.bf16 %v3973_v8, %v3969_v26  ;;  %v4920_v46 = vpack.c.bf16 %v3975_v36, %v3971_v45  ;;  %v4858_v29 = vpack.c.bf16 %v3972_v38, %v3968_v55  ;;  %v4922_v25 = vpack.c.bf16 %v3974_v42, %v3970_v30  ;;  %v7756_v8 = vld [vmem:[#allocation89_spill] sm:$0xff]  ;;  %v7757_v36 = vld [vmem:[#allocation84_spill] sm:$0xff]  ;;  %v7758_v38 = vld [vmem:[#allocation87_spill] sm:$0xff] }
 0x623   : > { %v5364_v19 = vpop.eup %5363 }
 0x624   : > { %v3827_v32 = vpop.xlane.xlu1 %3826  ;;  %4857 = vmatprep.subr.bf16.mxu0 %v4856_v23  ;;  %4921 = vmatprep.subr.bf16.mxu1 %v4920_v46  ;;  %v3977_v28 = vmul.f32 %v5364_v19, %v7747_v40  ;;  %v3979_v50 = vmul.f32 %v5364_v19, %v7748_v0  ;;  %v3976_v20 = vmul.f32 %v5364_v19, %v7750_v59  ;;  %v7766_v59 = vld [vmem:[#allocation95_spill] sm:$0xff] }
 0x625   : > { %5369 = vrcp.f32 %v3827_v32  ;;  %4859 = vmatpush1.bf16.msra.mxu0 %v4858_v29  ;;  %4923 = vmatpush1.bf16.msra.mxu1 %v4922_v25  ;;  %v3978_v44 = vmul.f32 %v5364_v19, %v7752_v17  ;;  %v7761_v32 = vld [vmem:[#allocation88_spill] sm:$0xff] }
 0x627   : > { %v5366_v56 = vpop.eup %5365  ;;  %v3832_v15 = vpop.xlane.xlu0 %3831 }
 0x628   : > { %v3981_v4 = vmul.f32 %v5366_v56, %v7749_v60  ;;  %v3983_v14 = vmul.f32 %v5366_v56, %v6949_v48  ;;  %v3980_v1 = vmul.f32 %v5366_v56, %v7751_v51  ;;  %5371 = vrcp.f32 %v3832_v15  ;;  %v7762_v15 = vld [vmem:[#allocation91_spill] sm:$0xff] }
 0x629   : > { %v3982_v52 = vmul.f32 %v5366_v56, %v6944_v53 }
 0x62a   : > { %v4860_v6 = vpack.c.bf16 %v3981_v4, %v3977_v28  ;;  %v4924_v31 = vpack.c.bf16 %v3983_v14, %v3979_v50  ;;  %v4862_v43 = vpack.c.bf16 %v3980_v1, %v3976_v20  ;;  %v7763_v28 = vld [vmem:[#allocation94_spill] sm:$0xff]  ;;  %v7764_v50 = vld [vmem:[#allocation96_spill] sm:$0xff] }
 0x62b   : > { %v5368_v21 = vpop.eup %5367  ;;  %v3837_v10 = vpop.xlane.xlu1 %3836  ;;  %v4926_v9 = vpack.c.bf16 %v3982_v52, %v3978_v44  ;;  %v7765_v4 = vld [vmem:[#allocation92_spill] sm:$0xff]  ;;  %v4010_v52 = vld [vmem:[%s7038_s21] sm:$0xff] }
 0x62c   : > { %5373 = vrcp.f32 %v3837_v10  ;;  %4861 = vmatprep.subr.bf16.mxu0 %v4860_v6  ;;  %4925 = vmatprep.subr.bf16.mxu1 %v4924_v31  ;;  %v3985_v61 = vmul.f32 %v5368_v21, %v7753_v2  ;;  %v3987_v18 = vmul.f32 %v5368_v21, %v6965_v33  ;;  %v3984_v47 = vmul.f32 %v5368_v21, %v7754_v11  ;;  %v4013_v6 = vld [vmem:[%s7038_s21 + $0x28] sm:$0xff]  ;;  %v4012_v31 = vld [vmem:[%s7038_s21 + $0x20] sm:$0xff] }
 0x62d   : > { %4863 = vmatpush1.bf16.msra.mxu0 %v4862_v43  ;;  %4927 = vmatpush1.bf16.msra.mxu1 %v4926_v9  ;;  %v3986_v26 = vmul.f32 %v5368_v21, %v6960_v34  ;;  %v4015_v43 = vld [vmem:[%s7038_s21 + $0x48] sm:$0xff]  ;;  %v4014_v21 = vld [vmem:[%s7038_s21 + $0x40] sm:$0xff] }
 0x62e   : > { %v4017_v10 = vld [vmem:[%s7038_s21 + $0x68] sm:$0xff]  ;;  %v4016_v9 = vld [vmem:[%s7038_s21 + $0x60] sm:$0xff] }
 0x62f   : > { %v5370_v48 = vpop.eup %5369  ;;  %v3842_v27 = vpop.xlane.xlu0 %3841  ;;  %v4019_v2 = vld [vmem:[#allocation5 + $0x8] sm:$0xff] }
 0x630   : > { %v3989_v37 = vmul.f32 %v5370_v48, %v6973_v58  ;;  %v3991_v53 = vmul.f32 %v5370_v48, %v6981_v63  ;;  %v3988_v24 = vmul.f32 %v5370_v48, %v6971_v13  ;;  %5375 = vrcp.f32 %v3842_v27  ;;  %v7755_v63 = vld [vmem:[#allocation86_spill] sm:$0xff]  ;;  %v4020_v27 = vld [vmem:[#allocation5 + $0x10] sm:$0xff] }
 0x631   : > { %v3990_v22 = vmul.f32 %v5370_v48, %v6976_v57  ;;  %v4018_v48 = vld [vmem:[#allocation5] sm:$0xff] }
 0x632   : > { %v4864_v45 = vpack.c.bf16 %v3989_v37, %v3985_v61  ;;  %v4928_v41 = vpack.c.bf16 %v3991_v53, %v3987_v18  ;;  %v4866_v55 = vpack.c.bf16 %v3988_v24, %v3984_v47  ;;  %v5372_v12 = vpop.eup %5371  ;;  %v4021_v61 = vld [vmem:[#allocation5 + $0x18] sm:$0xff] }
 0x633   : > { %v3847_v30 = vpop.xlane.xlu1 %3846  ;;  %v4930_v62 = vpack.c.bf16 %v3990_v22, %v3986_v26  ;;  %v3993_v58 = vmul.f32 %v5372_v12, %v6989_v39  ;;  %v3995_v13 = vmul.f32 %v5372_v12, %v6996_v54  ;;  %v3992_v34 = vmul.f32 %v5372_v12, %v6987_v49  ;;  %v7759_v39 = vld [vmem:[#allocation90_spill] sm:$0xff]  ;;  %v7760_v54 = vld [vmem:[#allocation93_spill] sm:$0xff] }
 0x634   : > { %5377 = vrcp.f32 %v3847_v30  ;;  %4865 = vmatprep.subr.bf16.mxu0 %v4864_v45  ;;  %4929 = vmatprep.subr.bf16.mxu1 %v4928_v41  ;;  %v3994_v57 = vmul.f32 %v5372_v12, %v6992_v16  ;;  %v4022_v45 = vld [vmem:[#allocation5 + $0x20] sm:$0xff]  ;;  %v4024_v41 = vld [vmem:[#allocation5 + $0x30] sm:$0xff]  ;;  %v4025_v12 = vld [vmem:[#allocation5 + $0x38] sm:$0xff] }
 0x635   : > { %4867 = vmatpush1.bf16.msra.mxu0 %v4866_v55  ;;  %4931 = vmatpush1.bf16.msra.mxu1 %v4930_v62  ;;  %v4023_v55 = vld [vmem:[#allocation5 + $0x28] sm:$0xff] }
 0x636   : > { %v5374_v33 = vpop.eup %5373 }
 0x637   : > { %v3997_v7 = vmul.f32 %v5374_v33, %v7755_v63  ;;  %v3999_v5 = vmul.f32 %v5374_v33, %v7756_v8  ;;  %v3996_v35 = vmul.f32 %v5374_v33, %v7757_v36  ;;  %v3998_v3 = vmul.f32 %v5374_v33, %v7758_v38  ;;  %v4028_v8 = vld [vmem:[#allocation5 + $0x50] sm:$0xff]  ;;  %v4029_v36 = vld [vmem:[#allocation5 + $0x58] sm:$0xff] }
 0x639   : > { %v4868_v42 = vpack.c.bf16 %v3997_v7, %v3993_v58  ;;  %v4932_v23 = vpack.c.bf16 %v3999_v5, %v3995_v13  ;;  %v4870_v46 = vpack.c.bf16 %v3996_v35, %v3992_v34  ;;  %v4934_v29 = vpack.c.bf16 %v3998_v3, %v3994_v57  ;;  %v4026_v7 = vld [vmem:[#allocation5 + $0x40] sm:$0xff]  ;;  %v4027_v5 = vld [vmem:[#allocation5 + $0x48] sm:$0xff] }
 0x63a   : > { %v5376_v25 = vpop.eup %5375 }
 0x63b   : > { %4869 = vmatprep.subr.bf16.mxu0 %v4868_v42  ;;  %4933 = vmatprep.subr.bf16.mxu1 %v4932_v23  ;;  %v4001_v16 = vmul.f32 %v5376_v25, %v7759_v39  ;;  %v4003_v19 = vmul.f32 %v5376_v25, %v7760_v54  ;;  %v4000_v56 = vmul.f32 %v5376_v25, %v7761_v32  ;;  %v4032_v39 = vld [vmem:[#allocation5 + $0x70] sm:$0xff]  ;;  %v4033_v54 = vld [vmem:[#allocation5 + $0x78] sm:$0xff] }
 0x63c   : > { %4871 = vmatpush1.bf16.msra.mxu0 %v4870_v46  ;;  %4935 = vmatpush1.bf16.msra.mxu1 %v4934_v29  ;;  %v4002_v40 = vmul.f32 %v5376_v25, %v7762_v15 }
 0x63e   : > { %v5378_v49 = vpop.eup %5377 }
 0x63f   : > { %v4005_v0 = vmul.f32 %v5378_v49, %v7763_v28  ;;  %v4007_v60 = vmul.f32 %v5378_v49, %v7764_v50  ;;  %v4004_v14 = vmul.f32 %v5378_v49, %v7765_v4  ;;  %v4006_v20 = vmul.f32 %v5378_v49, %v7766_v59  ;;  %v4030_v49 = vld [vmem:[#allocation5 + $0x60] sm:$0xff] }
 0x640   : > { %v4282_v59 = vld [vmem:[%s5705_s26] sm:$0xff] (!%p4645_p9) }
 0x641   : > { %v4872_v51 = vpack.c.bf16 %v4005_v0, %v4001_v16  ;;  %v4936_v1 = vpack.c.bf16 %v4007_v60, %v4003_v19  ;;  %v4874_v17 = vpack.c.bf16 %v4004_v14, %v4000_v56  ;;  %v4938_v44 = vpack.c.bf16 %v4006_v20, %v4002_v40  ;;  %v4031_v16 = vld [vmem:[#allocation5 + $0x68] sm:$0xff] }
 0x642   : > { %v4283_v20 = vld [vmem:[%s5705_s26 + $0x8] sm:$0xff] (!%p4645_p9) }
 0x643   : > { %4873 = vmatprep.subr.bf16.mxu0 %v4872_v51  ;;  %4937 = vmatprep.subr.bf16.mxu1 %v4936_v1  ;;  %v4284_v51 = vld [vmem:[%s5705_s26 + $0x10] sm:$0xff] (!%p4645_p9) }
 0x644   : > { %4875 = vmatpush1.bf16.msra.mxu0 %v4874_v17  ;;  %4939 = vmatpush1.bf16.msra.mxu1 %v4938_v44  ;;  %v4285_v17 = vld [vmem:[%s5705_s26 + $0x18] sm:$0xff] (!%p4645_p9) }
 0x647   : > { %4099 = vmatmul.mubr.f32.vlgmr.msra.gmra.mrb[64].mxu0 %v4010_v52  ;;  %4188 = vmatmul.mubr.f32.vlgmr.msra.gmra.mrb[64].mxu1 %v4010_v52 }
 0x648   : > { %4104 = vmatprep.mubr.f32.mxu0 %v4013_v6  ;;  %4193 = vmatprep.mubr.f32.mxu1 %v4013_v6 }
 0x64b   : > { %4105 = vmatmul.mubr.f32.gmra.mrb[66].mxu0 %v4012_v31  ;;  %4194 = vmatmul.mubr.f32.gmra.mrb[66].mxu1 %v4012_v31 }
 0x64c   : > { %4110 = vmatprep.mubr.f32.mxu0 %v4015_v43  ;;  %4199 = vmatprep.mubr.f32.mxu1 %v4015_v43  ;;  %v4265_v43 = vstv (!%p4645_p9), %s4248_s24 }
 0x64f   : > { %4111 = vmatmul.mubr.f32.gmra.mrb[68].mxu0 %v4014_v21  ;;  %4200 = vmatmul.mubr.f32.gmra.mrb[68].mxu1 %v4014_v21  ;;  %v4286_v21 = vld [vmem:[%s5705_s26 + $0x20] sm:$0xff] (!%p4645_p9) }
 0x650   : > { %4116 = vmatprep.mubr.f32.mxu0 %v4017_v10  ;;  %4205 = vmatprep.mubr.f32.mxu1 %v4017_v10  ;;  %v4287_v10 = vld [vmem:[%s5705_s26 + $0x28] sm:$0xff] (!%p4645_p9) }
 0x653   : > { %4117 = vmatmul.mubr.f32.gmra.mrb[70].mxu0 %v4016_v9  ;;  %4206 = vmatmul.mubr.f32.gmra.mrb[70].mxu1 %v4016_v9  ;;  %v4288_v9 = vld [vmem:[%s5705_s26 + $0x30] sm:$0xff] (!%p4645_p9) }
 0x71a   : > { %v4100_v18 = vpop.f32.mrb[64].mxu0  ;;  %v4189_v37 = vpop.f32.mrb[64].mxu1 }
 0x71b   : > { %v4212_v53 = vadd.f32 %v4100_v18, %v4018_v48  ;;  %v4214_v11 = vadd.f32 %v4189_v37, %v4020_v27  ;;  %v4102_v47 = vpop.f32.mrb[65].mxu0  ;;  %v4191_v24 = vpop.f32.mrb[65].mxu1  ;;  %v4289_v18 = vld [vmem:[%s5705_s26 + $0x38] sm:$0xff] (!%p4645_p9) }
 0x71c   : > { %v4213_v26 = vadd.f32 %v4102_v47, %v4019_v2  ;;  %v4215_v22 = vadd.f32 %v4191_v24, %v4021_v61 }
 0x71d   : > { %4228 = vst [vmem:[#allocation5] sm:$0xff] %v4212_v53  ;;  %4230 = vst [vmem:[#allocation5 + $0x10] sm:$0xff] %v4214_v11 }
 0x71e   : > { %4229 = vst [vmem:[#allocation5 + $0x8] sm:$0xff] %v4213_v26  ;;  %4231 = vst [vmem:[#allocation5 + $0x18] sm:$0xff] %v4215_v22  ;;  %v4106_v30 = vpop.f32.mrb[66].mxu0  ;;  %v4195_v62 = vpop.f32.mrb[66].mxu1  ;;  %v4290_v22 = vld [vmem:[%s5705_s26 + $0x40] sm:$0xff] (!%p4645_p9) }
 0x71f   : > { %v4216_v33 = vadd.f32 %v4106_v30, %v4022_v45  ;;  %v4218_v58 = vadd.f32 %v4195_v62, %v4024_v41  ;;  %v4108_v13 = vpop.f32.mrb[67].mxu0  ;;  %v4197_v34 = vpop.f32.mrb[67].mxu1  ;;  %v4291_v45 = vld [vmem:[%s5705_s26 + $0x48] sm:$0xff] (!%p4645_p9) }
 0x720   : > { %v4217_v57 = vadd.f32 %v4108_v13, %v4023_v55  ;;  %v4219_v63 = vadd.f32 %v4197_v34, %v4025_v12  ;;  %v4292_v55 = vld [vmem:[%s5705_s26 + $0x50] sm:$0xff] (!%p4645_p9) }
 0x721   : > { %4232 = vst [vmem:[#allocation5 + $0x20] sm:$0xff] %v4216_v33  ;;  %4234 = vst [vmem:[#allocation5 + $0x30] sm:$0xff] %v4218_v58 }
 0x722   : > { %4233 = vst [vmem:[#allocation5 + $0x28] sm:$0xff] %v4217_v57  ;;  %4235 = vst [vmem:[#allocation5 + $0x38] sm:$0xff] %v4219_v63  ;;  %v4112_v35 = vpop.f32.mrb[68].mxu0  ;;  %v4201_v38 = vpop.f32.mrb[68].mxu1 }
 0x723   : > { %v4220_v3 = vadd.f32 %v4112_v35, %v4026_v7  ;;  %v4222_v42 = vadd.f32 %v4201_v38, %v4028_v8  ;;  %v4114_v23 = vpop.f32.mrb[69].mxu0  ;;  %v4203_v46 = vpop.f32.mrb[69].mxu1  ;;  %v4294_v35 = vld [vmem:[%s5705_s26 + $0x60] sm:$0xff] (!%p4645_p9) }
 0x724   : > { %v4221_v29 = vadd.f32 %v4114_v23, %v4027_v5  ;;  %v4223_v25 = vadd.f32 %v4203_v46, %v4029_v36  ;;  %4247 = sbr.rel (%p4645_p9) target bundleno = 1847 (0x737), region = 72  ;;  %v4249_v60 = vld [vmem:[#allocation5] sm:$0xff] (!%p4645_p9)  ;;  %v4251_v14 = vld [vmem:[#allocation5 + $0x10] sm:$0xff] (!%p4645_p9)  ;;  %v4293_v36 = vld [vmem:[%s5705_s26 + $0x58] sm:$0xff] (!%p4645_p9) }
 0x725   : > { %4236 = vst [vmem:[#allocation5 + $0x40] sm:$0xff] %v4220_v3  ;;  %4238 = vst [vmem:[#allocation5 + $0x50] sm:$0xff] %v4222_v42  ;;  %v4250_v4 = vld [vmem:[#allocation5 + $0x8] sm:$0xff] (!%p4645_p9)  ;;  %v4252_v1 = vld [vmem:[#allocation5 + $0x18] sm:$0xff] (!%p4645_p9)  ;;  %v4266_v48 = vmul.f32 (!%p4645_p9), %v4265_v43, %v4249_v60  ;;  %v4268_v2 = vmul.f32 (!%p4645_p9), %v4265_v43, %v4251_v14 }
 0x726   : > { %4237 = vst [vmem:[#allocation5 + $0x48] sm:$0xff] %v4221_v29  ;;  %4239 = vst [vmem:[#allocation5 + $0x58] sm:$0xff] %v4223_v25  ;;  %v4118_v19 = vpop.f32.mrb[70].mxu0  ;;  %v4207_v32 = vpop.f32.mrb[70].mxu1  ;;  %v4267_v27 = vmul.f32 (!%p4645_p9), %v4265_v43, %v4250_v4  ;;  %v4269_v61 = vmul.f32 (!%p4645_p9), %v4265_v43, %v4252_v1  ;;  %v4295_v29 = vld [vmem:[%s5705_s26 + $0x68] sm:$0xff] (!%p4645_p9)  ;;  %v4296_v25 = vld [vmem:[%s5705_s26 + $0x70] sm:$0xff] (!%p4645_p9) }
 0x727   : > { %v4224_v56 = vadd.f32 %v4118_v19, %v4030_v49  ;;  %v4226_v15 = vadd.f32 %v4207_v32, %v4032_v39  ;;  %v4120_v40 = vpop.f32.mrb[71].mxu0  ;;  %v4209_v28 = vpop.f32.mrb[71].mxu1  ;;  %v4298_v30 = vadd.f32 (!%p4645_p9), %v4282_v59, %v4266_v48  ;;  %v4300_v33 = vadd.f32 (!%p4645_p9), %v4284_v51, %v4268_v2  ;;  %v4297_v49 = vld [vmem:[%s5705_s26 + $0x78] sm:$0xff] (!%p4645_p9) }
 0x728   : > { %v4225_v0 = vadd.f32 %v4120_v40, %v4031_v16  ;;  %v4227_v50 = vadd.f32 %v4209_v28, %v4033_v54  ;;  %v4253_v44 = vld [vmem:[#allocation5 + $0x20] sm:$0xff] (!%p4645_p9)  ;;  %v4255_v6 = vld [vmem:[#allocation5 + $0x30] sm:$0xff] (!%p4645_p9)  ;;  %v4299_v62 = vadd.f32 (!%p4645_p9), %v4283_v20, %v4267_v27  ;;  %v4301_v58 = vadd.f32 (!%p4645_p9), %v4285_v17, %v4269_v61 }
 0x729   : > { %4240 = vst [vmem:[#allocation5 + $0x60] sm:$0xff] %v4224_v56  ;;  %4242 = vst [vmem:[#allocation5 + $0x70] sm:$0xff] %v4226_v15  ;;  %v4254_v52 = vld [vmem:[#allocation5 + $0x28] sm:$0xff] (!%p4645_p9)  ;;  %v4256_v31 = vld [vmem:[#allocation5 + $0x38] sm:$0xff] (!%p4645_p9)  ;;  %v4270_v11 = vmul.f32 (!%p4645_p9), %v4265_v43, %v4253_v44  ;;  %v4272_v24 = vmul.f32 (!%p4645_p9), %v4265_v43, %v4255_v6 }
 0x72a   : > { %4241 = vst [vmem:[#allocation5 + $0x68] sm:$0xff] %v4225_v0  ;;  %4243 = vst [vmem:[#allocation5 + $0x78] sm:$0xff] %v4227_v50  ;;  %v4271_v47 = vmul.f32 (!%p4645_p9), %v4265_v43, %v4254_v52  ;;  %v4273_v26 = vmul.f32 (!%p4645_p9), %v4265_v43, %v4256_v31 }
 0x72b   : > { %v4302_v63 = vadd.f32 %v4286_v21, %v4270_v11  ;;  %v4304_v8 = vadd.f32 %v4288_v9, %v4272_v24  ;;  %4314 = vst [vmem:[%s5712_s23] sm:$0xff] %v4298_v30  ;;  %4315 = vst [vmem:[%s5712_s23 + $0x8] sm:$0xff] %v4299_v62 }
 0x72c   : > { %v4257_v37 = vld [vmem:[#allocation5 + $0x40] sm:$0xff]  ;;  %v4259_v41 = vld [vmem:[#allocation5 + $0x50] sm:$0xff]  ;;  %v4303_v7 = vadd.f32 %v4287_v10, %v4271_v47  ;;  %v4305_v5 = vadd.f32 %v4289_v18, %v4273_v26  ;;  %4316 = vst [vmem:[%s5712_s23 + $0x10] sm:$0xff] %v4300_v33  ;;  %4317 = vst [vmem:[%s5712_s23 + $0x18] sm:$0xff] %v4301_v58 }
 0x72d   : > { %v4258_v53 = vld [vmem:[#allocation5 + $0x48] sm:$0xff]  ;;  %v4260_v12 = vld [vmem:[#allocation5 + $0x58] sm:$0xff]  ;;  %v4274_v3 = vmul.f32 %v4265_v43, %v4257_v37  ;;  %v4276_v23 = vmul.f32 %v4265_v43, %v4259_v41  ;;  %4318 = vst [vmem:[%s5712_s23 + $0x20] sm:$0xff] %v4302_v63  ;;  %4320 = vst [vmem:[%s5712_s23 + $0x30] sm:$0xff] %v4304_v8 }
 0x72e   : > { %v4275_v42 = vmul.f32 %v4265_v43, %v4258_v53  ;;  %v4277_v46 = vmul.f32 %v4265_v43, %v4260_v12  ;;  %4319 = vst [vmem:[%s5712_s23 + $0x28] sm:$0xff] %v4303_v7  ;;  %4321 = vst [vmem:[%s5712_s23 + $0x38] sm:$0xff] %v4305_v5 }
 0x72f   : > { %v4306_v32 = vadd.f32 %v4290_v22, %v4274_v3  ;;  %v4308_v15 = vadd.f32 %v4292_v55, %v4276_v23 }
 0x730   : > { %v4261_v13 = vld [vmem:[#allocation5 + $0x60] sm:$0xff]  ;;  %v4263_v57 = vld [vmem:[#allocation5 + $0x70] sm:$0xff]  ;;  %v4307_v56 = vadd.f32 %v4291_v45, %v4275_v42  ;;  %v4309_v40 = vadd.f32 %v4293_v36, %v4277_v46 }
 0x731   : > { %v4262_v34 = vld [vmem:[#allocation5 + $0x68] sm:$0xff]  ;;  %v4264_v38 = vld [vmem:[#allocation5 + $0x78] sm:$0xff]  ;;  %v4278_v39 = vmul.f32 %v4265_v43, %v4261_v13  ;;  %v4280_v54 = vmul.f32 %v4265_v43, %v4263_v57  ;;  %4322 = vst [vmem:[%s5712_s23 + $0x40] sm:$0xff] %v4306_v32  ;;  %4324 = vst [vmem:[%s5712_s23 + $0x50] sm:$0xff] %v4308_v15 }
 0x732   : > { %v4279_v16 = vmul.f32 %v4265_v43, %v4262_v34  ;;  %v4281_v19 = vmul.f32 %v4265_v43, %v4264_v38  ;;  %4323 = vst [vmem:[%s5712_s23 + $0x48] sm:$0xff] %v4307_v56  ;;  %4325 = vst [vmem:[%s5712_s23 + $0x58] sm:$0xff] %v4309_v40 }
 0x733   : > { %v4310_v28 = vadd.f32 %v4294_v35, %v4278_v39  ;;  %v4312_v50 = vadd.f32 %v4296_v25, %v4280_v54 }
 0x734   : > { %v4311_v0 = vadd.f32 %v4295_v29, %v4279_v16  ;;  %v4313_v60 = vadd.f32 %v4297_v49, %v4281_v19 }
 0x735   : > { %4326 = vst [vmem:[%s5712_s23 + $0x60] sm:$0xff] %v4310_v28  ;;  %4328 = vst [vmem:[%s5712_s23 + $0x70] sm:$0xff] %v4312_v50 }
 0x736   : > { %4327 = vst [vmem:[%s5712_s23 + $0x68] sm:$0xff] %v4311_v0  ;;  %4329 = vst [vmem:[%s5712_s23 + $0x78] sm:$0xff] %v4313_v60 }
 0x737 PF: > { %s4651_s18 = sshll.u32 %s5495_s19, 11  ;;  %s4344_s25 = sshll.u32 %s5712_s23, 4  ;;  %s7216_s25 = int_to_ptr.vmem [resolvable:$true] %s4344_s25 }
 0x738   : > { %s7213_s12 = scalar_lea.hbm %s7280_s10, %s4651_s18  ;;  %s4331_s28 = scalar_lea.sflag [#allocation9], %s5701_s9 }
 0x739   : > { %s5409_s30 = scalar_lea.vmem %s7216_s25, 2048  ;;  %p7767_p0 = scmp.ne.s32.totalorder %s7448_s29, 0 }
 0x73a   : > { %p5410_p11 = scmp.ne.s32.totalorder %s7216_s25, %s5409_s30  ;;  %s5515_s27 = smov [#allocation10]  }
 0x73b   : > { %s5413_s20 = sshll.u32 %s5515_s27, 4  ;;  %s5414_s20 = int_to_ptr.vmem [resolvable:$false] %s5413_s20 }
 0x73c   : > { %p5411_p12 = pnand %p5410_p11, %p7767_p0  ;;  %s5415_s19 = scalar_lea.vmem %s5414_s20, 4096 }
 0x73d   : > { %p5416_p2 = scmp.lt.s32.totalorder %s7216_s25, %s5414_s20  ;;  %p5417_p4 = scmp.lt.s32.totalorder %s5415_s19, %s5409_s30 }
 0x73e   : > { %p5412_p13 = pneg %p5411_p12 }
 0x73f   : > { %p5418_p6 = por %p5417_p4, %p5416_p2 }
 0x741   : > { %p5419_p7 = pnand %p5418_p6, %p5412_p13 }
 0x743   : > { %5422 = shalt.err (!%p5419_p7)
}
 0x744   : > { %s5423_s23 = scalar_lea.hbm %s7213_s12, 2048  ;;  %s5427_s24 = scalar_lea.hbm %s7280_s10, 4096 }
 0x745   : > { %p5424_p8 = scmp.ne.s32.totalorder %s7213_s12, %s5423_s23  ;;  %p5428_p5 = scmp.lt.u32.totalorder %s7213_s12, %s7280_s10 }
 0x746   : > { %p5429_p10 = scmp.lt.u32.totalorder %s5427_s24, %s5423_s23  ;;  %p5431_p11 = scmp.lt.u32.totalorder %s5423_s23, %s7213_s12 }
 0x747   : > { %p5425_p1 = pnand %p5424_p8, %p7767_p0 }
 0x748   : > { %p5430_p9 = por %p5429_p10, %p5428_p5 }
 0x749   : > { %p5426_p3 = pneg %p5425_p1 }
 0x74a   : > { %p5432_p12 = por %p5431_p11, %p5430_p9 }
 0x74c   : > { %p5433_p13 = pnand %p5432_p12, %p5426_p3 }
 0x74e   : > { %5436 = shalt.err (!%p5433_p13)
}
 0x74f   : > { %s5516_s14 = smov 512   ;;  %s5517_s30 = smov 32  }
 0x750   : > { %4971 = dma.vmem_to_hbm [thread:$0]  (%p7767_p0), %s7216_s25, 2048, %s7213_s12, %s4331_s28, %s5516_s14, %s5516_s14, %s5517_s30  }
 0x751 PF: > { %p4982_p2 = scmp.ge.s32.totalorder %s5507_s22, 2  ;;  %s4359_s27 = sand.u32 1, %s5479_s15  }
 0x752   : > { %p7768_p4 = scmp.ne.s32.totalorder %s7449_s11, 0  ;;  %s4360_s20 = scalar_lea.sflag [#allocation9], %s4359_s27 }
 0x754   : > { %p4978_p6 = pnand %p4982_p2, %p7768_p4 }
 0x756   : > { %5474 = dma.done.wait (!%p4978_p6), %s4360_s20, 2048  }
 0x757   : > { %5476 = vsyncadd (!%p4978_p6), %s4360_s20, 4294965248  ;;  %s27_s22 = sadd.s32 1, %s5507_s22   ;;  %s7769_s19 = sld [smem:[#allocation17_spill]] }
 0x758   : > { %p24_p7 = scmp.ge.s32.totalorder %s27_s22, 6   ;;  %s7770_s18 = sld [smem:[#allocation13_spill]] }
 0x759   : > { %s7771_s29 = sld [smem:[#allocation14_spill]]  ;;  %s7772_s20 = sld [smem:[#allocation15_spill]] }
 0x75a   : > { %s7773_s21 = sld [smem:[#allocation16_spill]]  ;;  %s7774_s15 = smov %s5483_s16 }
 0x75b   : > { %s7775_s16 = smov %s5487_s17  ;;  %26 = sbr.rel (!%p24_p7) target bundleno = 9 (0x9), region = 127 }
 0x75d   : > { %s7776_s17 = smov %s7769_s19 }
 0x75f   : > { %s7777_s19 = smov %s7771_s29 }
 0x762   :  { %4365 = vsyncpa [#allocation8], 1 }
 0x763   :  { %4367 = vsyncpa [#allocation8 + $0x1], 1 }
 0x764   :  { %4368 = vsyncpa [#allocation9], 1 }
 0x765   :  { %4370 = vsyncpa [#allocation9 + $0x1], 1 }

</bundles_post_ra>
